<compile_context>
chip_gen: v7x
topology: tpu7x:2x2x1
jax: 0.10.0
libtpu: 0.0.40
codegen_flags: <defaults>
</compile_context>

<pallas_src>
import math

import jax
import jax.numpy as jnp
from jax.experimental import pallas as pl
from jax.experimental.pallas import tpu as pltpu


# ----------------------------------------------------------------------------
# Fused multi-step decoder kernel: one grid step == one decode step.
# ----------------------------------------------------------------------------
def _fused_decoder_kernel(ids_ref, enc_ref, h0_ref, emb_ref,
                          vat_w_ref, comb_w_ref, comb_b_ref,
                          wih_ref, whh_ref, bih_ref, bhh_ref,
                          out_w_ref, out_b_ref,
                          logp_ref, attn_ref, hfin_ref,
                          h_scr):
    """Shapes (f32 unless noted):
         ids (S,B,1) int32 (resident), enc (B,T,H) (resident), h0 (B,H),
         emb (V,H), vat_w (1,H), comb_w (2H,H), comb_b (1,H),
         wih/whh (H,3H), bih/bhh (1,3H), out_w (H,V), out_b (1,V)
       Per-step outputs: logp (1,B,V), attn (1,B,T).  Resident output: hfin (B,H).
       Scratch: h_scr (B,H) carries the GRU hidden state across grid steps."""
    s = pl.program_id(0)
    B, H = h0_ref.shape
    V = emb_ref.shape[0]

    @pl.when(s == 0)
    def _init():
        h_scr[...] = h0_ref[...]

    h = h_scr[...]                                                        # (B,H)

    # ---- embedding lookup: one-hot @ table (single MXU push; V is small here) ----
    ids_blk = ids_ref[s]                                                  # (B,1) int32
    onehot = (jax.lax.broadcasted_iota(jnp.int32, (B, V), 1) == ids_blk).astype(jnp.float32)
    embedded = jnp.dot(onehot, emb_ref[...], preferred_element_type=jnp.float32)   # (B,H)
    # TODO(synk): dropout(p=0.1) treated as identity (eval-mode forward).
    # TODO(synk): for production vocab sizes, replace the one-hot matmul with a
    #             scalar-prefetch row gather from an HBM-resident embedding table.

    # ---- additive attention in (B,T) orientation (no in-kernel transpose) ----
    enc = enc_ref[...]                                                    # (B,T,H)
    alpha = jnp.tanh(enc + h[:, None, :])                                 # (B,T,H)
    # vat bias adds the same constant to every score -> cancels in the softmax, dropped.
    scores = jnp.sum(alpha * vat_w_ref[...][None, :, :], axis=-1)         # (B,T)
    m = jnp.max(scores, axis=-1, keepdims=True)
    e = jnp.exp(scores - m)
    w = e * pl.reciprocal(jnp.sum(e, axis=-1, keepdims=True), approx=True)  # (B,T)
    attn_ref[0] = w.astype(attn_ref.dtype)

    # context[b] = sum_t w[b,t] * enc[b,t,:]
    context = jnp.sum(w[:, :, None] * enc, axis=1)                        # (B,H)

    # ---- attn_combine(cat(embedded, context)) + ReLU; concat folded into split-K ----
    x = (jnp.dot(embedded, comb_w_ref[0:H, :], preferred_element_type=jnp.float32)
         + jnp.dot(context, comb_w_ref[H:2 * H, :], preferred_element_type=jnp.float32)
         + comb_b_ref[...])                                               # (B,H)
    x = jnp.maximum(x, 0.0)

    # ---- one GRU step; gates fused into (H,3H) matmuls; PyTorch (r,z,n) order ----
    gx = jnp.dot(x, wih_ref[...], preferred_element_type=jnp.float32) + bih_ref[...]   # (B,3H)
    gh = jnp.dot(h, whh_ref[...], preferred_element_type=jnp.float32) + bhh_ref[...]   # (B,3H)
    r = jax.nn.sigmoid(gx[:, 0:H] + gh[:, 0:H])
    z = jax.nn.sigmoid(gx[:, H:2 * H] + gh[:, H:2 * H])
    n = jnp.tanh(gx[:, 2 * H:3 * H] + r * gh[:, 2 * H:3 * H])
    h_new = (1.0 - z) * n + z * h                                         # (B,H)

    h_scr[...] = h_new                                                    # carry to next step
    hfin_ref[...] = h_new.astype(hfin_ref.dtype)                          # flushed once at grid end

    # ---- output projection (lane-dense over V) + log_softmax ----
    logits = (jnp.dot(h_new, out_w_ref[...], preferred_element_type=jnp.float32)
              + out_b_ref[...])                                           # (B,V)
    m2 = jnp.max(logits, axis=-1, keepdims=True)
    shifted = logits - m2
    lse = jnp.log(jnp.sum(jnp.exp(shifted), axis=-1, keepdims=True))
    logp_ref[0] = (shifted - lse).astype(logp_ref.dtype)


# ----------------------------------------------------------------------------
# Shared wrapper: S fused decode steps in ONE pallas_call.
# ----------------------------------------------------------------------------
def _decode_fused(ids_seq, hidden, encoder_outputs, params):
    """ids_seq (S,B) int, hidden (1,B,H), encoder_outputs (T,B,H).
       Returns (log_probs (S,B,V), attn (S,B,T), final hidden (B,H))."""
    S, B = ids_seq.shape
    T, _, H = encoder_outputs.shape
    V = params['emb'].shape[0]

    ids3 = ids_seq.reshape(S, B, 1).astype(jnp.int32)
    h0 = hidden.reshape(B, H).astype(jnp.float32)
    enc_bth = jnp.transpose(encoder_outputs, (1, 0, 2)).astype(jnp.float32)   # (B,T,H) layout plumbing

    res2 = lambda s: (0, 0)        # resident 2-D block (same block every step -> DMA'd once)
    res3 = lambda s: (0, 0, 0)     # resident 3-D block

    grid_spec = pltpu.PrefetchScalarGridSpec(
        num_scalar_prefetch=0,
        grid=(S,),
        in_specs=[
            pl.BlockSpec((S, B, 1), res3),         # ids (resident, indexed per step in-kernel)
            pl.BlockSpec((B, T, H), res3),         # encoder outputs (resident)
            pl.BlockSpec((B, H), res2),            # h0
            pl.BlockSpec((V, H), res2),            # embedding table
            pl.BlockSpec((1, H), res2),            # vat weight
            pl.BlockSpec((2 * H, H), res2),        # attn_combine weight (pre-transposed)
            pl.BlockSpec((1, H), res2),            # attn_combine bias
            pl.BlockSpec((H, 3 * H), res2),        # GRU weight_ih^T (r,z,n)
            pl.BlockSpec((H, 3 * H), res2),        # GRU weight_hh^T
            pl.BlockSpec((1, 3 * H), res2),        # GRU bias_ih
            pl.BlockSpec((1, 3 * H), res2),        # GRU bias_hh
            pl.BlockSpec((H, V), res2),            # out weight (pre-transposed, lane-dense over V)
            pl.BlockSpec((1, V), res2),            # out bias
        ],
        out_specs=(
            pl.BlockSpec((1, B, V), lambda s: (s, 0, 0)),   # log-probs per step
            pl.BlockSpec((1, B, T), lambda s: (s, 0, 0)),   # attention weights per step
            pl.BlockSpec((B, H), res2),                     # final hidden (resident)
        ),
        scratch_shapes=[pltpu.VMEM((B, H), jnp.float32)],   # carried GRU hidden state
    )

    logp, attn, h_fin = pl.pallas_call(
        _fused_decoder_kernel,
        grid_spec=grid_spec,
        out_shape=(jax.ShapeDtypeStruct((S, B, V), jnp.float32),
                   jax.ShapeDtypeStruct((S, B, T), jnp.float32),
                   jax.ShapeDtypeStruct((B, H), jnp.float32)),
        compiler_params=pltpu.CompilerParams(
            dimension_semantics=("arbitrary",)),            # steps carry state -> sequential
    )(ids3, enc_bth, h0, params['emb'], params['vat_w'],
      params['comb_w'], params['comb_b'],
      params['gru_wih'], params['gru_whh'], params['gru_bih'], params['gru_bhh'],
      params['out_w'], params['out_b'])
    return logp, attn, h_fin


# ----------------------------------------------------------------------------
# Module-equivalent single step: DecoderAttention.forward(input, hidden, enc_out)
# ----------------------------------------------------------------------------
def decoder_attention_forward(input_ids, hidden, encoder_outputs, params):
    """input_ids (B,), hidden (1,B,H), encoder_outputs (T,B,H).
       Returns (log_probs (B,V), new_hidden (1,B,H), attn_weights (B,1,T))."""
    T, B, H = encoder_outputs.shape
    logp, attn, h_fin = _decode_fused(input_ids.reshape(1, B), hidden, encoder_outputs, params)
    return logp[0], h_fin.reshape(1, B, H), attn[0].reshape(B, 1, T)


def decoder_attention_decode(ids_seq, hidden, encoder_outputs, params):
    """Teacher-forced multi-step decode fused into one pallas_call.
       ids_seq (S,B), hidden (1,B,H), encoder_outputs (T,B,H).
       Returns (log_probs (S,B,V), final_hidden (1,B,H), attn_weights (S,B,1,T))."""
    T, B, H = encoder_outputs.shape
    S = ids_seq.shape[0]
    logp, attn, h_fin = _decode_fused(ids_seq, hidden, encoder_outputs, params)
    return logp, h_fin.reshape(1, B, H), attn.reshape(S, B, 1, T)


# ----------------------------------------------------------------------------
# Pure-JAX reference of the PyTorch forward semantics (for correctness check).
# ----------------------------------------------------------------------------
def _reference_decode(ids_seq, hidden, encoder_outputs, params):
    T, B, H = encoder_outputs.shape
    h = hidden.reshape(B, H)
    logps, attns = [], []
    for s in range(ids_seq.shape[0]):
        embedded = params['emb'][ids_seq[s]]                               # (B,H)
        alpha = jnp.tanh(h[None, :, :] + encoder_outputs)                  # (T,B,H)
        scores = jnp.einsum('tbh,h->bt', alpha, params['vat_w'][0]) + params['vat_b'][0, 0]
        w = jax.nn.softmax(scores, axis=-1)                                # (B,T)
        context = jnp.einsum('bt,tbh->bh', w, encoder_outputs)             # (B,H)
        x = jax.nn.relu(jnp.concatenate([embedded, context], axis=-1)
                        @ params['comb_w'] + params['comb_b'])
        gx = x @ params['gru_wih'] + params['gru_bih']
        gh = h @ params['gru_whh'] + params['gru_bhh']
        r = jax.nn.sigmoid(gx[:, :H] + gh[:, :H])
        z = jax.nn.sigmoid(gx[:, H:2 * H] + gh[:, H:2 * H])
        n = jnp.tanh(gx[:, 2 * H:] + r * gh[:, 2 * H:])
        h = (1.0 - z) * n + z * h
        logits = h @ params['out_w'] + params['out_b']
        logps.append(jax.nn.log_softmax(logits, axis=-1))
        attns.append(w)
    return jnp.stack(logps), jnp.stack(attns), h


# ----------------------------------------------------------------------------
# Deterministic parameter init (shapes follow DecoderAttention.__init__)
# ----------------------------------------------------------------------------
def init_params(key, hidden_size, output_size):
    H, V = hidden_size, output_size
    ks = jax.random.split(key, 11)

    def u(k, shape, fan_in):
        b = 1.0 / math.sqrt(fan_in)
        return jax.random.uniform(k, shape, jnp.float32, -b, b)

    return {
        'emb':     jax.random.normal(ks[0], (V, H), jnp.float32),   # nn.Embedding ~ N(0,1)
        'vat_w':   u(ks[1], (1, H), H),                             # Linear(H,1).weight
        'vat_b':   u(ks[2], (1, 1), H),                             # cancels in softmax (ref only)
        'comb_w':  u(ks[3], (2 * H, H), 2 * H),                     # Linear(2H,H).weight^T
        'comb_b':  u(ks[4], (1, H), 2 * H),
        'gru_wih': u(ks[5], (H, 3 * H), H),                         # GRU weight_ih_l0^T (r,z,n)
        'gru_whh': u(ks[6], (H, 3 * H), H),                         # GRU weight_hh_l0^T
        'gru_bih': u(ks[7], (1, 3 * H), H),
        'gru_bhh': u(ks[8], (1, 3 * H), H),
        'out_w':   u(ks[9], (H, V), H),                             # Linear(H,V).weight^T
        'out_b':   u(ks[10], (1, V), H),
    }


if __name__ == "__main__":
    # TPU-friendly small sizes: B multiple of 8 (f32 sublane), H = 128 (lane width),
    # V multiple of 128 (lane-dense output projection), S decode steps fused in one call.
    H, V = 128, 256
    B, T, S = 8, 32, 4

    root = jax.random.PRNGKey(0)
    pkey, ikey, hkey, ekey = jax.random.split(root, 4)
    params = init_params(pkey, H, V)

    ids_seq = jax.random.randint(ikey, (S, B), 0, V, jnp.int32)          # teacher-forced tokens
    hidden0 = 0.1 * jax.random.normal(hkey, (1, B, H), jnp.float32)      # initial GRU hidden
    encoder_outputs = jax.random.normal(ekey, (T, B, H), jnp.float32)    # encoder features

    # --- fused multi-step decode: ONE pallas_call for the whole sequence ---
    decode = jax.jit(decoder_attention_decode)
    log_probs, final_hidden, attn_weights = decode(ids_seq, hidden0, encoder_outputs, params)
    jax.block_until_ready((log_probs, final_hidden, attn_weights))

    assert log_probs.shape == (S, B, V), log_probs.shape
    assert final_hidden.shape == (1, B, H), final_hidden.shape
    assert attn_weights.shape == (S, B, 1, T), attn_weights.shape
    assert bool(jnp.all(jnp.isfinite(log_probs)))
    assert bool(jnp.all(jnp.isfinite(final_hidden)))
    assert bool(jnp.all(jnp.isfinite(attn_weights)))
    assert bool(jnp.all(jnp.abs(jnp.sum(attn_weights, axis=-1) - 1.0) < 5e-3))
    assert bool(jnp.all(jnp.abs(jnp.sum(jnp.exp(log_probs), axis=-1) - 1.0) < 2e-3))

    # --- compare against the pure-JAX reference of the PyTorch module semantics ---
    ref_logp, ref_attn, ref_h = _reference_decode(ids_seq, hidden0, encoder_outputs, params)
    assert float(jnp.max(jnp.abs(log_probs - ref_logp))) < 2e-2
    assert float(jnp.max(jnp.abs(attn_weights[:, :, 0, :] - ref_attn))) < 2e-2
    assert float(jnp.max(jnp.abs(final_hidden[0] - ref_h))) < 2e-2

    # --- single-step path matches DecoderAttention.forward signature/semantics ---
    step = jax.jit(decoder_attention_forward)
    lp1, h1, aw1 = step(ids_seq[0], hidden0, encoder_outputs, params)
    jax.block_until_ready((lp1, h1, aw1))
    assert lp1.shape == (B, V) and h1.shape == (1, B, H) and aw1.shape == (B, 1, T)
    assert float(jnp.max(jnp.abs(lp1 - ref_logp[0]))) < 2e-2

    print("KERNEL_OK")
</pallas_src>

<mosaic_0001>
module attributes {stable_mosaic.version = 11 : i64} {
  func.func @_fused_decoder_kernel(%arg0: i32, %arg1: memref<4x8x1xi32, #tpu.memory_space<vmem>>, %arg2: memref<8x32x128xf32, #tpu.memory_space<vmem>>, %arg3: memref<8x128xf32, #tpu.memory_space<vmem>>, %arg4: memref<256x128xf32, #tpu.memory_space<vmem>>, %arg5: memref<1x128xf32, #tpu.memory_space<vmem>>, %arg6: memref<256x128xf32, #tpu.memory_space<vmem>>, %arg7: memref<1x128xf32, #tpu.memory_space<vmem>>, %arg8: memref<128x384xf32, #tpu.memory_space<vmem>>, %arg9: memref<128x384xf32, #tpu.memory_space<vmem>>, %arg10: memref<1x384xf32, #tpu.memory_space<vmem>>, %arg11: memref<1x384xf32, #tpu.memory_space<vmem>>, %arg12: memref<128x256xf32, #tpu.memory_space<vmem>>, %arg13: memref<1x256xf32, #tpu.memory_space<vmem>>, %arg14: memref<1x8x256xf32, #tpu.memory_space<vmem>>, %arg15: memref<1x8x32xf32, #tpu.memory_space<vmem>>, %arg16: memref<8x128xf32, #tpu.memory_space<vmem>>, %arg17: memref<8x128xf32, #tpu.memory_space<vmem>>) attributes {dimension_semantics = [#tpu.dimension_semantics<arbitrary>], iteration_bounds = array<i64: 4>, scalar_prefetch = 0 : i64, scratch_operands = 1 : i64, tpu.core_type = #tpu.core_type<tc>, window_params = [{pipeline_mode = #tpu.pipeline_mode<synchronous>, transform_indices = @transform_0, window_bounds = array<i64: 4, 8, 1>}, {pipeline_mode = #tpu.pipeline_mode<synchronous>, transform_indices = @transform_1, window_bounds = array<i64: 8, 32, 128>}, {pipeline_mode = #tpu.pipeline_mode<synchronous>, transform_indices = @transform_2, window_bounds = array<i64: 8, 128>}, {pipeline_mode = #tpu.pipeline_mode<synchronous>, transform_indices = @transform_3, window_bounds = array<i64: 256, 128>}, {pipeline_mode = #tpu.pipeline_mode<synchronous>, transform_indices = @transform_4, window_bounds = array<i64: 1, 128>}, {pipeline_mode = #tpu.pipeline_mode<synchronous>, transform_indices = @transform_5, window_bounds = array<i64: 256, 128>}, {pipeline_mode = #tpu.pipeline_mode<synchronous>, transform_indices = @transform_6, window_bounds = array<i64: 1, 128>}, {pipeline_mode = #tpu.pipeline_mode<synchronous>, transform_indices = @transform_7, window_bounds = array<i64: 128, 384>}, {pipeline_mode = #tpu.pipeline_mode<synchronous>, transform_indices = @transform_8, window_bounds = array<i64: 128, 384>}, {pipeline_mode = #tpu.pipeline_mode<synchronous>, transform_indices = @transform_9, window_bounds = array<i64: 1, 384>}, {pipeline_mode = #tpu.pipeline_mode<synchronous>, transform_indices = @transform_10, window_bounds = array<i64: 1, 384>}, {pipeline_mode = #tpu.pipeline_mode<synchronous>, transform_indices = @transform_11, window_bounds = array<i64: 128, 256>}, {pipeline_mode = #tpu.pipeline_mode<synchronous>, transform_indices = @transform_12, window_bounds = array<i64: 1, 256>}, {transform_indices = @transform_13, window_bounds = array<i64: 1, 8, 256>}, {transform_indices = @transform_14, window_bounds = array<i64: 1, 8, 32>}, {pipeline_mode = #tpu.pipeline_mode<synchronous>, transform_indices = @transform_15, window_bounds = array<i64: 8, 128>}]} {
    %c0_i32 = arith.constant 0 : i32
    %0 = arith.cmpi eq, %arg0, %c0_i32 : i32
    %1 = arith.extui %0 : i1 to i32
    %c0_i32_0 = arith.constant 0 : i32
    %2 = arith.cmpi ne, %1, %c0_i32_0 : i32
    scf.if %2 {
      %c0_53 = arith.constant 0 : index
      %c0_54 = arith.constant 0 : index
      %107 = vector.load %arg3[%c0_53, %c0_54] : memref<8x128xf32, #tpu.memory_space<vmem>>, vector<8x128xf32>
      %c0_55 = arith.constant 0 : index
      %c0_56 = arith.constant 0 : index
      %108 = vector.load %arg17[%c0_55, %c0_56] : memref<8x128xf32, #tpu.memory_space<vmem>>, vector<8x128xf32>
      tpu.vector_store %arg17[%c0_55, %c0_56], %107 {strides = array<i32>} : memref<8x128xf32, #tpu.memory_space<vmem>>, vector<8x128xf32>,
    } else {
    }
    %c0 = arith.constant 0 : index
    %c0_1 = arith.constant 0 : index
    %3 = vector.load %arg17[%c0, %c0_1] : memref<8x128xf32, #tpu.memory_space<vmem>>, vector<8x128xf32>
    %4 = arith.index_cast %arg0 : i32 to index
    %c0_2 = arith.constant 0 : index
    %c0_3 = arith.constant 0 : index
    %5 = vector.load %arg1[%4, %c0_2, %c0_3] : memref<4x8x1xi32, #tpu.memory_space<vmem>>, vector<1x8x1xi32>
    %6 = vector.shape_cast %5 : vector<1x8x1xi32> to vector<8x1xi32>
    %7 = tpu.iota {dimensions = array<i32: 1>} : vector<8x256xi32>
    %8 = vector.broadcast %6 : vector<8x1xi32> to vector<8x256xi32>
    %9 = arith.cmpi eq, %7, %8 : vector<8x256xi32>
    %10 = arith.extui %9 : vector<8x256xi1> to vector<8x256xi32>
    %11 = arith.sitofp %10 : vector<8x256xi32> to vector<8x256xf32>
    %c0_4 = arith.constant 0 : index
    %c0_5 = arith.constant 0 : index
    %12 = vector.load %arg4[%c0_4, %c0_5] : memref<256x128xf32, #tpu.memory_space<vmem>>, vector<256x128xf32>
    %cst = arith.constant dense<0.000000e+00> : vector<8x128xf32>
    %13 = tpu.matmul %11, %12, %cst {dimension_numbers = #tpu.dot_dimension_numbers<[1], [0], [0], [1], [0, 0, 1, 1], [], []>} : vector<8x256xf32>, vector<256x128xf32>, vector<8x128xf32> -> vector<8x128xf32>
    %c0_6 = arith.constant 0 : index
    %c0_7 = arith.constant 0 : index
    %c0_8 = arith.constant 0 : index
    %14 = vector.load %arg2[%c0_6, %c0_7, %c0_8] : memref<8x32x128xf32, #tpu.memory_space<vmem>>, vector<8x32x128xf32>
    %15 = vector.shape_cast %3 : vector<8x128xf32> to vector<8x1x128xf32>
    %16 = vector.broadcast %15 : vector<8x1x128xf32> to vector<8x32x128xf32>
    %17 = arith.addf %14, %16 : vector<8x32x128xf32>
    %18 = math.tanh %17 : vector<8x32x128xf32>
    %c0_9 = arith.constant 0 : index
    %c0_10 = arith.constant 0 : index
    %19 = vector.load %arg5[%c0_9, %c0_10] : memref<1x128xf32, #tpu.memory_space<vmem>>, vector<1x128xf32>
    %20 = vector.shape_cast %19 : vector<1x128xf32> to vector<1x1x128xf32>
    %21 = vector.broadcast %20 : vector<1x1x128xf32> to vector<8x32x128xf32>
    %22 = arith.mulf %18, %21 : vector<8x32x128xf32>
    %cst_11 = arith.constant dense<0.000000e+00> : vector<8x32xf32>
    %23 = vector.multi_reduction <add>, %22, %cst_11 [2] : vector<8x32x128xf32> to vector<8x32xf32>
    %cst_12 = arith.constant dense<0xFF800000> : vector<8xf32>
    %24 = vector.multi_reduction <maximumf>, %23, %cst_12 [1] : vector<8x32xf32> to vector<8xf32>
    %25 = vector.shape_cast %24 : vector<8xf32> to vector<8x1xf32>
    %26 = vector.broadcast %25 : vector<8x1xf32> to vector<8x32xf32>
    %27 = arith.subf %23, %26 : vector<8x32xf32>
    %28 = math.exp %27 : vector<8x32xf32>
    %cst_13 = arith.constant dense<0.000000e+00> : vector<8xf32>
    %29 = vector.multi_reduction <add>, %28, %cst_13 [1] : vector<8x32xf32> to vector<8xf32>
    %30 = vector.shape_cast %29 : vector<8xf32> to vector<8x1xf32>
    %31 = tpu.reciprocal %30 {approx = true} : vector<8x1xf32> -> vector<8x1xf32>
    %32 = vector.broadcast %31 : vector<8x1xf32> to vector<8x32xf32>
    %33 = arith.mulf %28, %32 : vector<8x32xf32>
    %c0_14 = arith.constant 0 : index
    %c0_15 = arith.constant 0 : index
    %c0_16 = arith.constant 0 : index
    %34 = vector.load %arg15[%c0_14, %c0_15, %c0_16] : memref<1x8x32xf32, #tpu.memory_space<vmem>>, vector<1x8x32xf32>
    %35 = vector.shape_cast %34 : vector<1x8x32xf32> to vector<8x32xf32>
    %36 = vector.shape_cast %33 : vector<8x32xf32> to vector<1x8x32xf32>
    tpu.vector_store %arg15[%c0_14, %c0_15, %c0_16], %36 {strides = array<i32>} : memref<1x8x32xf32, #tpu.memory_space<vmem>>, vector<1x8x32xf32>,
    %37 = vector.shape_cast %33 : vector<8x32xf32> to vector<8x32x1xf32>
    %38 = vector.broadcast %37 : vector<8x32x1xf32> to vector<8x32x128xf32>
    %39 = arith.mulf %38, %14 : vector<8x32x128xf32>
    %cst_17 = arith.constant dense<0.000000e+00> : vector<8x128xf32>
    %40 = vector.multi_reduction <add>, %39, %cst_17 [1] : vector<8x32x128xf32> to vector<8x128xf32>
    %c0_18 = arith.constant 0 : index
    %c0_19 = arith.constant 0 : index
    %41 = vector.load %arg6[%c0_18, %c0_19] : memref<256x128xf32, #tpu.memory_space<vmem>>, vector<128x128xf32>
    %cst_20 = arith.constant dense<0.000000e+00> : vector<8x128xf32>
    %42 = tpu.matmul %13, %41, %cst_20 {dimension_numbers = #tpu.dot_dimension_numbers<[1], [0], [0], [1], [0, 0, 1, 1], [], []>} : vector<8x128xf32>, vector<128x128xf32>, vector<8x128xf32> -> vector<8x128xf32>
    %c128 = arith.constant 128 : index
    %c0_21 = arith.constant 0 : index
    %43 = vector.load %arg6[%c128, %c0_21] : memref<256x128xf32, #tpu.memory_space<vmem>>, vector<128x128xf32>
    %cst_22 = arith.constant dense<0.000000e+00> : vector<8x128xf32>
    %44 = tpu.matmul %40, %43, %cst_22 {dimension_numbers = #tpu.dot_dimension_numbers<[1], [0], [0], [1], [0, 0, 1, 1], [], []>} : vector<8x128xf32>, vector<128x128xf32>, vector<8x128xf32> -> vector<8x128xf32>
    %45 = arith.addf %42, %44 : vector<8x128xf32>
    %c0_23 = arith.constant 0 : index
    %c0_24 = arith.constant 0 : index
    %46 = vector.load %arg7[%c0_23, %c0_24] : memref<1x128xf32, #tpu.memory_space<vmem>>, vector<1x128xf32>
    %47 = vector.broadcast %46 : vector<1x128xf32> to vector<8x128xf32>
    %48 = arith.addf %45, %47 : vector<8x128xf32>
    %cst_25 = arith.constant 0.000000e+00 : f32
    %49 = vector.broadcast %cst_25 : f32 to vector<8x128xf32>
    %50 = arith.maximumf %48, %49 : vector<8x128xf32>
    %c0_26 = arith.constant 0 : index
    %c0_27 = arith.constant 0 : index
    %51 = vector.load %arg8[%c0_26, %c0_27] : memref<128x384xf32, #tpu.memory_space<vmem>>, vector<128x384xf32>
    %cst_28 = arith.constant dense<0.000000e+00> : vector<8x384xf32>
    %52 = tpu.matmul %50, %51, %cst_28 {dimension_numbers = #tpu.dot_dimension_numbers<[1], [0], [0], [1], [0, 0, 1, 1], [], []>} : vector<8x128xf32>, vector<128x384xf32>, vector<8x384xf32> -> vector<8x384xf32>
    %c0_29 = arith.constant 0 : index
    %c0_30 = arith.constant 0 : index
    %53 = vector.load %arg10[%c0_29, %c0_30] : memref<1x384xf32, #tpu.memory_space<vmem>>, vector<1x384xf32>
    %54 = vector.broadcast %53 : vector<1x384xf32> to vector<8x384xf32>
    %55 = arith.addf %52, %54 : vector<8x384xf32>
    %c0_31 = arith.constant 0 : index
    %c0_32 = arith.constant 0 : index
    %56 = vector.load %arg9[%c0_31, %c0_32] : memref<128x384xf32, #tpu.memory_space<vmem>>, vector<128x384xf32>
    %cst_33 = arith.constant dense<0.000000e+00> : vector<8x384xf32>
    %57 = tpu.matmul %3, %56, %cst_33 {dimension_numbers = #tpu.dot_dimension_numbers<[1], [0], [0], [1], [0, 0, 1, 1], [], []>} : vector<8x128xf32>, vector<128x384xf32>, vector<8x384xf32> -> vector<8x384xf32>
    %c0_34 = arith.constant 0 : index
    %c0_35 = arith.constant 0 : index
    %58 = vector.load %arg11[%c0_34, %c0_35] : memref<1x384xf32, #tpu.memory_space<vmem>>, vector<1x384xf32>
    %59 = vector.broadcast %58 : vector<1x384xf32> to vector<8x384xf32>
    %60 = arith.addf %57, %59 : vector<8x384xf32>
    %61 = vector.extract_strided_slice %55 {offsets = [0, 0], sizes = [8, 128], strides = [1, 1]} : vector<8x384xf32> to vector<8x128xf32>
    %62 = vector.extract_strided_slice %60 {offsets = [0, 0], sizes = [8, 128], strides = [1, 1]} : vector<8x384xf32> to vector<8x128xf32>
    %63 = arith.addf %61, %62 : vector<8x128xf32>
    %64 = arith.negf %63 : vector<8x128xf32>
    %65 = math.exp %64 : vector<8x128xf32>
    %cst_36 = arith.constant 1.000000e+00 : f32
    %66 = vector.broadcast %cst_36 : f32 to vector<8x128xf32>
    %67 = arith.addf %66, %65 : vector<8x128xf32>
    %68 = arith.divf %66, %67 : vector<8x128xf32>
    %69 = vector.extract_strided_slice %55 {offsets = [0, 128], sizes = [8, 128], strides = [1, 1]} : vector<8x384xf32> to vector<8x128xf32>
    %70 = vector.extract_strided_slice %60 {offsets = [0, 128], sizes = [8, 128], strides = [1, 1]} : vector<8x384xf32> to vector<8x128xf32>
    %71 = arith.addf %69, %70 : vector<8x128xf32>
    %72 = arith.negf %71 : vector<8x128xf32>
    %73 = math.exp %72 : vector<8x128xf32>
    %cst_37 = arith.constant 1.000000e+00 : f32
    %74 = vector.broadcast %cst_37 : f32 to vector<8x128xf32>
    %75 = arith.addf %74, %73 : vector<8x128xf32>
    %76 = arith.divf %74, %75 : vector<8x128xf32>
    %77 = vector.extract_strided_slice %55 {offsets = [0, 256], sizes = [8, 128], strides = [1, 1]} : vector<8x384xf32> to vector<8x128xf32>
    %78 = vector.extract_strided_slice %60 {offsets = [0, 256], sizes = [8, 128], strides = [1, 1]} : vector<8x384xf32> to vector<8x128xf32>
    %79 = arith.mulf %68, %78 : vector<8x128xf32>
    %80 = arith.addf %77, %79 : vector<8x128xf32>
    %81 = math.tanh %80 : vector<8x128xf32>
    %cst_38 = arith.constant 1.000000e+00 : f32
    %82 = vector.broadcast %cst_38 : f32 to vector<8x128xf32>
    %83 = arith.subf %82, %76 : vector<8x128xf32>
    %84 = arith.mulf %83, %81 : vector<8x128xf32>
    %85 = arith.mulf %76, %3 : vector<8x128xf32>
    %86 = arith.addf %84, %85 : vector<8x128xf32>
    %c0_39 = arith.constant 0 : index
    %c0_40 = arith.constant 0 : index
    %87 = vector.load %arg17[%c0_39, %c0_40] : memref<8x128xf32, #tpu.memory_space<vmem>>, vector<8x128xf32>
    tpu.vector_store %arg17[%c0_39, %c0_40], %86 {strides = array<i32>} : memref<8x128xf32, #tpu.memory_space<vmem>>, vector<8x128xf32>,
    %c0_41 = arith.constant 0 : index
    %c0_42 = arith.constant 0 : index
    %88 = vector.load %arg16[%c0_41, %c0_42] : memref<8x128xf32, #tpu.memory_space<vmem>>, vector<8x128xf32>
    tpu.vector_store %arg16[%c0_41, %c0_42], %86 {strides = array<i32>} : memref<8x128xf32, #tpu.memory_space<vmem>>, vector<8x128xf32>,
    %c0_43 = arith.constant 0 : index
    %c0_44 = arith.constant 0 : index
    %89 = vector.load %arg12[%c0_43, %c0_44] : memref<128x256xf32, #tpu.memory_space<vmem>>, vector<128x256xf32>
    %cst_45 = arith.constant dense<0.000000e+00> : vector<8x256xf32>
    %90 = tpu.matmul %86, %89, %cst_45 {dimension_numbers = #tpu.dot_dimension_numbers<[1], [0], [0], [1], [0, 0, 1, 1], [], []>} : vector<8x128xf32>, vector<128x256xf32>, vector<8x256xf32> -> vector<8x256xf32>
    %c0_46 = arith.constant 0 : index
    %c0_47 = arith.constant 0 : index
    %91 = vector.load %arg13[%c0_46, %c0_47] : memref<1x256xf32, #tpu.memory_space<vmem>>, vector<1x256xf32>
    %92 = vector.broadcast %91 : vector<1x256xf32> to vector<8x256xf32>
    %93 = arith.addf %90, %92 : vector<8x256xf32>
    %cst_48 = arith.constant dense<0xFF800000> : vector<8xf32>
    %94 = vector.multi_reduction <maximumf>, %93, %cst_48 [1] : vector<8x256xf32> to vector<8xf32>
    %95 = vector.shape_cast %94 : vector<8xf32> to vector<8x1xf32>
    %96 = vector.broadcast %95 : vector<8x1xf32> to vector<8x256xf32>
    %97 = arith.subf %93, %96 : vector<8x256xf32>
    %98 = math.exp %97 : vector<8x256xf32>
    %cst_49 = arith.constant dense<0.000000e+00> : vector<8xf32>
    %99 = vector.multi_reduction <add>, %98, %cst_49 [1] : vector<8x256xf32> to vector<8xf32>
    %100 = vector.shape_cast %99 : vector<8xf32> to vector<8x1xf32>
    %101 = math.log %100 : vector<8x1xf32>
    %102 = vector.broadcast %101 : vector<8x1xf32> to vector<8x256xf32>
    %103 = arith.subf %97, %102 : vector<8x256xf32>
    %c0_50 = arith.constant 0 : index
    %c0_51 = arith.constant 0 : index
    %c0_52 = arith.constant 0 : index
    %104 = vector.load %arg14[%c0_50, %c0_51, %c0_52] : memref<1x8x256xf32, #tpu.memory_space<vmem>>, vector<1x8x256xf32>
    %105 = vector.shape_cast %104 : vector<1x8x256xf32> to vector<8x256xf32>
    %106 = vector.shape_cast %103 : vector<8x256xf32> to vector<1x8x256xf32>
    tpu.vector_store %arg14[%c0_50, %c0_51, %c0_52], %106 {strides = array<i32>} : memref<1x8x256xf32, #tpu.memory_space<vmem>>, vector<1x8x256xf32>,
    return
  }
  func.func @transform_0(%arg0: i32) -> (i32, i32, i32) {
    %c0_i32 = arith.constant 0 : i32
    %c0_i32_0 = arith.constant 0 : i32
    %c0_i32_1 = arith.constant 0 : i32
    %c0_i32_2 = arith.constant 0 : i32
    return %c0_i32, %c0_i32_0, %c0_i32_1 : i32, i32, i32
  }
  func.func @transform_1(%arg0: i32) -> (i32, i32, i32) {
    %c0_i32 = arith.constant 0 : i32
    %c0_i32_0 = arith.constant 0 : i32
    %c0_i32_1 = arith.constant 0 : i32
    %c0_i32_2 = arith.constant 0 : i32
    return %c0_i32, %c0_i32_0, %c0_i32_1 : i32, i32, i32
  }
  func.func @transform_2(%arg0: i32) -> (i32, i32) {
    %c0_i32 = arith.constant 0 : i32
    %c0_i32_0 = arith.constant 0 : i32
    %c0_i32_1 = arith.constant 0 : i32
    return %c0_i32, %c0_i32_0 : i32, i32
  }
  func.func @transform_3(%arg0: i32) -> (i32, i32) {
    %c0_i32 = arith.constant 0 : i32
    %c0_i32_0 = arith.constant 0 : i32
    %c0_i32_1 = arith.constant 0 : i32
    return %c0_i32, %c0_i32_0 : i32, i32
  }
  func.func @transform_4(%arg0: i32) -> (i32, i32) {
    %c0_i32 = arith.constant 0 : i32
    %c0_i32_0 = arith.constant 0 : i32
    %c0_i32_1 = arith.constant 0 : i32
    return %c0_i32, %c0_i32_0 : i32, i32
  }
  func.func @transform_5(%arg0: i32) -> (i32, i32) {
    %c0_i32 = arith.constant 0 : i32
    %c0_i32_0 = arith.constant 0 : i32
    %c0_i32_1 = arith.constant 0 : i32
    return %c0_i32, %c0_i32_0 : i32, i32
  }
  func.func @transform_6(%arg0: i32) -> (i32, i32) {
    %c0_i32 = arith.constant 0 : i32
    %c0_i32_0 = arith.constant 0 : i32
    %c0_i32_1 = arith.constant 0 : i32
    return %c0_i32, %c0_i32_0 : i32, i32
  }
  func.func @transform_7(%arg0: i32) -> (i32, i32) {
    %c0_i32 = arith.constant 0 : i32
    %c0_i32_0 = arith.constant 0 : i32
    %c0_i32_1 = arith.constant 0 : i32
    return %c0_i32, %c0_i32_0 : i32, i32
  }
  func.func @transform_8(%arg0: i32) -> (i32, i32) {
    %c0_i32 = arith.constant 0 : i32
    %c0_i32_0 = arith.constant 0 : i32
    %c0_i32_1 = arith.constant 0 : i32
    return %c0_i32, %c0_i32_0 : i32, i32
  }
  func.func @transform_9(%arg0: i32) -> (i32, i32) {
    %c0_i32 = arith.constant 0 : i32
    %c0_i32_0 = arith.constant 0 : i32
    %c0_i32_1 = arith.constant 0 : i32
    return %c0_i32, %c0_i32_0 : i32, i32
  }
  func.func @transform_10(%arg0: i32) -> (i32, i32) {
    %c0_i32 = arith.constant 0 : i32
    %c0_i32_0 = arith.constant 0 : i32
    %c0_i32_1 = arith.constant 0 : i32
    return %c0_i32, %c0_i32_0 : i32, i32
  }
  func.func @transform_11(%arg0: i32) -> (i32, i32) {
    %c0_i32 = arith.constant 0 : i32
    %c0_i32_0 = arith.constant 0 : i32
    %c0_i32_1 = arith.constant 0 : i32
    return %c0_i32, %c0_i32_0 : i32, i32
  }
  func.func @transform_12(%arg0: i32) -> (i32, i32) {
    %c0_i32 = arith.constant 0 : i32
    %c0_i32_0 = arith.constant 0 : i32
    %c0_i32_1 = arith.constant 0 : i32
    return %c0_i32, %c0_i32_0 : i32, i32
  }
  func.func @transform_13(%arg0: i32) -> (i32, i32, i32) {
    %c0_i32 = arith.constant 0 : i32
    %c0_i32_0 = arith.constant 0 : i32
    %c0_i32_1 = arith.constant 0 : i32
    return %arg0, %c0_i32, %c0_i32_0 : i32, i32, i32
  }
  func.func @transform_14(%arg0: i32) -> (i32, i32, i32) {
    %c0_i32 = arith.constant 0 : i32
    %c0_i32_0 = arith.constant 0 : i32
    %c0_i32_1 = arith.constant 0 : i32
    return %arg0, %c0_i32, %c0_i32_0 : i32, i32, i32
  }
  func.func @transform_15(%arg0: i32) -> (i32, i32) {
    %c0_i32 = arith.constant 0 : i32
    %c0_i32_0 = arith.constant 0 : i32
    %c0_i32_1 = arith.constant 0 : i32
    return %c0_i32, %c0_i32_0 : i32, i32
  }
}

</mosaic_0001>

<bundles_post_ra>
// kernel: decoder_attention_decode.1
= control target key start
LH: loop header
LB: loop body
LE: loop exit
PB: predicated region body
PF: predicated region fallthrough
CT: control target
= control target key end

     0   :  { %s5625_s0 = inlined_call_operand.vmem [shape: s32[4,8,1], index: 0, kind: input, shape index: {}]   ;;  %s5626_s1 = inlined_call_operand.vmem [shape: f32[8,32,128], index: 1, kind: input, shape index: {}]   ;;  %s5627_s2 = inlined_call_operand.vmem [shape: f32[8,128], index: 2, kind: input, shape index: {}]   ;;  %s5628_s3 = inlined_call_operand.hbm [shape: f32[256,128], index: 3, kind: input, shape index: {}]   ;;  %s5629_s4 = inlined_call_operand.vmem [shape: f32[1,128], index: 4, kind: input, shape index: {}]   ;;  %s5630_s5 = inlined_call_operand.hbm [shape: f32[256,128], index: 5, kind: input, shape index: {}]   ;;  %s5631_s6 = inlined_call_operand.vmem [shape: f32[1,128], index: 6, kind: input, shape index: {}]   ;;  %s5632_s7 = inlined_call_operand.vmem [shape: f32[128,384], index: 7, kind: input, shape index: {}]   ;;  %s5633_s8 = inlined_call_operand.hbm [shape: f32[128,384], index: 8, kind: input, shape index: {}]   ;;  %s5634_s9 = inlined_call_operand.vmem [shape: f32[1,384], index: 9, kind: input, shape index: {}]   ;;  %s5635_s10 = inlined_call_operand.vmem [shape: f32[1,384], index: 10, kind: input, shape index: {}]   ;;  %s5636_s11 = inlined_call_operand.hbm [shape: f32[128,256], index: 11, kind: input, shape index: {}]   ;;  %s5637_s12 = inlined_call_operand.vmem [shape: f32[1,256], index: 12, kind: input, shape index: {}]   ;;  %s5638_s13 = inlined_call_operand.hbm [shape: f32[4,8,256], index: 13, kind: output, shape index: {0}]   ;;  %s5639_s14 = inlined_call_operand.hbm [shape: f32[4,8,32], index: 14, kind: output, shape index: {1}]   ;;  %s5640_s15 = inlined_call_operand.hbm [shape: f32[8,128], index: 15, kind: output, shape index: {2}]  }
   0x1   :  { %5680 = sst [smem:[#allocation41_spill]] %s5637_s12 }
   0x2   :  { %5681 = sst [smem:[#allocation42_spill]] %s5638_s13 }
   0x3   :  { %5682 = sst [smem:[#allocation43_spill]] %s5639_s14 }
   0x4   :  { %5683 = sst [smem:[#allocation44_spill]] %s5640_s15 }
   0x5   :  { %21 = vsyncpa [#allocation4], 0 }
   0x6   :  { %22 = vsyncpa [#allocation7], 0 }
   0x7   :  { %23 = vsyncpa [#allocation10], 0 }
   0x8   :  { %24 = vsyncpa [#allocation5], 0 }
   0x9   :  { %26 = vsyncpa [#allocation5 + $0x1], 0 }
   0xa   :  { %27 = vsyncpa [#allocation13], 0 }
   0xb   :  { %29 = vsyncpa [#allocation13 + $0x1], 0  ;;  %s4171_s18 = smov 0   ;;  %s4173_s19 = smov 0  }
   0xc   :  { %s4175_s20 = smov 0   ;;  %s4177_s21 = smov 0  }
   0xd LB: > { %5684 = sst [smem:[#allocation21_spill]] %s4058_s18  ;;  %s4192_s22 = sadd.s32 4294967295, %s4070_s21   ;;  %s4070_s21 = sphi %s4177_s21, %s5752_s21   ;;  %s4066_s20 = sphi %s4175_s20, %s5754_s20   ;;  %s4062_s19 = sphi %s4173_s19, %s5756_s19   ;;  %s4058_s18 = sphi %s4171_s18, %s5755_s18  }
   0xe   : > { %5685 = sst [smem:[#allocation22_spill]] %s4066_s20  ;;  %s5641_s23 = sadd.s32 4294967294, %s4070_s21  }
   0xf   : > { %5686 = sst [smem:[#allocation23_spill]] %s4070_s21  ;;  %s4196_s24 = sadd.s32 1, %s4070_s21  }
  0x10   : > { %5687 = sst [smem:[#allocation24_spill]] %s4196_s24  ;;  %s315_s25 = sadd.s32 1, %s4066_s20 }
  0x11   : > { %s312_s26 = ssub.s32 %s4070_s21, %s4196_s24  ;;  %p325_p0 = scmp.ne.s32.totalorder %s4066_s20, %s4062_s19 }
  0x12   : > { %p313_p1 = scmp.eq.s32.totalorder %s312_s26, 0  ;;  %p5650_p2 = scmp.eq.s32.totalorder %s4192_s22, 3 }
  0x13   : > { %p331_p3 = scmp.ne.s32.totalorder %s4062_s19, %s4058_s18  ;;  %p332_p4 = scmp.eq.s32.totalorder %s5641_s23, 3 }
  0x14   : > { %s4209_s27 = scalar_select %p313_p1, %s4066_s20, %s315_s25  }
  0x15   : > { %p4213_p5 = por %p5650_p2, %p325_p0  ;;  %p4217_p6 = por %p332_p4, %p331_p3 }
  0x16   : > { %5688 = sst [smem:[#allocation25_spill]] %s4209_s27  ;;  %p3031_p7 = scmp.ge.s32.totalorder %s4070_s21, 1 }
  0x17   : > { %s5689_s28 = scalar_select %p4213_p5, 1, 0 }
  0x18   : > { %s5691_s29 = scalar_select %p4217_p6, 1, 0 }
  0x19   : > { %5690 = sst [smem:[#allocation26_spill]] %s5689_s28  ;;  %p386_p8 = scmp.lt.s32.totalorder %s4070_s21, 5 }
  0x1a   : > { %5692 = sst [smem:[#allocation27_spill]] %s5691_s29  ;;  %p5651_p10 = scmp.eq.s32.totalorder %s4192_s22, 0 }
  0x1b   : > { %p4225_p11 = pnand %p3031_p7, %p386_p8  ;;  %s4072_s16 = smov [#allocation6]  }
  0x1c   : > { %s423_s17 = sshll.u32 %s4072_s16, 4  ;;  %s4073_s26 = smov [#allocation3]   ;;  %s4231_s17 = int_to_ptr.vmem [resolvable:$true] %s423_s17 }
  0x1d   : > { %s5693_s30 = scalar_select %p4225_p11, 1, 0 }
  0x1e   : > { %p3560_p12 = pneg %p4225_p11  ;;  %s407_s23 = sshll.u32 %s4073_s26, 4  ;;  %s4239_s23 = int_to_ptr.vmem [resolvable:$true] %s407_s23 }
  0x1f   : > { %s4074_s27 = smov [#allocation8]   ;;  %s3822_s18 = scalar_lea.hbm %s5630_s5, 4096 }
  0x20   : > { %p4235_p13 = pnand %p5651_p10, %p3560_p12  ;;  %s4241_s20 = sshll.u32 %s4074_s27, 4  ;;  %s443_s20 = int_to_ptr.vmem [resolvable:$true] %s4241_s20 }
  0x21   : > { %p3823_p0 = scmp.ne.s32.totalorder %s5630_s5, %s3822_s18  ;;  %p3829_p7 = scmp.lt.u32.totalorder %s3822_s18, %s5630_s5 }
  0x22   : > { %p4251_p1 = pneg %p4235_p13 }
  0x24   : > { %p3825_p3 = pnand %p4251_p1, %p3823_p0 }
  0x26   : > { %p3826_p4 = pneg %p3825_p3 }
  0x28   : > { %p3831_p8 = pnand %p3829_p7, %p3826_p4 }
  0x2a   : > { %3834 = shalt.err (!%p3831_p8)
}
  0x2b   : > { %s3835_s21 = scalar_lea.vmem %s4231_s17, 4096  ;;  %p3843_p10 = scmp.lt.s32.totalorder %s4231_s17, %s4231_s17 }
  0x2c   : > { %p3836_p12 = scmp.ne.s32.totalorder %s4231_s17, %s3835_s21  ;;  %p3844_p6 = scmp.lt.s32.totalorder %s3835_s21, %s3835_s21 }
  0x2e   : > { %p3838_p2 = pnand %p3836_p12, %p4251_p1  ;;  %p3845_p0 = por %p3844_p6, %p3843_p10 }
  0x30   : > { %p3839_p9 = pneg %p3838_p2 }
  0x32   : > { %p3846_p3 = pnand %p3845_p0, %p3839_p9 }
  0x34   : > { %3849 = shalt.err (!%p3846_p3)
}
  0x35   : > { %s4075_s24 = smov 128   ;;  %s4076_s18 = smov 8  }
  0x36   : > { %3566 = dma.hbm_to_vmem [thread:$0]  (!%p4235_p13), %s5630_s5, 4096, %s4231_s17, [#allocation7], %s4075_s24, %s4075_s24, %s4076_s18  }
  0x37   : > { %s3850_s15 = scalar_lea.hbm %s5628_s3, 4096 }
  0x38   : > { %p3851_p2 = scmp.ne.s32.totalorder %s5628_s3, %s3850_s15  ;;  %p3857_p10 = scmp.lt.u32.totalorder %s3850_s15, %s5628_s3 }
  0x3a   : > { %p3853_p6 = pnand %p3851_p2, %p4251_p1 }
  0x3c   : > { %p3854_p9 = pneg %p3853_p6 }
  0x3e   : > { %p3859_p4 = pnand %p3857_p10, %p3854_p9 }
  0x40   : > { %3862 = shalt.err (!%p3859_p4)
}
  0x41   : > { %s3863_s17 = scalar_lea.vmem %s4239_s23, 4096  ;;  %p3871_p0 = scmp.lt.s32.totalorder %s4239_s23, %s4239_s23 }
  0x42   : > { %p3864_p7 = scmp.ne.s32.totalorder %s4239_s23, %s3863_s17  ;;  %p3872_p3 = scmp.lt.s32.totalorder %s3863_s17, %s3863_s17 }
  0x44   : > { %p3866_p8 = pnand %p3864_p7, %p4251_p1  ;;  %p3873_p2 = por %p3872_p3, %p3871_p0 }
  0x46   : > { %p3867_p12 = pneg %p3866_p8 }
  0x48   : > { %p3874_p6 = pnand %p3873_p2, %p3867_p12 }
  0x4a   : > { %3877 = shalt.err (!%p3874_p6)
}
  0x4b   : > { %3563 = dma.hbm_to_vmem [thread:$0]  (!%p4235_p13), %s5628_s3, 4096, %s4239_s23, [#allocation4], %s4075_s24, %s4075_s24, %s4076_s18  }
  0x4c   : > { %s3878_s29 = scalar_lea.hbm %s5633_s8, 6144 }
  0x4d   : > { %p3879_p9 = scmp.ne.s32.totalorder %s5633_s8, %s3878_s29  ;;  %p3885_p7 = scmp.lt.u32.totalorder %s3878_s29, %s5633_s8 }
  0x4f   : > { %p3881_p10 = pnand %p3879_p9, %p4251_p1 }
  0x51   : > { %p3882_p4 = pneg %p3881_p10 }
  0x53   : > { %p3887_p8 = pnand %p3885_p7, %p3882_p4 }
  0x55   : > { %3890 = shalt.err (!%p3887_p8)
}
  0x56   : > { %s3891_s17 = scalar_lea.vmem %s443_s20, 6144  ;;  %p3899_p2 = scmp.lt.s32.totalorder %s443_s20, %s443_s20 }
  0x57   : > { %p3892_p12 = scmp.ne.s32.totalorder %s443_s20, %s3891_s17  ;;  %p3900_p6 = scmp.lt.s32.totalorder %s3891_s17, %s3891_s17 }
  0x59   : > { %p3894_p0 = pnand %p3892_p12, %p4251_p1  ;;  %p3901_p5 = por %p3900_p6, %p3899_p2 }
  0x5b   : > { %p3895_p3 = pneg %p3894_p0 }
  0x5d   : > { %p3902_p11 = pnand %p3901_p5, %p3895_p3 }
  0x5f   : > { %3905 = shalt.err (!%p3902_p11)
}
  0x60   : > { %s4077_s23 = smov 384   ;;  %s4078_s24 = smov 24  }
  0x61   : > { %3569 = dma.hbm_to_vmem [thread:$0]  (!%p4235_p13), %s5633_s8, 6144, %s443_s20, [#allocation7], %s4077_s23, %s4077_s23, %s4078_s24  }
  0x62   : > { %s4079_s14 = smov [#allocation9]   ;;  %s3906_s16 = scalar_lea.hbm %s5636_s11, 4096 }
  0x63   : > { %s461_s15 = sshll.u32 %s4079_s14, 4  ;;  %p3907_p5 = scmp.ne.s32.totalorder %s5636_s11, %s3906_s16  ;;  %s462_s15 = int_to_ptr.vmem [resolvable:$true] %s461_s15 }
  0x64   : > { %p3913_p10 = scmp.lt.u32.totalorder %s3906_s16, %s5636_s11 }
  0x65   : > { %p3909_p11 = pnand %p3907_p5, %p4251_p1 }
  0x67   : > { %p3910_p9 = pneg %p3909_p11 }
  0x69   : > { %p3915_p4 = pnand %p3913_p10, %p3910_p9 }
  0x6b   : > { %3918 = shalt.err (!%p3915_p4)
}
  0x6c   : > { %s3919_s20 = scalar_lea.vmem %s462_s15, 4096  ;;  %p3927_p0 = scmp.lt.s32.totalorder %s462_s15, %s462_s15 }
  0x6d   : > { %p3920_p7 = scmp.ne.s32.totalorder %s462_s15, %s3919_s20  ;;  %p3928_p3 = scmp.lt.s32.totalorder %s3919_s20, %s3919_s20 }
  0x6f   : > { %p3922_p8 = pnand %p3920_p7, %p4251_p1  ;;  %p3929_p2 = por %p3928_p3, %p3927_p0 }
  0x71   : > { %p3923_p12 = pneg %p3922_p8 }
  0x73   : > { %p3930_p6 = pnand %p3929_p2, %p3923_p12 }
  0x75   : > { %3933 = shalt.err (!%p3930_p6)
}
  0x76   : > { %s4080_s23 = smov 256   ;;  %s4081_s24 = smov 16  }
  0x77   : > { %3572 = dma.hbm_to_vmem [thread:$0]  (!%p4235_p13), %s5636_s11, 4096, %s462_s15, [#allocation10], %s4080_s23, %s4080_s23, %s4081_s24  }
  0x78   : > { %p5696_p5 = scmp.ne.s32.totalorder %s5693_s30, 0 }
  0x7a   : > { %480 = sbr.rel (%p5696_p5) target bundleno = 2198 (0x896), region = 72 }
  0x81   : > { %p5697_p11 = scmp.eq.s32.totalorder %s4192_s22, 0 }
  0x83   : > { %4033 = dma.done.wait (%p5697_p11), [#allocation4], 4096   ;;  %p5698_p1 = pmov %p5697_p11 }
  0x85   : > { %4035 = vsyncadd (%p5698_p1), [#allocation4], 4294963200  ;;  %p5699_p9 = pmov %p5698_p1 }
  0x86   : > { %p5700_p10 = pmov %p5698_p1 }
  0x87   : > { %4037 = dma.done.wait (%p5699_p9), [#allocation7], 10240  }
  0x88   : > { %4039 = vsyncadd (%p5700_p10), [#allocation7], 4294957056  ;;  %p5701_p4 = pmov %p5698_p1 }
  0x89   : > { %p5702_p13 = pmov %p5698_p1 }
  0x8a   : > { %4041 = dma.done.wait (%p5701_p4), [#allocation10], 4096  }
  0x8b   : > { %4043 = vsyncadd (%p5702_p13), [#allocation10], 4294963200  ;;  %s4347_s13 = sand.u32 1, %s4062_s19   ;;  %p5703_p7 = scmp.ne.s32.totalorder %s4192_s22, 0 }
  0x8c   : > { %s3041_s30 = sshll.u32 %s4347_s13, 4  ;;  %s3042_s25 = sshll.u32 %s4347_s13, 3  ;;  %v544_v0 = vld [vmem:[%s5627_s2] sm:$0xff] (!%p5703_p7) }
  0x8d   : > { %s4351_s14 = scalar_lea.vmem [#allocation11], %s3041_s30  ;;  %s4353_s15 = scalar_lea.vmem [#allocation12], %s3042_s25  ;;  %545 = vst [vmem:[#allocation2] sm:$0xff] (!%p5703_p7), %v544_v0 }
  0x8e   : > { %543 = sbr.rel (%p5703_p7) target bundleno = 149 (0x95), region = 92 }
  0x95 PF: > { %v546_v1 = vld [vmem:[#allocation2] sm:$0xff]  ;;  %v550_v2 = vlaneseq  ;;  %v4082_v3 = vmov 1966171168   ;;  %v665_v17 = vld [vmem:[%s5626_s1 + $0x8] sm:$0xff]  ;;  %v666_v22 = vld [vmem:[%s5626_s1 + $0x10] sm:$0xff]  ;;  %vm994_vm0 = vcmask 130112  }
  0x96   : > { %v699_v4 = vunpack.c.l.s4 %v4082_v3  ;;  %v697_v7 = vcombine.high %v546_v1, %v546_v1  ;;  %v664_v15 = vld [vmem:[%s5626_s1] sm:$0xff]  ;;  %v669_v27 = vld [vmem:[%s5626_s1 + $0x28] sm:$0xff]  ;;  %v667_v31 = vld [vmem:[%s5626_s1 + $0x18] sm:$0xff]  ;;  %vm1001_vm1 = vcmask 195712   ;;  %vm1008_vm2 = vcmask 261312   ;;  %s3044_s30 = sshll.u32 %s4192_s22, 3 }
  0x97   : > { %v4361_v5 = vshrl.u32 %v550_v2, 7  ;;  %v680_v16 = vld [vmem:[%s5626_s1 + $0x80] sm:$0xff]  ;;  %v670_v33 = vld [vmem:[%s5626_s1 + $0x30] sm:$0xff]  ;;  %v681_v36 = vld [vmem:[%s5626_s1 + $0x88] sm:$0xff]  ;;  %vm1143_vm3 = vcmask 1041409   ;;  %vm1145_vm4 = vcmask 1042434   ;;  %s548_s29 = scalar_lea.vmem %s5625_s0, %s3044_s30 }
  0x98   : > { %v700_v6 = vunpack.c.0.s8 %v699_v4  ;;  %v668_v21 = vld [vmem:[%s5626_s1 + $0x20] sm:$0xff]  ;;  %v673_v38 = vld [vmem:[%s5626_s1 + $0x48] sm:$0xff]  ;;  %v671_v44 = vld [vmem:[%s5626_s1 + $0x38] sm:$0xff]  ;;  %vm1147_vm5 = vcmask 1043459   ;;  %vm1149_vm6 = vcmask 1044484   ;;  %vm1151_vm7 = vcmask 1045509  }
  0x99   : > { %v4368_v10 = vsub.s32 0, %v4361_v5  ;;  %v4420_v39 = vld [vmem:[%s5629_s4] ss:$0 sm:$0xff]  ;;  %v674_v54 = vld [vmem:[%s5626_s1 + $0x50] sm:$0xff]  ;;  %v675_v57 = vld [vmem:[%s5626_s1 + $0x58] sm:$0xff]  ;;  %vm1153_vm8 = vcmask 1046534  }
  0x9a   : > { %v4364_v8 = vsub.s32 %v700_v6, %v4361_v5  ;;  %v672_v42 = vld [vmem:[%s5626_s1 + $0x40] sm:$0xff]  ;;  %v677_v63 = vld [vmem:[%s5626_s1 + $0x68] sm:$0xff]  ;;  %vm1155_vm9 = vcmask 1047559   ;;  %vm1158_vm10 = vcmask 261120   ;;  %vm4086_vm13 = vmmov 0   ;;  %s5737_s16 = sld [smem:[#allocation41_spill]] }
  0x9b   : > { %v676_v4 = vld [vmem:[%s5626_s1 + $0x60] sm:$0xff]  ;;  %s5738_s26 = sld [smem:[#allocation26_spill]]  ;;  %s2859_s27 = sand.u32 1, %s4192_s22  }
  0x9c   : > { %v704_v9 = vrot.slane %v546_v1, %v4364_v8  ;;  %v4371_v11 = vrot.slane %v697_v7, %v4364_v8  ;;  %s3057_s21 = sshll.u32 %s4192_s22, 7  ;;  %s5739_s23 = sld [smem:[#allocation43_spill]] }
  0x9d   : > { %s2887_s18 = sshll.u32 %s4353_s15, 4  ;;  %s2860_s12 = scalar_lea.sflag [#allocation13], %s2859_s27  ;;  %s2888_s18 = int_to_ptr.vmem [resolvable:$true] %s2887_s18 }
  0x9e   : > { %v720_v12 = vrot.slane %v704_v9, %v4364_v8  ;;  %v4376_v13 = vrot.slane %v4371_v11, %v4364_v8  ;;  %v712_v14 = vcombine.high %v704_v9, %v704_v9  ;;  %v713_v0 = vcombine.high %v4371_v11, %v4371_v11  ;;  %v678_v11 = vld [vmem:[%s5626_s1 + $0x70] sm:$0xff]  ;;  %s3934_s30 = scalar_lea.vmem %s2888_s18, 128  ;;  %s4088_s25 = smov [#allocation12]  }
  0x9f   : > { %p3935_p8 = scmp.ne.s32.totalorder %s2888_s18, %s3934_s30  ;;  %s3938_s28 = sshll.u32 %s4088_s25, 4  ;;  %s3939_s28 = int_to_ptr.vmem [resolvable:$false] %s3938_s28 }
  0xa0   : > { %v749_v18 = vrot.slane %v720_v12, %v4368_v10  ;;  %v4390_v19 = vrot.slane %v4376_v13, %v4368_v10  ;;  %v734_v20 = vrot.slane %v712_v14, %v4364_v8  ;;  %v742_v32 = vcombine.high %v720_v12, %v720_v12  ;;  %p3941_p2 = scmp.lt.s32.totalorder %s2888_s18, %s3939_s28 }
  0xa1   : > { %v4455_v14 = vrot.slane %v713_v0, %v4364_v8  ;;  %v682_v8 = vld [vmem:[%s5626_s1 + $0x90] sm:$0xff]  ;;  %p5740_p12 = scmp.ne.s32.totalorder %s5738_s26, 0 }
  0xa2   : > { %v786_v23 = vadd.f32 %v749_v18, %v664_v15  ;;  %v802_v24 = vadd.f32 %v4390_v19, %v680_v16  ;;  %v787_v25 = vadd.f32 %v749_v18, %v665_v17  ;;  %v753_v26 = vrot.slane %v734_v20, %v4368_v10  ;;  %v679_v17 = vld [vmem:[%s5626_s1 + $0x78] sm:$0xff]  ;;  %s5529_s24 = scalar_lea.hbm %s5739_s23, %s3057_s21 }
  0xa3   : > { %v788_v29 = vadd.f32 %v749_v18, %v666_v22  ;;  %v789_v34 = vadd.f32 %v749_v18, %v667_v31  ;;  %v757_v37 = vrot.slane %v742_v32, %v4368_v10  ;;  %v803_v40 = vadd.f32 %v4390_v19, %v681_v36  ;;  %v685_v31 = vld [vmem:[%s5626_s1 + $0xa8] sm:$0xff]  ;;  %p3936_p0 = pnand %p3935_p8, %p5740_p12 }
  0xa4   : > { %3643 = vtanh.f32 %v786_v23  ;;  %v790_v28 = vadd.f32 %v753_v26, %v668_v21  ;;  %v791_v30 = vadd.f32 %v753_v26, %v669_v27  ;;  %v792_v35 = vadd.f32 %v753_v26, %v670_v33 }
  0xa5   : > { %3645 = vtanh.f32 %v802_v24  ;;  %v795_v41 = vadd.f32 %v757_v37, %v673_v38  ;;  %v794_v49 = vadd.f32 %v757_v37, %v672_v42  ;;  %v744_v50 = vcombine.high %v734_v20, %v734_v20  ;;  %p3937_p3 = pneg %p3936_p0 }
  0xa6   : > { %3647 = vtanh.f32 %v787_v25  ;;  %v793_v53 = vadd.f32 %v753_v26, %v671_v44  ;;  %v796_v59 = vadd.f32 %v757_v37, %v674_v54  ;;  %v797_v62 = vadd.f32 %v757_v37, %v675_v57  ;;  %v684_v26 = vld [vmem:[%s5626_s1 + $0xa0] sm:$0xff]  ;;  %v690_v57 = vld [vmem:[%s5626_s1 + $0xd0] sm:$0xff] }
  0xa7   : > { %3649 = vtanh.f32 %v790_v28  ;;  %v761_v60 = vrot.slane %v744_v50, %v4368_v10  ;;  %v769_v23 = vrot.slane %v4455_v14, %v4368_v10  ;;  %v804_v28 = vadd.f32 %v4390_v19, %v682_v8  ;;  %v688_v44 = vld [vmem:[%s5626_s1 + $0xc0] sm:$0xff] }
  0xa8   : > { %3651 = vtanh.f32 %v788_v29  ;;  %v743_v32 = vcombine.high %v4376_v13, %v4376_v13  ;;  %v686_v13 = vld [vmem:[%s5626_s1 + $0xb0] sm:$0xff] }
  0xa9   : > { %3653 = vtanh.f32 %v791_v30  ;;  %v799_v7 = vadd.f32 %v761_v60, %v677_v63  ;;  %v798_v12 = vadd.f32 %v761_v60, %v676_v4  ;;  %v800_v20 = vadd.f32 %v761_v60, %v678_v11 }
  0xaa   : > { %3655 = vtanh.f32 %v789_v34  ;;  %v801_v22 = vadd.f32 %v761_v60, %v679_v17  ;;  %v806_v30 = vadd.f32 %v769_v23, %v684_v26  ;;  %v807_v37 = vadd.f32 %v769_v23, %v685_v31 }
  0xab   : > { %3657 = vtanh.f32 %v792_v35  ;;  %v683_v35 = vld [vmem:[%s5626_s1 + $0x98] sm:$0xff] }
  0xac   : > { %3659 = vtanh.f32 %v803_v40  ;;  %v805_v40 = vadd.f32 %v4390_v19, %v683_v35 }
  0xad   : > { %3661 = vtanh.f32 %v795_v41  ;;  %v773_v41 = vrot.slane %v743_v32, %v4368_v10 }
  0xae   : > { %v3644_v43 = vpop.eup %3643  ;;  %3663 = vtanh.f32 %v794_v49  ;;  %v745_v49 = vcombine.high %v4455_v14, %v4455_v14 }
  0xaf   : > { %v3646_v45 = vpop.eup %3645  ;;  %v857_v46 = vmul.f32 %v3644_v43, %v4420_v39  ;;  %3665 = vtanh.f32 %v793_v53  ;;  %v812_v63 = vadd.f32 %v773_v41, %v690_v57 }
  0xb0   : > { %v3648_v47 = vpop.eup %3647  ;;  %v873_v48 = vmul.f32 %v3646_v45, %v4420_v39  ;;  %3667 = vtanh.f32 %v796_v59 }
  0xb1   : > { %v3650_v51 = vpop.eup %3649  ;;  %889 = vadd.xlane.f32.xlu0 %v857_v46  ;;  %v858_v52 = vmul.f32 %v3648_v47, %v4420_v39  ;;  %3669 = vtanh.f32 %v797_v62  ;;  %v808_v46 = vadd.f32 %v769_v23, %v686_v13  ;;  %v810_v47 = vadd.f32 %v773_v41, %v688_v44 }
  0xb2   : > { %v3652_v55 = vpop.eup %3651  ;;  %921 = vadd.xlane.f32.xlu1 %v873_v48  ;;  %v861_v56 = vmul.f32 %v3650_v51, %v4420_v39  ;;  %3671 = vtanh.f32 %v799_v7  ;;  %v689_v48 = vld [vmem:[%s5626_s1 + $0xc8] sm:$0xff]  ;;  %v691_v7 = vld [vmem:[%s5626_s1 + $0xd8] sm:$0xff] }
  0xb3   : > { %v3654_v58 = vpop.eup %3653  ;;  %v859_v61 = vmul.f32 %v3652_v55, %v4420_v39  ;;  %3673 = vtanh.f32 %v798_v12  ;;  %v811_v54 = vadd.f32 %v773_v41, %v689_v48  ;;  %v813_v14 = vadd.f32 %v773_v41, %v691_v7 }
  0xb4   : > { %v3656_v1 = vpop.eup %3655  ;;  %v862_v3 = vmul.f32 %v3654_v58, %v4420_v39  ;;  %3675 = vtanh.f32 %v800_v20  ;;  %v777_v58 = vrot.slane %v745_v49, %v4368_v10 }
  0xb5   : > { %891 = vadd.xlane.f32.xlu0 %v858_v52  ;;  %v3658_v6 = vpop.eup %3657  ;;  %v860_v9 = vmul.f32 %v3656_v1, %v4420_v39  ;;  %3677 = vtanh.f32 %v801_v22  ;;  %v687_v52 = vld [vmem:[%s5626_s1 + $0xb8] sm:$0xff] }
  0xb6   : > { %897 = vadd.xlane.f32.xlu1 %v861_v56  ;;  %v3660_v15 = vpop.eup %3659  ;;  %v863_v16 = vmul.f32 %v3658_v6, %v4420_v39  ;;  %3679 = vtanh.f32 %v804_v28  ;;  %v809_v56 = vadd.f32 %v769_v23, %v687_v52 }
  0xb7   : > { %v3662_v18 = vpop.eup %3661  ;;  %v874_v21 = vmul.f32 %v3660_v15, %v4420_v39  ;;  %3681 = vtanh.f32 %v806_v30  ;;  %v694_v15 = vld [vmem:[%s5626_s1 + $0xf0] sm:$0xff] }
  0xb8   : > { %v3664_v24 = vpop.eup %3663  ;;  %v866_v25 = vmul.f32 %v3662_v18, %v4420_v39  ;;  %3683 = vtanh.f32 %v807_v37  ;;  %v695_v18 = vld [vmem:[%s5626_s1 + $0xf8] sm:$0xff] }
  0xb9   : > { %893 = vadd.xlane.f32.xlu0 %v859_v61  ;;  %v3666_v27 = vpop.eup %3665  ;;  %v865_v29 = vmul.f32 %v3664_v24, %v4420_v39  ;;  %3685 = vtanh.f32 %v805_v40  ;;  %v692_v61 = vld [vmem:[%s5626_s1 + $0xe0] sm:$0xff]  ;;  %v817_v8 = vadd.f32 %v777_v58, %v695_v18 }
  0xba   : > { %899 = vadd.xlane.f32.xlu1 %v862_v3  ;;  %v3668_v33 = vpop.eup %3667  ;;  %v864_v34 = vmul.f32 %v3666_v27, %v4420_v39  ;;  %3687 = vtanh.f32 %v808_v46  ;;  %v814_v1 = vadd.f32 %v777_v58, %v692_v61  ;;  %v693_v3 = vld [vmem:[%s5626_s1 + $0xe8] sm:$0xff] }
  0xbb   : > { %v3670_v36 = vpop.eup %3669  ;;  %v867_v38 = vmul.f32 %v3668_v33, %v4420_v39  ;;  %3689 = vtanh.f32 %v810_v47  ;;  %v815_v12 = vadd.f32 %v777_v58, %v693_v3 }
  0xbc   : > { %v3672_v42 = vpop.eup %3671  ;;  %v868_v43 = vmul.f32 %v3670_v36, %v4420_v39  ;;  %3691 = vtanh.f32 %v811_v54 }
  0xbd   : > { %895 = vadd.xlane.f32.xlu0 %v860_v9  ;;  %v3674_v45 = vpop.eup %3673  ;;  %v870_v19 = vmul.f32 %v3672_v42, %v4420_v39  ;;  %3693 = vtanh.f32 %v809_v56  ;;  %v4574_v56 = vand.u32 127, %v550_v2 }
  0xbe   : > { %901 = vadd.xlane.f32.xlu1 %v863_v16  ;;  %v3676_v50 = vpop.eup %3675  ;;  %v869_v51 = vmul.f32 %v3674_v45, %v4420_v39  ;;  %3695 = vtanh.f32 %v812_v63 }
  0xbf   : > { %v3678_v53 = vpop.eup %3677  ;;  %v871_v55 = vmul.f32 %v3676_v50, %v4420_v39  ;;  %3697 = vtanh.f32 %v814_v1  ;;  %v1003_v61 = vadd.s32 4294967272, %v4574_v56  ;;  %v4595_v1 = vsub.s32 %v4574_v56, %v4361_v5 }
  0xc0   : > { %v3680_v59 = vpop.eup %3679  ;;  %v872_v60 = vmul.f32 %v3678_v53, %v4420_v39  ;;  %3699 = vtanh.f32 %v815_v12 }
  0xc1   : > { %923 = vadd.xlane.f32.xlu0 %v874_v21  ;;  %v3682_v62 = vpop.eup %3681  ;;  %v875_v0 = vmul.f32 %v3680_v59, %v4420_v39  ;;  %v816_v21 = vadd.f32 %v777_v58, %v694_v15  ;;  %3701 = vtanh.f32 %v813_v14  ;;  %v989_v59 = vadd.s32 4294967288, %v4574_v56 }
  0xc2   : > { %907 = vadd.xlane.f32.xlu1 %v866_v25  ;;  %v3684_v4 = vpop.eup %3683  ;;  %v877_v6 = vmul.f32 %v3682_v62, %v4420_v39  ;;  %v4598_v3 = vsub.s32 %v1003_v61, %v4361_v5 }
  0xc3   : > { %v3686_v9 = vpop.eup %3685  ;;  %v878_v11 = vmul.f32 %v3684_v4, %v4420_v39  ;;  %3703 = vtanh.f32 %v816_v21 }
  0xc4   : > { %v3688_v16 = vpop.eup %3687  ;;  %v876_v17 = vmul.f32 %v3686_v9, %v4420_v39  ;;  %3705 = vtanh.f32 %v817_v8 }
  0xc5   : > { %905 = vadd.xlane.f32.xlu0 %v865_v29  ;;  %v3690_v20 = vpop.eup %3689  ;;  %v879_v22 = vmul.f32 %v3688_v16, %v4420_v39 }
  0xc6   : > { %903 = vadd.xlane.f32.xlu1 %v864_v34  ;;  %v3692_v23 = vpop.eup %3691  ;;  %v881_v24 = vmul.f32 %v3690_v20, %v4420_v39 }
  0xc7   : > { %v3694_v25 = vpop.eup %3693  ;;  %v882_v26 = vmul.f32 %v3692_v23, %v4420_v39 }
  0xc8   : > { %v3696_v27 = vpop.eup %3695  ;;  %v880_v28 = vmul.f32 %v3694_v25, %v4420_v39 }
  0xc9   : > { %909 = vadd.xlane.f32.xlu0 %v867_v38  ;;  %v3698_v29 = vpop.eup %3697  ;;  %v883_v30 = vmul.f32 %v3696_v27, %v4420_v39 }
  0xca   : > { %911 = vadd.xlane.f32.xlu1 %v868_v43  ;;  %v3700_v31 = vpop.eup %3699  ;;  %v885_v32 = vmul.f32 %v3698_v29, %v4420_v39 }
  0xcb   : > { %v3702_v33 = vpop.eup %3701  ;;  %v886_v34 = vmul.f32 %v3700_v31, %v4420_v39 }
  0xcc   : > { %v884_v36 = vmul.f32 %v3702_v33, %v4420_v39 }
  0xcd   : > { %915 = vadd.xlane.f32.xlu0 %v870_v19  ;;  %v3704_v35 = vpop.eup %3703 }
  0xce   : > { %913 = vadd.xlane.f32.xlu1 %v869_v51  ;;  %v3706_v37 = vpop.eup %3705  ;;  %v887_v38 = vmul.f32 %v3704_v35, %v4420_v39 }
  0xcf   : > { %v888_v40 = vmul.f32 %v3706_v37, %v4420_v39 }
  0xd1   : > { %917 = vadd.xlane.f32.xlu0 %v871_v55 }
  0xd2   : > { %919 = vadd.xlane.f32.xlu1 %v872_v60  ;;  %v996_v60 = vadd.s32 4294967280, %v4574_v56 }
  0xd4   : > { %v4591_v2 = vsub.s32 %v996_v60, %v4361_v5 }
  0xd5   : > { %925 = vadd.xlane.f32.xlu0 %v875_v0  ;;  %v4588_v0 = vsub.s32 %v989_v59, %v4361_v5 }
  0xd6   : > { %929 = vadd.xlane.f32.xlu1 %v877_v6 }
  0xd9   : > { %931 = vadd.xlane.f32.xlu0 %v878_v11 }
  0xda   : > { %927 = vadd.xlane.f32.xlu1 %v876_v17 }
  0xdd   : > { %933 = vadd.xlane.f32.xlu0 %v879_v22 }
  0xde   : > { %937 = vadd.xlane.f32.xlu1 %v881_v24 }
  0xe1   : > { %939 = vadd.xlane.f32.xlu0 %v882_v26 }
  0xe2   : > { %935 = vadd.xlane.f32.xlu1 %v880_v28 }
  0xe5   : > { %941 = vadd.xlane.f32.xlu0 %v883_v30 }
  0xe6   : > { %945 = vadd.xlane.f32.xlu1 %v885_v32 }
  0xe9   : > { %947 = vadd.xlane.f32.xlu0 %v886_v34 }
  0xea   : > { %943 = vadd.xlane.f32.xlu1 %v884_v36 }
  0xed   : > { %949 = vadd.xlane.f32.xlu0 %v887_v38 }
  0xee   : > { %951 = vadd.xlane.f32.xlu1 %v888_v40 }
 0x13e   : > { %v4537_v13 = vpop.xlane.xlu0 %889 }
 0x13f   : > { %v4539_v41 = vpop.xlane.xlu1 %921  ;;  %v988_v12 = vrot.slane %v4537_v13, %v4595_v1 }
 0x140   : > { %v1070_v24 = vrot.slane %v4539_v41, %v4595_v1 }
 0x142   : > { %v4541_v42 = vpop.xlane.xlu0 %891 }
 0x143   : > { %v4543_v43 = vpop.xlane.xlu1 %897  ;;  %v993_v7 = vrot.slane %v4541_v42, %v4588_v0 }
 0x144   : > { %v1013_v22 = vrot.slane %v4543_v43, %v4595_v1 }
 0x145   : > { %v995_v21 = vsel %vm994_vm0, %v993_v7, %v988_v12 }
 0x146   : > { %v4545_v44 = vpop.xlane.xlu0 %893 }
 0x147   : > { %v4547_v45 = vpop.xlane.xlu1 %899  ;;  %v1000_v9 = vrot.slane %v4545_v44, %v4591_v2 }
 0x148   : > { %v1017_v11 = vrot.slane %v4547_v45, %v4588_v0 }
 0x149   : > { %v1002_v25 = vsel %vm1001_vm1, %v1000_v9, %v995_v21 }
 0x14a   : > { %v4549_v46 = vpop.xlane.xlu0 %895  ;;  %v1018_v28 = vsel %vm994_vm0, %v1017_v11, %v1013_v22 }
 0x14b   : > { %v4551_v19 = vpop.xlane.xlu1 %901  ;;  %v1007_v14 = vrot.slane %v4549_v46, %v4598_v3 }
 0x14c   : > { %v1022_v26 = vrot.slane %v4551_v19, %v4591_v2 }
 0x14d   : > { %v1009_v29 = vsel %vm1008_vm2, %v1007_v14, %v1002_v25 }
 0x14e   : > { %v4553_v47 = vpop.xlane.xlu0 %923  ;;  %v1023_v61 = vsel %vm1001_vm1, %v1022_v26, %v1018_v28 }
 0x14f   : > { %v4555_v39 = vpop.xlane.xlu1 %907  ;;  %v1074_v30 = vrot.slane %v4553_v47, %v4588_v0 }
 0x150   : > { %v1036_v27 = vrot.slane %v4555_v39, %v4588_v0 }
 0x151   : > { %v1075_v21 = vsel %vm994_vm0, %v1074_v30, %v1070_v24 }
 0x152   : > { %v4557_v48 = vpop.xlane.xlu0 %905 }
 0x153   : > { %v4559_v49 = vpop.xlane.xlu1 %903  ;;  %v1032_v16 = vrot.slane %v4557_v48, %v4595_v1 }
 0x154   : > { %v1027_v31 = vrot.slane %v4559_v49, %v4598_v3 }
 0x155   : > { %v1037_v33 = vsel %vm994_vm0, %v1036_v27, %v1032_v16 }
 0x156   : > { %v4561_v50 = vpop.xlane.xlu0 %909  ;;  %v1028_v11 = vsel %vm1008_vm2, %v1027_v31, %v1023_v61 }
 0x157   : > { %v4563_v51 = vpop.xlane.xlu1 %911  ;;  %v1041_v8 = vrot.slane %v4561_v50, %v4591_v2  ;;  %v1144_v24 = vsel %vm1143_vm3, %v1028_v11, %v1009_v29 }
 0x158   : > { %v1046_v34 = vrot.slane %v4563_v51, %v4598_v3 }
 0x159   : > { %v1042_v38 = vsel %vm1001_vm1, %v1041_v8, %v1037_v33 }
 0x15a   : > { %v4565_v52 = vpop.xlane.xlu0 %915  ;;  %v1047_v22 = vsel %vm1008_vm2, %v1046_v34, %v1042_v38 }
 0x15b   : > { %v4567_v53 = vpop.xlane.xlu1 %913  ;;  %v1055_v17 = vrot.slane %v4565_v52, %v4588_v0 }
 0x15c   : > { %v1051_v18 = vrot.slane %v4567_v53, %v4595_v1 }
 0x15e   : > { %v4569_v54 = vpop.xlane.xlu0 %917  ;;  %v1056_v35 = vsel %vm994_vm0, %v1055_v17, %v1051_v18 }
 0x15f   : > { %v4571_v55 = vpop.xlane.xlu1 %919  ;;  %v1060_v23 = vrot.slane %v4569_v54, %v4591_v2 }
 0x160   : > { %v1065_v36 = vrot.slane %v4571_v55, %v4598_v3 }
 0x161   : > { %v1061_v40 = vsel %vm1001_vm1, %v1060_v23, %v1056_v35  ;;  %v1146_v35 = vsel %vm1145_vm4, %v1047_v22, %v1144_v24 }
 0x162   : > { %v4576_v57 = vpop.xlane.xlu0 %925  ;;  %v1066_v8 = vsel %vm1008_vm2, %v1065_v36, %v1061_v40 }
 0x163   : > { %v4578_v58 = vpop.xlane.xlu1 %929  ;;  %v1079_v59 = vrot.slane %v4576_v57, %v4591_v2 }
 0x164   : > { %v1089_v14 = vrot.slane %v4578_v58, %v4595_v1 }
 0x165   : > { %v1080_v26 = vsel %vm1001_vm1, %v1079_v59, %v1075_v21 }
 0x166   : > { %v4583_v62 = vpop.xlane.xlu0 %931 }
 0x167   : > { %v4585_v63 = vpop.xlane.xlu1 %927  ;;  %v1093_v60 = vrot.slane %v4583_v62, %v4588_v0 }
 0x168   : > { %v1084_v7 = vrot.slane %v4585_v63, %v4598_v3 }
 0x169   : > { %v1094_v27 = vsel %vm994_vm0, %v1093_v60, %v1089_v14  ;;  %v1148_v60 = vsel %vm1147_vm5, %v1066_v8, %v1146_v35 }
 0x16a   : > { %v4600_v4 = vpop.xlane.xlu0 %933  ;;  %v1085_v30 = vsel %vm1008_vm2, %v1084_v7, %v1080_v26  ;;  %v549_v26 = vld [vmem:[%s548_s29] sm:$0xff]  ;;  %s3940_s29 = scalar_lea.vmem %s3939_s28, 256 }
 0x16b   : > { %v4602_v6 = vpop.xlane.xlu1 %937  ;;  %v1098_v9 = vrot.slane %v4600_v4, %v4591_v2  ;;  %v1150_v11 = vsel %vm1149_vm6, %v1085_v30, %v1148_v60  ;;  %v563_v30 = vld [vmem:[#allocation3 + $0x8] sm:$0xff]  ;;  %v582_v60 = vld [vmem:[#allocation3 + $0xa0] sm:$0xff]  ;;  %p3942_p6 = scmp.lt.s32.totalorder %s3940_s29, %s3934_s30 }
 0x16c   : > { %v1108_v23 = vrot.slane %v4602_v6, %v4595_v1 }
 0x16d   : > { %v1099_v33 = vsel %vm1001_vm1, %v1098_v9, %v1094_v27  ;;  %v578_v27 = vld [vmem:[#allocation3 + $0x80] sm:$0xff]  ;;  %p3943_p5 = por %p3942_p6, %p3941_p2 }
 0x16e   : > { %v4614_v15 = vpop.xlane.xlu0 %939 }
 0x16f   : > { %v4622_v20 = vpop.xlane.xlu1 %935  ;;  %v1112_v12 = vrot.slane %v4614_v15, %v4588_v0  ;;  %p3944_p11 = pnand %p3943_p5, %p3937_p3 }
 0x170   : > { %v1103_v16 = vrot.slane %v4622_v20, %v4598_v3 }
 0x171   : > { %v1113_v34 = vsel %vm994_vm0, %v1112_v12, %v1108_v23  ;;  %v4083_v23 = vmov 0  }
 0x172   : > { %v4644_v32 = vpop.xlane.xlu0 %941  ;;  %v1104_v36 = vsel %vm1008_vm2, %v1103_v16, %v1099_v33  ;;  %3640 = vset.pattern.permute.xlu1 %v4083_v23  ;;  %3641 = vset.pattern.permute.xlu0 %v4083_v23  ;;  %v580_v33 = vld [vmem:[#allocation3 + $0x90] sm:$0xff]  ;;  %v586_v23 = vld [vmem:[#allocation3 + $0xc0] sm:$0xff] }
 0x173   : > { %v4652_v37 = vpop.xlane.xlu1 %945  ;;  %v1117_v17 = vrot.slane %v4644_v32, %v4591_v2  ;;  %v1152_v16 = vsel %vm1151_vm7, %v1104_v36, %v1150_v11  ;;  %554 = vperm.xlu1 %3640, %v549_v26   ;;  %v567_v11 = vld [vmem:[#allocation3 + $0x28] sm:$0xff] }
 0x174   : > { %v1127_v40 = vrot.slane %v4652_v37, %v4595_v1  ;;  %v587_v26 = vld [vmem:[#allocation3 + $0xc8] sm:$0xff] }
 0x175   : > { %v1118_v38 = vsel %vm1001_vm1, %v1117_v17, %v1113_v34  ;;  %v581_v34 = vld [vmem:[#allocation3 + $0x98] sm:$0xff] }
 0x176   : > { %v4674_v18 = vpop.xlane.xlu0 %947  ;;  %v3310_v36 = vpack.c.bf16 %v581_v34, %v580_v33  ;;  %v589_v33 = vld [vmem:[#allocation3 + $0xd8] sm:$0xff] }
 0x177   : > { %v4681_v25 = vpop.xlane.xlu1 %943  ;;  %v1131_v28 = vrot.slane %v4674_v18, %v4588_v0 }
 0x178   : > { %v1122_v31 = vrot.slane %v4681_v25, %v4598_v3 }
 0x179   : > { %v1132_v9 = vsel %vm994_vm0, %v1131_v28, %v1127_v40  ;;  %v579_v28 = vld [vmem:[#allocation3 + $0x88] sm:$0xff]  ;;  %v565_v40 = vld [vmem:[#allocation3 + $0x18] sm:$0xff] }
 0x17a   : > { %v4698_v59 = vpop.xlane.xlu0 %949  ;;  %v1123_v7 = vsel %vm1008_vm2, %v1122_v31, %v1118_v38  ;;  %v562_v31 = vld [vmem:[#allocation3] sm:$0xff]  ;;  %v3306_v24 = vpack.c.bf16 %v579_v28, %v578_v27  ;;  %v564_v38 = vld [vmem:[#allocation3 + $0x10] sm:$0xff]  ;;  %v3322_v28 = vpack.c.bf16 %v587_v26, %v586_v23  ;;  %v4721_v23 = vsub.s32 1, %v4361_v5 }
 0x17b   : > { %v1136_v29 = vrot.slane %v4698_v59, %v4591_v2  ;;  %v4703_v61 = vpop.xlane.xlu1 %951  ;;  %v1154_v21 = vsel %vm1153_vm8, %v1123_v7, %v1152_v16  ;;  %v3308_v35 = vpack.c.bf16 %v563_v30, %v562_v31  ;;  %v3312_v7 = vpack.c.bf16 %v565_v40, %v564_v38  ;;  %v585_v16 = vld [vmem:[#allocation3 + $0xb8] sm:$0xff]  ;;  %v570_v31 = vld [vmem:[#allocation3 + $0x40] sm:$0xff]  ;;  %v588_v30 = vld [vmem:[#allocation3 + $0xd0] sm:$0xff] }
 0x17c   : > { %v1141_v12 = vrot.slane %v4703_v61, %v4598_v3  ;;  %3307 = vmatprep.subr.bf16.mxu0 %v3306_v24  ;;  %v571_v24 = vld [vmem:[#allocation3 + $0x48] sm:$0xff]  ;;  %v573_v38 = vld [vmem:[#allocation3 + $0x58] sm:$0xff]  ;;  %v590_v40 = vld [vmem:[#allocation3 + $0xe0] sm:$0xff]  ;;  %v5664_v26 = vsub.s32 3, %v4361_v5 }
 0x17d   : > { %v1137_v14 = vsel %vm1001_vm1, %v1136_v29, %v1132_v9  ;;  %v583_v29 = vld [vmem:[#allocation3 + $0xa8] sm:$0xff]  ;;  %3309 = vmatpush3.bf16.msra.mxu0 %v3308_v35  ;;  %v3324_v34 = vpack.c.bf16 %v571_v24, %v570_v31  ;;  %v3326_v35 = vpack.c.bf16 %v589_v33, %v588_v30 }
 0x17e   : > { %v1142_v17 = vsel %vm1008_vm2, %v1141_v12, %v1137_v14  ;;  %3311 = vmatprep.subr.bf16.mxu0 %v3310_v36  ;;  %v3314_v9 = vpack.c.bf16 %v583_v29, %v582_v60  ;;  %v566_v12 = vld [vmem:[#allocation3 + $0x20] sm:$0xff]  ;;  %v584_v14 = vld [vmem:[#allocation3 + $0xb0] sm:$0xff]  ;;  %v591_v60 = vld [vmem:[#allocation3 + $0xe8] sm:$0xff] }
 0x17f   : > { %v1156_v22 = vsel %vm1155_vm9, %v1142_v17, %v1154_v21  ;;  %v3316_v17 = vpack.c.bf16 %v567_v11, %v566_v12  ;;  %v3318_v21 = vpack.c.bf16 %v585_v16, %v584_v14  ;;  %v572_v36 = vld [vmem:[#allocation3 + $0x50] sm:$0xff]  ;;  %v575_v12 = vld [vmem:[#allocation3 + $0x68] sm:$0xff]  ;;  %v593_v14 = vld [vmem:[#allocation3 + $0xf8] sm:$0xff] }
 0x180   : > { %v1159_v8 = vsel %vm1158_vm10, %v1156_v22, -inf  ;;  %v568_v22 = vld [vmem:[#allocation3 + $0x30] sm:$0xff]  ;;  %v3328_v29 = vpack.c.bf16 %v573_v38, %v572_v36 }
 0x181   : > { %1160 = vmax.xlane.f32.xlu0 %v1159_v8  ;;  %3313 = vmatpush3.bf16.msra.mxu0 %v3312_v7  ;;  %v569_v8 = vld [vmem:[#allocation3 + $0x38] sm:$0xff]  ;;  %v3330_v7 = vpack.c.bf16 %v591_v60, %v590_v40  ;;  %v592_v11 = vld [vmem:[#allocation3 + $0xf0] sm:$0xff]  ;;  %v5658_v60 = vsub.s32 4, %v4361_v5 }
 0x182   : > { %3315 = vmatprep.subr.bf16.mxu0 %v3314_v9  ;;  %v3320_v27 = vpack.c.bf16 %v569_v8, %v568_v22  ;;  %v574_v9 = vld [vmem:[#allocation3 + $0x60] sm:$0xff]  ;;  %v577_v22 = vld [vmem:[#allocation3 + $0x78] sm:$0xff] }
 0x183   : > { %v3332_v16 = vpack.c.bf16 %v575_v12, %v574_v9 }
 0x185   : > { %3317 = vmatpush3.bf16.msra.mxu0 %v3316_v17  ;;  %v3334_v17 = vpack.c.bf16 %v593_v14, %v592_v11 }
 0x186   : > { %3319 = vmatprep.subr.bf16.mxu0 %v3318_v21  ;;  %v576_v21 = vld [vmem:[#allocation3 + $0x70] sm:$0xff] }
 0x187   : > { %v3336_v8 = vpack.c.bf16 %v577_v22, %v576_v21 }
 0x189   : > { %3321 = vmatpush3.bf16.msra.mxu0 %v3320_v27 }
 0x18a   : > { %3323 = vmatprep.subr.bf16.mxu0 %v3322_v28 }
 0x18d   : > { %3325 = vmatpush3.bf16.msra.mxu0 %v3324_v34  ;;  %v4738_v34 = vsub.s32 2, %v4361_v5 }
 0x18e   : > { %3327 = vmatprep.subr.bf16.mxu0 %v3326_v35 }
 0x191   : > { %3329 = vmatpush3.bf16.msra.mxu0 %v3328_v29 }
 0x192   : > { %3331 = vmatprep.subr.bf16.mxu0 %v3330_v7 }
 0x195   : > { %3333 = vmatpush3.bf16.msra.mxu0 %v3332_v16 }
 0x196   : > { %3335 = vmatprep.subr.bf16.mxu0 %v3334_v17 }
 0x199   : > { %3337 = vmatpush3.bf16.msra.mxu0 %v3336_v8 }
 0x1f2   : > { %v555_v8 = vpop.permute.xlu1 %554 }
 0x1f3   : > { %vm556_vm11 = vcmp.eq.s32.totalorder %v4574_v56, %v555_v8 }
 0x20e   : > { %v4724_v27 = vpop.xlane.xlu0 %1160 }
 0x20f   : > { %v4728_v28 = vrot.slane %v4724_v27, %v4368_v10  ;;  %v1170_v31 = vrot.slane %v4724_v27, %v4721_v23  ;;  %v4743_v35 = vrot.slane %v4724_v27, %v5664_v26  ;;  %v4759_v12 = vrot.slane %v4724_v27, %v5658_v60 }
 0x211   : > { %v1204_v24 = vsub.f32 %v4541_v42, %v4728_v28  ;;  %v1203_v30 = vsub.f32 %v4537_v13, %v4728_v28  ;;  %v1207_v33 = vsub.f32 %v4543_v43, %v1170_v31  ;;  %v1210_v36 = vsub.f32 %v4559_v49, %v1170_v31 }
 0x212   : > { %v1208_v13 = vsub.f32 %v4547_v45, %v1170_v31  ;;  %v4750_v43 = vrot.slane %v4724_v27, %v4738_v34  ;;  %v1215_v7 = vsub.f32 %v4567_v53, %v4743_v35  ;;  %v1205_v49 = vsub.f32 %v4545_v44, %v4728_v28 }
 0x213   : > { %v1237_v38 = vmul.f32 1.442695, %v1204_v24  ;;  %v1235_v40 = vmul.f32 1.442695, %v1203_v30  ;;  %v1243_v42 = vmul.f32 1.442695, %v1207_v33  ;;  %v1209_v16 = vsub.f32 %v4551_v19, %v1170_v31 }
 0x214   : > { %v1249_v29 = vmul.f32 1.442695, %v1210_v36  ;;  %v1245_v9 = vmul.f32 1.442695, %v1208_v13  ;;  %v1259_v45 = vmul.f32 1.442695, %v1215_v7  ;;  %v1214_v11 = vsub.f32 %v4563_v51, %v4750_v43 }
 0x215   : > { %3707 = vpow2.f32 %v1237_v38  ;;  %v1239_v14 = vmul.f32 1.442695, %v1205_v49  ;;  %v5663_v53 = vsub.s32 5, %v4361_v5  ;;  %v1219_v44 = vsub.f32 %v4539_v41, %v4759_v12 }
 0x216   : > { %3709 = vpow2.f32 %v1235_v40  ;;  %v1257_v17 = vmul.f32 1.442695, %v1214_v11  ;;  %v552_v51 = vadd.s32 128, %v4574_v56  ;;  %v1247_v19 = vmul.f32 1.442695, %v1209_v16 }
 0x217   : > { %3711 = vpow2.f32 %v1243_v42  ;;  %v1211_v31 = vsub.f32 %v4557_v48, %v4750_v43  ;;  %v4779_v41 = vrot.slane %v4724_v27, %v5663_v53  ;;  %v1267_v24 = vmul.f32 1.442695, %v1219_v44 }
 0x218   : > { %3713 = vpow2.f32 %v1249_v29  ;;  %v1218_v30 = vsub.f32 %v4571_v55, %v4743_v35  ;;  %vm557_vm12 = vcmp.eq.s32.totalorder %v552_v51, %v555_v8  ;;  %v1212_v38 = vsub.f32 %v4555_v39, %v4750_v43 }
 0x219   : > { %3715 = vpow2.f32 %v1245_v9  ;;  %v1251_v48 = vmul.f32 1.442695, %v1211_v31  ;;  %v4084_v40 = vmov 1.0   ;;  %v5662_v55 = vsub.s32 6, %v4361_v5 }
 0x21a   : > { %3717 = vpow2.f32 %v1259_v45  ;;  %3047 = vmatprep.mubr.msk.f32.mxu0 %vm557_vm12, %v4084_v40  ;;  %v1265_v42 = vmul.f32 1.442695, %v1218_v30  ;;  %v1223_v56 = vsub.f32 %v4578_v58, %v4779_v41  ;;  %v1253_v39 = vmul.f32 1.442695, %v1212_v38 }
 0x21b   : > { %3719 = vpow2.f32 %v1239_v14  ;;  %3048 = vmatmul.mubr.msk.f32.vlgmr.msra.gmra.mrb[0].mxu0 %vm556_vm11, %v4084_v40  ;;  %v1206_v7 = vsub.f32 %v4549_v46, %v4728_v28  ;;  %v4806_v9 = vrot.slane %v4724_v27, %v5662_v55  ;;  %v1222_v49 = vsub.f32 %v4585_v63, %v4759_v12 }
 0x21c   : > { %3721 = vpow2.f32 %v1257_v17  ;;  %v1275_v58 = vmul.f32 1.442695, %v1223_v56  ;;  %v1213_v28 = vsub.f32 %v4561_v50, %v4750_v43  ;;  %v5661_v14 = vsub.s32 7, %v4361_v5 }
 0x21d   : > { %3723 = vpow2.f32 %v1247_v19  ;;  %v1241_v46 = vmul.f32 1.442695, %v1206_v7  ;;  %v1273_v16 = vmul.f32 1.442695, %v1222_v49  ;;  %v1227_v63 = vsub.f32 %v4602_v6, %v4806_v9 }
 0x21e   : > { %3725 = vpow2.f32 %v1267_v24  ;;  %v1255_v8 = vmul.f32 1.442695, %v1213_v28  ;;  %v1216_v50 = vsub.f32 %v4565_v52, %v4743_v35  ;;  %v4832_v43 = vrot.slane %v4724_v27, %v5661_v14 }
 0x21f   : > { %v4767_v21 = vpop.eup %3707  ;;  %3727 = vpow2.f32 %v1251_v48  ;;  %v1283_v6 = vmul.f32 1.442695, %v1227_v63  ;;  %v1226_v51 = vsub.f32 %v4622_v20, %v4779_v41  ;;  %v1217_v24 = vsub.f32 %v4569_v54, %v4743_v35 }
 0x220   : > { %v4769_v22 = vpop.eup %3709  ;;  %1335 = vperm.xlu1 %3640, %v4767_v21   ;;  %3729 = vpow2.f32 %v1265_v42  ;;  %v1261_v52 = vmul.f32 1.442695, %v1216_v50  ;;  %v1231_v30 = vsub.f32 %v4652_v37, %v4832_v43  ;;  %v1220_v40 = vsub.f32 %v4553_v47, %v4759_v12 }
 0x221   : > { %1332 = vperm.xlu0 %3641, %v4769_v22   ;;  %v4783_v33 = vpop.eup %3711  ;;  %3731 = vpow2.f32 %v1253_v39  ;;  %v1281_v27 = vmul.f32 1.442695, %v1226_v51  ;;  %v1263_v38 = vmul.f32 1.442695, %v1217_v24  ;;  %v1230_v35 = vsub.f32 %v4681_v25, %v4806_v9 }
 0x222   : > { %v4786_v36 = vpop.eup %3713  ;;  %3733 = vpow2.f32 %v1275_v58  ;;  %v1291_v54 = vmul.f32 1.442695, %v1231_v30  ;;  %v1269_v56 = vmul.f32 1.442695, %v1220_v40  ;;  %v1221_v39 = vsub.f32 %v4576_v57, %v4759_v12 }
 0x223   : > { %v4795_v13 = vpop.eup %3715  ;;  %3735 = vpow2.f32 %v1241_v46  ;;  %v1289_v47 = vmul.f32 1.442695, %v1230_v35  ;;  %v1234_v7 = vsub.f32 %v4703_v61, %v4832_v43  ;;  %v1224_v46 = vsub.f32 %v4583_v62, %v4779_v41 }
 0x224   : > { %1344 = vperm.xlu1 %3640, %v4783_v33   ;;  %v4797_v29 = vpop.eup %3717  ;;  %3737 = vpow2.f32 %v1273_v16  ;;  %v1271_v49 = vmul.f32 1.442695, %v1221_v39  ;;  %v1225_v16 = vsub.f32 %v4600_v4, %v4779_v41  ;;  %v1228_v50 = vsub.f32 %v4614_v15, %v4806_v9  ;;  %v2091_v39 = vld [vmem:[#allocation6 + $0x10] sm:$0xff] }
 0x225   : > { %1353 = vperm.xlu0 %3641, %v4786_v36   ;;  %v4810_v45 = vpop.eup %3719  ;;  %3739 = vpow2.f32 %v1255_v8  ;;  %v1297_v57 = vmul.f32 1.442695, %v1234_v7  ;;  %v1277_v61 = vmul.f32 1.442695, %v1224_v46  ;;  %v1229_v41 = vsub.f32 %v4644_v32, %v4806_v9 }
 0x226   : > { %v4812_v11 = vpop.eup %3721  ;;  %3741 = vpow2.f32 %v1283_v6  ;;  %v1279_v62 = vmul.f32 1.442695, %v1225_v16  ;;  %v1285_v4 = vmul.f32 1.442695, %v1228_v50  ;;  %v1233_v32 = vsub.f32 %v4698_v59, %v4832_v43  ;;  %v2096_v50 = vld [vmem:[#allocation6 + $0x38] sm:$0xff] }
 0x227   : > { %v4821_v17 = vpop.eup %3723  ;;  %3743 = vpow2.f32 %v1261_v52  ;;  %v1287_v15 = vmul.f32 1.442695, %v1229_v41  ;;  %v2097_v41 = vld [vmem:[#allocation6 + $0x40] sm:$0xff] }
 0x228   : > { %1347 = vperm.xlu1 %3640, %v4795_v13   ;;  %v4823_v44 = vpop.eup %3725  ;;  %3745 = vpow2.f32 %v1281_v27  ;;  %v1232_v27 = vsub.f32 %v4674_v18, %v4832_v43  ;;  %v1295_v40 = vmul.f32 1.442695, %v1233_v32  ;;  %v2089_v43 = vld [vmem:[#allocation6] sm:$0xff]  ;;  %v2099_v32 = vld [vmem:[#allocation6 + $0x50] sm:$0xff] }
 0x229   : > { %1368 = vperm.xlu0 %3641, %v4797_v29   ;;  %5704 = vst [vmem:[#allocation28_spill] sm:$0xff] %v4823_v44  ;;  %v4836_v19 = vpop.eup %3727  ;;  %3747 = vpow2.f32 %v1263_v38 }
 0x22a   : > { %v4838_v31 = vpop.eup %3729  ;;  %3749 = vpow2.f32 %v1291_v54  ;;  %v1293_v38 = vmul.f32 1.442695, %v1232_v27  ;;  %v5665_v27 = vmov 0.0  }
 0x22b   : > { %v4846_v48 = vpop.eup %3731  ;;  %3751 = vpow2.f32 %v1269_v56  ;;  %v2090_v56 = vld [vmem:[#allocation6 + $0x8] sm:$0xff]  ;;  %3233 = vmatprep.mubr.msk.f32.mxu0 %vm4086_vm13, %v5665_v27  ;;  %3198 = vmatprep.mubr.msk.f32.mxu1 %vm4086_vm13, %v5665_v27 }
 0x22c   : > { %1338 = vperm.xlu1 %3640, %v4810_v45   ;;  %v4848_v20 = vpop.eup %3733  ;;  %3753 = vpow2.f32 %v1289_v47  ;;  %v5659_v47 = vmov 0.0|0.0   ;;  %v3363_v7 = vpack.c.bf16 %v2090_v56, %v2089_v43  ;;  %v2101_v56 = vld [vmem:[#allocation6 + $0x60] sm:$0xff] }
 0x22d   : > { %1365 = vperm.xlu0 %3641, %v4812_v11   ;;  %v4856_v42 = vpop.eup %3735  ;;  %3755 = vpow2.f32 %v1271_v49  ;;  %3362 = vmatprep.subr.bf16.mxu0 %v5659_v47  ;;  %v2092_v49 = vld [vmem:[#allocation6 + $0x18] sm:$0xff] }
 0x22e   : > { %5705 = vst [vmem:[#allocation29_spill] sm:$0xff] %v4856_v42  ;;  %v4858_v37 = vpop.eup %3737  ;;  %3757 = vpow2.f32 %v1297_v57  ;;  %3338 = vmatprep.subr.bf16.mxu1 %v5659_v47  ;;  %3364 = vmatpush3.bf16.msra.mxu0 %v3363_v7  ;;  %v3366_v46 = vpack.c.bf16 %v2092_v49, %v2091_v39  ;;  %v2093_v57 = vld [vmem:[#allocation6 + $0x20] sm:$0xff]  ;;  %v2102_v39 = vld [vmem:[#allocation6 + $0x68] sm:$0xff]  ;;  %v2103_v49 = vld [vmem:[#allocation6 + $0x70] sm:$0xff] }
 0x22f   : > { %v4866_v58 = vpop.eup %3739  ;;  %3759 = vpow2.f32 %v1277_v61  ;;  %3365 = vmatprep.subr.bf16.mxu0 %v5659_v47  ;;  %v2094_v61 = vld [vmem:[#allocation6 + $0x28] sm:$0xff]  ;;  %v3381_v7 = vpack.c.bf16 %v2102_v39, %v2101_v56 }
 0x230   : > { %1350 = vperm.xlu1 %3640, %v4821_v17   ;;  %5706 = vst [vmem:[#allocation30_spill] sm:$0xff] %v4866_v58  ;;  %v4868_v25 = vpop.eup %3741  ;;  %3761 = vpow2.f32 %v1279_v62  ;;  %v3369_v16 = vpack.c.bf16 %v2094_v61, %v2093_v57  ;;  %v2095_v62 = vld [vmem:[#allocation6 + $0x30] sm:$0xff] }
 0x231   : > { %1380 = vperm.xlu0 %3641, %v4823_v44   ;;  %v4874_v12 = vpop.eup %3743  ;;  %3763 = vpow2.f32 %v1285_v4  ;;  %v3372_v4 = vpack.c.bf16 %v2096_v50, %v2095_v62 }
 0x232   : > { %v4876_v28 = vpop.eup %3745  ;;  %3765 = vpow2.f32 %v1287_v15  ;;  %3367 = vmatpush3.bf16.msra.mxu0 %v3366_v46  ;;  %v2098_v15 = vld [vmem:[#allocation6 + $0x48] sm:$0xff]  ;;  %v2104_v46 = vld [vmem:[#allocation6 + $0x78] sm:$0xff] }
 0x233   : > { %v4882_v63 = vpop.eup %3747  ;;  %3767 = vpow2.f32 %v1293_v38  ;;  %3368 = vmatprep.subr.bf16.mxu0 %v5659_v47  ;;  %v3375_v38 = vpack.c.bf16 %v2098_v15, %v2097_v41  ;;  %v3384_v57 = vpack.c.bf16 %v2104_v46, %v2103_v49 }
 0x234   : > { %1356 = vperm.xlu1 %3640, %v4836_v19   ;;  %5707 = vst [vmem:[#allocation31_spill] sm:$0xff] %v4882_v63  ;;  %v4884_v8 = vpop.eup %3749  ;;  %3769 = vpow2.f32 %v1295_v40  ;;  %v2100_v40 = vld [vmem:[#allocation6 + $0x58] sm:$0xff] }
 0x235   : > { %1377 = vperm.xlu0 %3641, %v4838_v31   ;;  %v4890_v6 = vpop.eup %3751  ;;  %v3378_v43 = vpack.c.bf16 %v2100_v40, %v2099_v32 }
 0x236   : > { %5708 = vst [vmem:[#allocation32_spill] sm:$0xff] %v4890_v6  ;;  %v4892_v51 = vpop.eup %3753  ;;  %3370 = vmatpush3.bf16.msra.mxu0 %v3369_v16 }
 0x237   : > { %v4898_v52 = vpop.eup %3755  ;;  %3371 = vmatprep.subr.bf16.mxu0 %v5659_v47 }
 0x238   : > { %1359 = vperm.xlu1 %3640, %v4846_v48   ;;  %5709 = vst [vmem:[#allocation33_spill] sm:$0xff] %v4898_v52  ;;  %v4900_v24 = vpop.eup %3757 }
 0x239   : > { %1392 = vperm.xlu0 %3641, %v4848_v20   ;;  %5710 = vst [vmem:[#allocation34_spill] sm:$0xff] %v4900_v24  ;;  %v4906_v30 = vpop.eup %3759 }
 0x23a   : > { %5711 = vst [vmem:[#allocation35_spill] sm:$0xff] %v4906_v30  ;;  %v4911_v9 = vpop.eup %3761  ;;  %3373 = vmatpush3.bf16.msra.mxu0 %v3372_v4 }
 0x23b   : > { %5712 = vst [vmem:[#allocation36_spill] sm:$0xff] %v4911_v9  ;;  %v4914_v54 = vpop.eup %3763  ;;  %3374 = vmatprep.subr.bf16.mxu0 %v5659_v47 }
 0x23c   : > { %1341 = vperm.xlu1 %3640, %v4856_v42   ;;  %5713 = vst [vmem:[#allocation37_spill] sm:$0xff] %v4914_v54  ;;  %v4917_v18 = vpop.eup %3765 }
 0x23d   : > { %1389 = vperm.xlu0 %3641, %v4858_v37   ;;  %5714 = vst [vmem:[#allocation38_spill] sm:$0xff] %v4917_v18  ;;  %v4920_v35 = vpop.eup %3767 }
 0x23e   : > { %5715 = vst [vmem:[#allocation39_spill] sm:$0xff] %v4920_v35  ;;  %v4923_v59 = vpop.eup %3769  ;;  %3376 = vmatpush3.bf16.msra.mxu0 %v3375_v38 }
 0x23f   : > { %5716 = vst [vmem:[#allocation40_spill] sm:$0xff] %v4923_v59  ;;  %3377 = vmatprep.subr.bf16.mxu0 %v5659_v47 }
 0x240   : > { %1362 = vperm.xlu1 %3640, %v4866_v58  }
 0x241   : > { %1404 = vperm.xlu0 %3641, %v4868_v25  }
 0x242   : > { %3379 = vmatpush3.bf16.msra.mxu0 %v3378_v43 }
 0x243   : > { %3380 = vmatprep.subr.bf16.mxu0 %v5659_v47 }
 0x244   : > { %1371 = vperm.xlu1 %3640, %v4874_v12  }
 0x245   : > { %1401 = vperm.xlu0 %3641, %v4876_v28  }
 0x246   : > { %3382 = vmatpush3.bf16.msra.mxu0 %v3381_v7 }
 0x247   : > { %3383 = vmatprep.subr.bf16.mxu0 %v5659_v47 }
 0x248   : > { %1374 = vperm.xlu1 %3640, %v4882_v63  }
 0x249   : > { %1416 = vperm.xlu0 %3641, %v4884_v8  }
 0x24a   : > { %3385 = vmatpush3.bf16.msra.mxu0 %v3384_v57 }
 0x24b   : > { %3418 = vmatprep.subr.bf16.mxu0 %v5659_v47 }
 0x24c   : > { %1383 = vperm.xlu1 %3640, %v4890_v6  }
 0x24d   : > { %1413 = vperm.xlu0 %3641, %v4892_v51  }
 0x250   : > { %1386 = vperm.xlu1 %3640, %v4898_v52  }
 0x251   : > { %1425 = vperm.xlu0 %3641, %v4900_v24  }
 0x254   : > { %1395 = vperm.xlu1 %3640, %v4906_v30  }
 0x258   : > { %1398 = vperm.xlu1 %3640, %v4911_v9  }
 0x25c   : > { %1407 = vperm.xlu1 %3640, %v4914_v54  }
 0x260   : > { %1410 = vperm.xlu1 %3640, %v4917_v18  }
 0x264   : > { %1419 = vperm.xlu1 %3640, %v4920_v35  }
 0x268   : > { %1422 = vperm.xlu1 %3640, %v4923_v59  }
 0x29f   : > { %v1336_v61 = vpop.permute.xlu1 %1335 }
 0x2a0   : > { %v1333_v16 = vpop.permute.xlu0 %1332  ;;  %v1434_v18 = vrot.slane %v1336_v61, %v4588_v0 }
 0x2a1   : > { %v1430_v59 = vrot.slane %v1333_v16, %v4595_v1 }
 0x2a3   : > { %v1345_v62 = vpop.permute.xlu1 %1344  ;;  %v1435_v42 = vsel %vm994_vm0, %v1434_v18, %v1430_v59 }
 0x2a4   : > { %v1354_v50 = vpop.permute.xlu0 %1353  ;;  %v1449_v52 = vrot.slane %v1345_v62, %v4595_v1 }
 0x2a5   : > { %v1463_v6 = vrot.slane %v1354_v50, %v4598_v3 }
 0x2a7   : > { %v1348_v4 = vpop.permute.xlu1 %1347 }
 0x2a8   : > { %v1369_v41 = vpop.permute.xlu0 %1368  ;;  %v1453_v35 = vrot.slane %v1348_v4, %v4588_v0 }
 0x2a9   : > { %v1487_v44 = vrot.slane %v1369_v41, %v4595_v1 }
 0x2aa   : > { %v1454_v61 = vsel %vm994_vm0, %v1453_v35, %v1449_v52 }
 0x2ab   : > { %v1339_v15 = vpop.permute.xlu1 %1338 }
 0x2ac   : > { %v4940_v32 = vpop.permute.xlu0 %1365  ;;  %v1439_v9 = vrot.slane %v1339_v15, %v4591_v2 }
 0x2ad   : > { %v1482_v4 = vrot.slane %v4940_v32, %v4598_v3 }
 0x2af   : > { %v1351_v38 = vpop.permute.xlu1 %1350 }
 0x2b0   : > { %v1381_v43 = vpop.permute.xlu0 %1380  ;;  %v1458_v30 = vrot.slane %v1351_v38, %v4591_v2  ;;  %v1440_v38 = vsel %vm1001_vm1, %v1439_v9, %v1435_v42 }
 0x2b2   : > { %v1459_v50 = vsel %vm1001_vm1, %v1458_v30, %v1454_v61 }
 0x2b3   : > { %v1357_v40 = vpop.permute.xlu1 %1356 }
 0x2b4   : > { %v1378_v7 = vpop.permute.xlu0 %1377  ;;  %v1468_v58 = vrot.slane %v1357_v40, %v4595_v1 }
 0x2b7   : > { %v1360_v56 = vpop.permute.xlu1 %1359 }
 0x2b8   : > { %v1393_v46 = vpop.permute.xlu0 %1392  ;;  %v1472_v16 = vrot.slane %v1360_v56, %v4588_v0  ;;  %v1506_v56 = vrot.slane %v1381_v43, %v4595_v1 }
 0x2bb   : > { %v1342_v39 = vpop.permute.xlu1 %1341 }
 0x2bc   : > { %v4942_v47 = vpop.permute.xlu0 %1389  ;;  %v1444_v41 = vrot.slane %v1342_v39, %v4598_v3 }
 0x2bf   : > { %v1363_v49 = vpop.permute.xlu1 %1362 }
 0x2c0   : > { %v1405_v55 = vpop.permute.xlu0 %1404  ;;  %v1477_v15 = vrot.slane %v1363_v49, %v4591_v2  ;;  %v1473_v49 = vsel %vm994_vm0, %v1472_v16, %v1468_v58 }
 0x2c1   : > { %v1544_v39 = vrot.slane %v1405_v55, %v4595_v1 }
 0x2c2   : > { %v1478_v30 = vsel %vm1001_vm1, %v1477_v15, %v1473_v49 }
 0x2c3   : > { %v1372_v57 = vpop.permute.xlu1 %1371 }
 0x2c4   : > { %v1402_v27 = vpop.permute.xlu0 %1401  ;;  %v1491_v62 = vrot.slane %v1372_v57, %v4588_v0 }
 0x2c5   : > { %v1539_v15 = vrot.slane %v1402_v27, %v4598_v3 }
 0x2c6   : > { %v1492_v40 = vsel %vm994_vm0, %v1491_v62, %v1487_v44  ;;  %v1520_v44 = vrot.slane %v4942_v47, %v4598_v3 }
 0x2c7   : > { %v1375_v60 = vpop.permute.xlu1 %1374 }
 0x2c8   : > { %v1417_v54 = vpop.permute.xlu0 %1416  ;;  %v1496_v18 = vrot.slane %v1375_v60, %v4591_v2 }
 0x2ca   : > { %v1497_v43 = vsel %vm1001_vm1, %v1496_v18, %v1492_v40 }
 0x2cb   : > { %v1384_v14 = vpop.permute.xlu1 %1383 }
 0x2cc   : > { %v1510_v59 = vrot.slane %v1384_v14, %v4588_v0  ;;  %v1414_v42 = vpop.permute.xlu0 %1413  ;;  %v1525_v14 = vrot.slane %v1393_v46, %v4595_v1 }
 0x2ce   : > { %v1511_v58 = vsel %vm994_vm0, %v1510_v59, %v1506_v56  ;;  %v1558_v59 = vrot.slane %v1414_v42, %v4598_v3 }
 0x2cf   : > { %v1387_v53 = vpop.permute.xlu1 %1386 }
 0x2d0   : > { %v1515_v52 = vrot.slane %v1387_v53, %v4591_v2 }
 0x2d2   : > { %v1516_v46 = vsel %vm1001_vm1, %v1515_v52, %v1511_v58  ;;  %v5717_v58 = vmov 0.0  }
 0x2d3   : > { %v1396_v26 = vpop.permute.xlu1 %1395  ;;  %v1521_v47 = vsel %vm1008_vm2, %v1520_v44, %v1516_v46  ;;  %v5718_v46 = vsub.s32 3, %v4361_v5 }
 0x2d4   : > { %v1529_v35 = vrot.slane %v1396_v26, %v4588_v0  ;;  %v1464_v26 = vsel %vm1008_vm2, %v1463_v6, %v1459_v50  ;;  %v1483_v6 = vsel %vm1008_vm2, %v1482_v4, %v1478_v30  ;;  %v1426_v50 = vpop.permute.xlu0 %1425 }
 0x2d5   : > { %v1577_v49 = vrot.slane %v1426_v50, %v4598_v3 }
 0x2d6   : > { %v1530_v57 = vsel %vm994_vm0, %v1529_v35, %v1525_v14 }
 0x2d7   : > { %v1399_v24 = vpop.permute.xlu1 %1398 }
 0x2d8   : > { %v1534_v9 = vrot.slane %v1399_v24, %v4591_v2  ;;  %v1501_v24 = vrot.slane %v1378_v7, %v4598_v3 }
 0x2da   : > { %v1535_v55 = vsel %vm1001_vm1, %v1534_v9, %v1530_v57  ;;  %v1502_v7 = vsel %vm1008_vm2, %v1501_v24, %v1497_v43 }
 0x2db   : > { %v1408_v63 = vpop.permute.xlu1 %1407  ;;  %v1540_v52 = vsel %vm1008_vm2, %v1539_v15, %v1535_v55 }
 0x2dc   : > { %v1548_v60 = vrot.slane %v1408_v63, %v4588_v0  ;;  %v1445_v63 = vsel %vm1008_vm2, %v1444_v41, %v1440_v38  ;;  %v1563_v41 = vrot.slane %v1417_v54, %v4595_v1 }
 0x2dd   : > { %v1579_v18 = vsel %vm1143_vm3, %v1464_v26, %v1445_v63 }
 0x2de   : > { %v1549_v61 = vsel %vm994_vm0, %v1548_v60, %v1544_v39  ;;  %v1580_v4 = vsel %vm1145_vm4, %v1483_v6, %v1579_v18 }
 0x2df   : > { %v1411_v32 = vpop.permute.xlu1 %1410  ;;  %v1581_v35 = vsel %vm1147_vm5, %v1502_v7, %v1580_v4  ;;  %v5719_v7 = vsub.s32 5, %v4361_v5  ;;  %v5721_v4 = vsub.s32 7, %v4361_v5 }
 0x2e0   : > { %v1553_v53 = vrot.slane %v1411_v32, %v4591_v2  ;;  %v1582_v9 = vsel %vm1149_vm6, %v1521_v47, %v1581_v35 }
 0x2e1   : > { %v1583_v14 = vsel %vm1151_vm7, %v1540_v52, %v1582_v9  ;;  %v5722_v52 = vsub.s32 4, %v4361_v5 }
 0x2e2   : > { %v1554_v62 = vsel %vm1001_vm1, %v1553_v53, %v1549_v61 }
 0x2e3   : > { %v1420_v16 = vpop.permute.xlu1 %1419  ;;  %v1559_v56 = vsel %vm1008_vm2, %v1558_v59, %v1554_v62 }
 0x2e4   : > { %v1567_v38 = vrot.slane %v1420_v16, %v4588_v0  ;;  %v1584_v30 = vsel %vm1153_vm8, %v1559_v56, %v1583_v14  ;;  %v5730_v14 = vld [vmem:[#allocation37_spill] sm:$0xff] }
 0x2e6   : > { %v1568_v42 = vsel %vm994_vm0, %v1567_v38, %v1563_v41 }
 0x2e7   : > { %v1423_v27 = vpop.permute.xlu1 %1422 }
 0x2e8   : > { %v1572_v32 = vrot.slane %v1423_v27, %v4591_v2 }
 0x2ea   : > { %v1573_v60 = vsel %vm1001_vm1, %v1572_v32, %v1568_v42 }
 0x2eb   : > { %v1578_v54 = vsel %vm1008_vm2, %v1577_v49, %v1573_v60 }
 0x2ec   : > { %v1585_v40 = vsel %vm1155_vm9, %v1578_v54, %v1584_v30  ;;  %v5731_v30 = vld [vmem:[#allocation36_spill] sm:$0xff] }
 0x2ed   : > { %v1587_v53 = vsel %vm1158_vm10, %v1585_v40, 0.0 }
 0x2ee   : > { %1588 = vadd.xlane.f32.xlu1 %v1587_v53  ;;  %v3095_v26 = vpop.f32.mrb[0].mxu0 }
 0x2ef   : > { %v3096_v39 = vpop.f32.mrb[1].mxu0 }
 0x2f0   : > { %v3097_v43 = vadd.f32 %v3096_v39, %v3095_v26  ;;  %v5732_v26 = vld [vmem:[#allocation39_spill] sm:$0xff] }
 0x2f2   : > { %3234 = vmatmul.mubr.f32.vlgmr.msra.gmra.mrb[2].mxu0 %v3097_v43 }
 0x2f3   : > { %3268 = vmatprep.mubr.msk.f32.mxu0 %vm4086_vm13, %v5717_v58 }
 0x37b   : > { %v1589_v24 = vpop.xlane.xlu1 %1588 }
 0x37c   : > { %3771 = vrcp.f32 %v1589_v24  ;;  %v5733_v24 = vld [vmem:[#allocation38_spill] sm:$0xff] }
 0x386   : > { %v3772_v63 = vpop.eup %3771 }
 0x387   : > { %v1607_v57 = vrot.slane %v3772_v63, %v5718_v46  ;;  %v1595_v16 = vrot.slane %v3772_v63, %v4368_v10  ;;  %v1599_v55 = vrot.slane %v3772_v63, %v4721_v23  ;;  %v1615_v62 = vrot.slane %v3772_v63, %v5719_v7  ;;  %v5734_v46 = vld [vmem:[#allocation40_spill] sm:$0xff] }
 0x388   : > { %v2108_v7 = vld [vmem:[#allocation6 + $0x98] sm:$0xff] }
 0x389   : > { %v1645_v44 = vmul.f32 %v4874_v12, %v1607_v57  ;;  %v1632_v6 = vmul.f32 %v4769_v22, %v1595_v16  ;;  %v1639_v61 = vmul.f32 %v4786_v36, %v1599_v55  ;;  %v1633_v15 = vmul.f32 %v4767_v21, %v1595_v16 }
 0x38a   : > { %v1652_v38 = vmul.f32 %v4848_v20, %v1615_v62  ;;  %v1636_v18 = vmul.f32 %v4783_v33, %v1599_v55  ;;  %v1603_v12 = vrot.slane %v3772_v63, %v4738_v34  ;;  %v1637_v59 = vmul.f32 %v4795_v13, %v1599_v55 }
 0x38b   : > { %1736 = vperm.xlu1 %3640, %v1645_v44   ;;  %1697 = vperm.xlu0 %3641, %v1632_v6   ;;  %v5720_v36 = vsub.s32 6, %v4361_v5  ;;  %v1647_v33 = vmul.f32 %v4838_v31, %v1607_v57  ;;  %v1634_v41 = vmul.f32 %v4810_v45, %v1595_v16  ;;  %v1638_v31 = vmul.f32 %v4821_v17, %v1599_v55  ;;  %v5723_v45 = vld [vmem:[#allocation30_spill] sm:$0xff]  ;;  %v5724_v5 = vld [vmem:[#allocation28_spill] sm:$0xff]  ;;  %v5726_v17 = vld [vmem:[#allocation29_spill] sm:$0xff] }
 0x38c   : > { %v1643_v22 = vmul.f32 %v4812_v11, %v1603_v12  ;;  %v1640_v47 = vmul.f32 %v4836_v19, %v1603_v12  ;;  %v1641_v20 = vmul.f32 %v4846_v48, %v1603_v12  ;;  %v1623_v11 = vrot.slane %v3772_v63, %v5721_v4  ;;  %v2105_v6 = vld [vmem:[#allocation6 + $0x80] sm:$0xff]  ;;  %v2106_v55 = vld [vmem:[#allocation6 + $0x88] sm:$0xff]  ;;  %v2116_v4 = vld [vmem:[#allocation6 + $0xd8] sm:$0xff] }
 0x38d   : > { %v1619_v21 = vrot.slane %v3772_v63, %v5720_v36  ;;  %v1655_v48 = vmul.f32 %v4876_v28, %v1615_v62  ;;  %v1644_v27 = vmul.f32 %v4797_v29, %v1607_v57  ;;  %v1642_v35 = vmul.f32 %v5723_v45, %v1603_v12  ;;  %v5727_v28 = vld [vmem:[#allocation31_spill] sm:$0xff]  ;;  %v2110_v12 = vld [vmem:[#allocation6 + $0xa8] sm:$0xff]  ;;  %v2112_v36 = vld [vmem:[#allocation6 + $0xb8] sm:$0xff] }
 0x38e   : > { %v1660_v13 = vmul.f32 %v4884_v8, %v1623_v11  ;;  %v1635_v49 = vmul.f32 %v5726_v17, %v1595_v16  ;;  %v1646_v42 = vmul.f32 %v5727_v28, %v1607_v57  ;;  %v5728_v29 = vld [vmem:[#allocation35_spill] sm:$0xff]  ;;  %v1654_v40 = vmul.f32 %v5731_v30, %v1615_v62  ;;  %v5735_v16 = vld [vmem:[#allocation34_spill] sm:$0xff] }
 0x38f   : > { %1718 = vperm.xlu1 %3640, %v1639_v61   ;;  %1700 = vperm.xlu0 %3641, %v1633_v15   ;;  %v1656_v50 = vmul.f32 %v4868_v25, %v1619_v21  ;;  %v1611_v25 = vrot.slane %v3772_v63, %v5722_v52  ;;  %v1659_v8 = vmul.f32 %v4892_v51, %v1619_v21  ;;  %v5729_v51 = vld [vmem:[#allocation33_spill] sm:$0xff]  ;;  %v2107_v61 = vld [vmem:[#allocation6 + $0x90] sm:$0xff]  ;;  %v2288_v52 = vld [vmem:[%s5632_s7 + $0x10] sm:$0xff] }
 0x390   : > { %v1653_v9 = vmul.f32 %v5728_v29, %v1615_v62  ;;  %v1657_v54 = vmul.f32 %v5730_v14, %v1619_v21  ;;  %v1661_v39 = vmul.f32 %v5732_v26, %v1623_v11  ;;  %v1658_v63 = vmul.f32 %v5733_v24, %v1619_v21  ;;  %v2297_v45 = vld [vmem:[%s5632_s7 + $0x58] sm:$0xff]  ;;  %v2300_v17 = vld [vmem:[%s5632_s7 + $0x70] sm:$0xff]  ;;  %v3789_v24 = vld [vmem:[%s5626_s1] sm:$0xff] }
 0x391   : > { %v1651_v19 = vmul.f32 %v4858_v37, %v1611_v25  ;;  %v1648_v32 = vmul.f32 %v5724_v5, %v1611_v25  ;;  %v5725_v37 = vld [vmem:[#allocation32_spill] sm:$0xff]  ;;  %v1650_v60 = vmul.f32 %v5729_v51, %v1611_v25  ;;  %v1662_v57 = vmul.f32 %v5734_v46, %v1623_v11  ;;  %v2309_v29 = vld [vmem:[%s5632_s7 + $0xb8] sm:$0xff]  ;;  %v2312_v51 = vld [vmem:[%s5632_s7 + $0xd0] sm:$0xff] }
 0x392   : > { %v1649_v56 = vmul.f32 %v5725_v37, %v1611_v25  ;;  %v1663_v44 = vmul.f32 %v5735_v16, %v1623_v11  ;;  %v3339_v15 = vpack.c.bf16 %v2106_v55, %v2105_v6  ;;  %v3342_v62 = vpack.c.bf16 %v2108_v7, %v2107_v61  ;;  %v2291_v25 = vld [vmem:[%s5632_s7 + $0x28] sm:$0xff]  ;;  %v2290_v5 = vld [vmem:[%s5632_s7 + $0x20] sm:$0xff]  ;;  %v2321_v30 = vld [vmem:[%s5632_s7 + $0x118] sm:$0xff] }
 0x393   : > { %1757 = vperm.xlu1 %3640, %v1652_v38   ;;  %1709 = vperm.xlu0 %3641, %v1636_v18   ;;  %v5736_v38 = vmov 0.0|0.0   ;;  %v2109_v18 = vld [vmem:[#allocation6 + $0xa0] sm:$0xff] }
 0x394   : > { %3340 = vmatpush3.bf16.msra.mxu1 %v3339_v15 }
 0x395   : > { %3341 = vmatprep.subr.bf16.mxu1 %v5736_v38 }
 0x397   : > { %1730 = vperm.xlu1 %3640, %v1643_v22   ;;  %1712 = vperm.xlu0 %3641, %v1637_v59   ;;  %v3345_v22 = vpack.c.bf16 %v2110_v12, %v2109_v18  ;;  %v2111_v59 = vld [vmem:[#allocation6 + $0xb0] sm:$0xff] }
 0x398   : > { %3343 = vmatpush3.bf16.msra.mxu1 %v3342_v62  ;;  %v3348_v21 = vpack.c.bf16 %v2112_v36, %v2111_v59 }
 0x399   : > { %3344 = vmatprep.subr.bf16.mxu1 %v5736_v38 }
 0x39b   : > { %1769 = vperm.xlu1 %3640, %v1656_v50   ;;  %1721 = vperm.xlu0 %3641, %v1640_v47   ;;  %v2113_v50 = vld [vmem:[#allocation6 + $0xc0] sm:$0xff]  ;;  %v2114_v47 = vld [vmem:[#allocation6 + $0xc8] sm:$0xff] }
 0x39c   : > { %3346 = vmatpush3.bf16.msra.mxu1 %v3345_v22 }
 0x39d   : > { %3347 = vmatprep.subr.bf16.mxu1 %v5736_v38 }
 0x39f   : > { %1742 = vperm.xlu1 %3640, %v1647_v33   ;;  %1724 = vperm.xlu0 %3641, %v1641_v20   ;;  %v3351_v33 = vpack.c.bf16 %v2114_v47, %v2113_v50  ;;  %v2115_v20 = vld [vmem:[#allocation6 + $0xd0] sm:$0xff]  ;;  %v3791_v47 = vld [vmem:[%s5626_s1 + $0x28] sm:$0xff] }
 0x3a0   : > { %3349 = vmatpush3.bf16.msra.mxu1 %v3348_v21  ;;  %v3354_v11 = vpack.c.bf16 %v2116_v4, %v2115_v20  ;;  %v3792_v20 = vld [vmem:[%s5626_s1 + $0x20] sm:$0xff] }
 0x3a1   : > { %3350 = vmatprep.subr.bf16.mxu1 %v5736_v38 }
 0x3a3   : > { %1781 = vperm.xlu1 %3640, %v1660_v13   ;;  %1703 = vperm.xlu0 %3641, %v1634_v41   ;;  %v2117_v13 = vld [vmem:[#allocation6 + $0xe0] sm:$0xff]  ;;  %v2118_v41 = vld [vmem:[#allocation6 + $0xe8] sm:$0xff] }
 0x3a4   : > { %3352 = vmatpush3.bf16.msra.mxu1 %v3351_v33 }
 0x3a5   : > { %3353 = vmatprep.subr.bf16.mxu1 %v5736_v38 }
 0x3a7   : > { %1754 = vperm.xlu1 %3640, %v1651_v19   ;;  %1715 = vperm.xlu0 %3641, %v1638_v31   ;;  %v3419_v19 = vpack.c.bf16 %v2291_v25, %v2288_v52  ;;  %v3357_v31 = vpack.c.bf16 %v2118_v41, %v2117_v13 }
 0x3a8   : > { %3355 = vmatpush3.bf16.msra.mxu1 %v3354_v11  ;;  %v3793_v11 = vld [vmem:[%s5626_s1 + $0x30] sm:$0xff] }
 0x3a9   : > { %3420 = vmatpush3.bf16.msra.mxu0 %v3419_v19  ;;  %3356 = vmatprep.subr.bf16.mxu1 %v5736_v38 }
 0x3aa   : > { %3421 = vmatprep.subr.bf16.mxu0 %v5736_v38 }
 0x3ab   : > { %1766 = vperm.xlu1 %3640, %v1655_v48   ;;  %1733 = vperm.xlu0 %3641, %v1644_v27   ;;  %v2119_v48 = vld [vmem:[#allocation6 + $0xf0] sm:$0xff]  ;;  %v2120_v27 = vld [vmem:[#allocation6 + $0xf8] sm:$0xff] }
 0x3ac   : > { %3358 = vmatpush3.bf16.msra.mxu1 %v3357_v31  ;;  %v3360_v37 = vpack.c.bf16 %v2120_v27, %v2119_v48  ;;  %v3794_v48 = vld [vmem:[%s5626_s1 + $0x38] sm:$0xff] }
 0x3ad   : > { %3359 = vmatprep.subr.bf16.mxu1 %v5736_v38 }
 0x3af   : > { %1778 = vperm.xlu1 %3640, %v1659_v8   ;;  %1727 = vperm.xlu0 %3641, %v1642_v35   ;;  %v2294_v8 = vld [vmem:[%s5632_s7 + $0x40] sm:$0xff]  ;;  %v2287_v35 = vld [vmem:[%s5632_s7 + $0x8] sm:$0xff] }
 0x3b0   : > { %3361 = vmatpush3.bf16.msra.mxu1 %v3360_v37 }
 0x3b3   : > { %1745 = vperm.xlu0 %3641, %v1648_v32   ;;  %v3422_v32 = vpack.c.bf16 %v2297_v45, %v2294_v8 }
 0x3b5   : > { %3423 = vmatpush3.bf16.msra.mxu0 %v3422_v32 }
 0x3b6   : > { %3424 = vmatprep.subr.bf16.mxu0 %v5736_v38 }
 0x3b7   : > { %1748 = vperm.xlu0 %3641, %v1649_v56   ;;  %v3386_v56 = vpack.c.bf16 %v2290_v5, %v2287_v35 }
 0x3b9   : > { %3387 = vmatprep.subr.bf16.mxu1 %v3386_v56  ;;  %v3795_v56 = vld [vmem:[%s5626_s1 + $0x10] sm:$0xff] }
 0x3bb   : > { %1706 = vperm.xlu0 %3641, %v1635_v49   ;;  %v2303_v49 = vld [vmem:[%s5632_s7 + $0x88] sm:$0xff] }
 0x3bc   : > { %v3425_v28 = vpack.c.bf16 %v2303_v49, %v2300_v17 }
 0x3be   : > { %3426 = vmatpush3.bf16.msra.mxu0 %v3425_v28 }
 0x3bf   : > { %1739 = vperm.xlu0 %3641, %v1646_v42   ;;  %3427 = vmatprep.subr.bf16.mxu0 %v5736_v38  ;;  %v2306_v42 = vld [vmem:[%s5632_s7 + $0xa0] sm:$0xff] }
 0x3c3   : > { %1760 = vperm.xlu0 %3641, %v1653_v9   ;;  %v3428_v9 = vpack.c.bf16 %v2309_v29, %v2306_v42 }
 0x3c5   : > { %v5053_v53 = vpop.f32.mrb[2].mxu0  ;;  %3429 = vmatpush3.bf16.msra.mxu0 %v3428_v9 }
 0x3c6   : > { %v3235_v43 = vpop.f32.mrb[3].mxu0  ;;  %3430 = vmatprep.subr.bf16.mxu0 %v5736_v38 }
 0x3c7   : > { %1751 = vperm.xlu0 %3641, %v1650_v60   ;;  %v2315_v60 = vld [vmem:[%s5632_s7 + $0xe8] sm:$0xff] }
 0x3c8   : > { %v3431_v14 = vpack.c.bf16 %v2315_v60, %v2312_v51 }
 0x3ca   : > { %3432 = vmatpush3.bf16.msra.mxu0 %v3431_v14 }
 0x3cb   : > { %1772 = vperm.xlu0 %3641, %v1657_v54   ;;  %3433 = vmatprep.subr.bf16.mxu0 %v5736_v38  ;;  %v2318_v54 = vld [vmem:[%s5632_s7 + $0x100] sm:$0xff] }
 0x3cf   : > { %1763 = vperm.xlu0 %3641, %v1654_v40   ;;  %v3434_v40 = vpack.c.bf16 %v2321_v30, %v2318_v54  ;;  %v3796_v54 = vld [vmem:[%s5626_s1 + $0x18] sm:$0xff] }
 0x3d1   : > { %3435 = vmatpush3.bf16.msra.mxu0 %v3434_v40 }
 0x3d2   : > { %3436 = vmatprep.subr.bf16.mxu0 %v5736_v38 }
 0x3d3   : > { %1784 = vperm.xlu0 %3641, %v1661_v39  }
 0x3d7   : > { %1775 = vperm.xlu0 %3641, %v1658_v63  }
 0x3db   : > { %1787 = vperm.xlu0 %3641, %v1662_v57   ;;  %v3790_v57 = vld [vmem:[%s5626_s1 + $0x8] sm:$0xff] }
 0x3df   : > { %1790 = vperm.xlu0 %3641, %v1663_v44  }
 0x40a   : > { %v1698_v26 = vpop.permute.xlu0 %1697  ;;  %v5126_v18 = vpop.permute.xlu1 %1736 }
 0x40b   : > { %v1795_v43 = vrot.slane %v1698_v26, %v4595_v1  ;;  %v1985_v63 = vmul.f32 %v3789_v24, %v1698_v26 }
 0x40e   : > { %v1701_v39 = vpop.permute.xlu0 %1700  ;;  %v1719_v59 = vpop.permute.xlu1 %1718 }
 0x40f   : > { %v1799_v46 = vrot.slane %v1701_v39, %v4588_v0  ;;  %v1986_v16 = vmul.f32 %v3790_v57, %v1701_v39  ;;  %v1992_v27 = vmul.f32 %v3794_v48, %v1719_v59  ;;  %v1828_v51 = vrot.slane %v1719_v59, %v4598_v3 }
 0x411   : > { %v1800_v44 = vsel %vm994_vm0, %v1799_v46, %v1795_v43  ;;  %v2017_v6 = vadd.f32 %v1986_v16, %v1985_v63  ;;  %v3797_v63 = vld [vmem:[%s5626_s1 + $0x48] sm:$0xff] }
 0x412   : > { %v1710_v55 = vpop.permute.xlu0 %1709  ;;  %v5132_v21 = vpop.permute.xlu1 %1757 }
 0x413   : > { %v1814_v15 = vrot.slane %v1710_v55, %v4595_v1  ;;  %v1989_v4 = vmul.f32 %v3792_v20, %v1710_v55  ;;  %v3798_v55 = vld [vmem:[%s5626_s1 + $0x40] sm:$0xff] }
 0x414   : > { %v3800_v20 = vld [vmem:[%s5626_s1 + $0x60] sm:$0xff] }
 0x416   : > { %v1713_v61 = vpop.permute.xlu0 %1712  ;;  %v5145_v25 = vpop.permute.xlu1 %1730 }
 0x417   : > { %v1818_v7 = vrot.slane %v1713_v61, %v4588_v0  ;;  %v1990_v33 = vmul.f32 %v3791_v47, %v1713_v61 }
 0x419   : > { %v1819_v62 = vsel %vm994_vm0, %v1818_v7, %v1814_v15  ;;  %v2026_v52 = vadd.f32 %v1990_v33, %v1989_v4  ;;  %v3799_v15 = vld [vmem:[%s5626_s1 + $0x50] sm:$0xff] }
 0x41a   : > { %v5128_v12 = vpop.permute.xlu0 %1721  ;;  %v5152_v45 = vpop.permute.xlu1 %1769 }
 0x41b   : > { %v1993_v61 = vmul.f32 %v3798_v55, %v5128_v12 }
 0x41e   : > { %v5130_v22 = vpop.permute.xlu0 %1724  ;;  %v5162_v49 = vpop.permute.xlu1 %1742 }
 0x41f   : > { %v1994_v46 = vmul.f32 %v3797_v63, %v5130_v22 }
 0x422   : > { %v1704_v36 = vpop.permute.xlu0 %1703  ;;  %v5178_v57 = vpop.permute.xlu1 %1781 }
 0x423   : > { %v1987_v17 = vmul.f32 %v3795_v56, %v1704_v36  ;;  %v1804_v28 = vrot.slane %v1704_v36, %v4591_v2  ;;  %v2035_v36 = vadd.f32 %v1994_v46, %v1993_v61  ;;  %v3804_v56 = vld [vmem:[%s5626_s1 + $0x70] sm:$0xff]  ;;  %v1890_v46 = vrot.slane %v5132_v21, %v4595_v1  ;;  %v3807_v61 = vld [vmem:[%s5626_s1 + $0xa8] sm:$0xff] }
 0x425   : > { %v2018_v60 = vadd.f32 %v2017_v6, %v1987_v17  ;;  %v1805_v40 = vsel %vm1001_vm1, %v1804_v28, %v1800_v44 }
 0x426   : > { %v1716_v50 = vpop.permute.xlu0 %1715  ;;  %v5195_v33 = vpop.permute.xlu1 %1754 }
 0x427   : > { %v1991_v13 = vmul.f32 %v3793_v11, %v1716_v50  ;;  %v1823_v32 = vrot.slane %v1716_v50, %v4591_v2 }
 0x429   : > { %v2027_v19 = vadd.f32 %v2026_v52, %v1991_v13  ;;  %v1824_v29 = vsel %vm1001_vm1, %v1823_v32, %v1819_v62 }
 0x42a   : > { %v5143_v41 = vpop.permute.xlu0 %1733  ;;  %v1829_v26 = vsel %vm1008_vm2, %v1828_v51, %v1824_v29  ;;  %v3805_v51 = vld [vmem:[%s5626_s1 + $0x80] sm:$0xff] }
 0x42b   : > { %v2028_v8 = vadd.f32 %v2027_v19, %v1992_v27  ;;  %v1997_v4 = vmul.f32 %v3800_v20, %v5143_v41  ;;  %v3801_v19 = vld [vmem:[%s5626_s1 + $0x68] sm:$0xff]  ;;  %v3802_v27 = vld [vmem:[%s5626_s1 + $0x58] sm:$0xff]  ;;  %v1909_v20 = vrot.slane %v5152_v45, %v4595_v1 }
 0x42c   : > { %v1998_v48 = vmul.f32 %v3801_v19, %v5126_v18 }
 0x42d   : > { %v2029_v5 = vrot.slane %v2028_v8, 4 }
 0x42e   : > { %v5147_v31 = vpop.permute.xlu0 %1727  ;;  %v2044_v29 = vadd.f32 %v1998_v48, %v1997_v4  ;;  %v3810_v4 = vld [vmem:[%s5626_s1 + $0xc0] sm:$0xff] }
 0x42f   : > { %v2030_v42 = vadd.f32 %v2029_v5, %v2028_v8  ;;  %v1995_v7 = vmul.f32 %v3799_v15, %v5147_v31  ;;  %v1996_v8 = vmul.f32 %v3802_v27, %v5145_v25  ;;  %v3803_v5 = vld [vmem:[%s5626_s1 + $0x88] sm:$0xff]  ;;  %v3808_v15 = vld [vmem:[%s5626_s1 + $0xa0] sm:$0xff]  ;;  %v1842_v48 = vrot.slane %v5147_v31, %v4591_v2 }
 0x431   : > { %v2031_v39 = vrot.slane %v2030_v42, 2  ;;  %v2036_v11 = vadd.f32 %v2035_v36, %v1995_v7  ;;  %v2005_v7 = vmul.f32 %v3808_v15, %v5132_v21 }
 0x432   : > { %v5154_v35 = vpop.permute.xlu0 %1745 }
 0x433   : > { %v2032_v62 = vadd.f32 %v2031_v39, %v2030_v42  ;;  %v5229_v39 = vpop.permute.xlu1 %1766 }
 0x435   : > { %v2033_v13 = vrot.slane %v2032_v62, 1 }
 0x436   : > { %v5157_v37 = vpop.permute.xlu0 %1748 }
 0x437   : > { %v2002_v32 = vmul.f32 %v3803_v5, %v5157_v37  ;;  %v1866_v5 = vrot.slane %v5162_v49, %v4598_v3 }
 0x43a   : > { %v1707_v9 = vpop.permute.xlu0 %1706 }
 0x43b   : > { %v1809_v14 = vrot.slane %v1707_v9, %v4598_v3  ;;  %v1988_v30 = vmul.f32 %v3796_v54, %v1707_v9  ;;  %v2037_v9 = vadd.f32 %v2036_v11, %v1996_v8  ;;  %v2009_v11 = vmul.f32 %v3810_v4, %v5152_v45 }
 0x43d   : > { %v1810_v43 = vsel %vm1008_vm2, %v1809_v14, %v1805_v40  ;;  %v2019_v24 = vadd.f32 %v2018_v60, %v1988_v30  ;;  %v2001_v60 = vmul.f32 %v3805_v51, %v5154_v35  ;;  %v3806_v14 = vld [vmem:[%s5626_s1 + $0x90] sm:$0xff]  ;;  %v2034_v30 = vadd.f32 %v2033_v13, %v2032_v62  ;;  %v3809_v62 = vld [vmem:[%s5626_s1 + $0x78] sm:$0xff] }
 0x43e   : > { %v5181_v16 = vsel %vm1143_vm3, %v1829_v26, %v1810_v43  ;;  %v5183_v6 = vpop.permute.xlu0 %1739  ;;  %v1856_v26 = vrot.slane %v5126_v18, %v4588_v0  ;;  %v1833_v13 = vrot.slane %v5128_v12, %v4595_v1 }
 0x43f   : > { %v2020_v44 = vrot.slane %v2019_v24, 4  ;;  %v1999_v17 = vmul.f32 %v3804_v56, %v5183_v6  ;;  %v2053_v43 = vadd.f32 %v2002_v32, %v2001_v60  ;;  %v3812_v56 = vld [vmem:[%s5626_s1 + $0xb0] sm:$0xff]  ;;  %v1885_v60 = vrot.slane %v5195_v33, %v4598_v3 }
 0x441   : > { %v2021_v59 = vadd.f32 %v2020_v44, %v2019_v24  ;;  %v2045_v24 = vadd.f32 %v2044_v29, %v1999_v17  ;;  %v1837_v44 = vrot.slane %v5130_v22, %v4588_v0  ;;  %v2000_v22 = vmul.f32 %v3809_v62, %v5162_v49  ;;  %v5284_v29 = vpop.permute.xlu1 %1778 }
 0x442   : > { %v5193_v50 = vpop.permute.xlu0 %1760 }
 0x443   : > { %v2022_v47 = vrot.slane %v2021_v59, 2  ;;  %v2006_v18 = vmul.f32 %v3807_v61, %v5193_v50  ;;  %v2046_v27 = vadd.f32 %v2045_v24, %v2000_v22  ;;  %v1838_v32 = vsel %vm994_vm0, %v1837_v44, %v1833_v13 }
 0x444   : > { %v1843_v24 = vsel %vm1001_vm1, %v1842_v48, %v1838_v32  ;;  %v1894_v4 = vrot.slane %v5193_v50, %v4588_v0 }
 0x445   : > { %v2023_v52 = vadd.f32 %v2022_v47, %v2021_v59  ;;  %v2038_v59 = vrot.slane %v2037_v9, 4  ;;  %v1847_v47 = vrot.slane %v5145_v25, %v4598_v3  ;;  %v1852_v25 = vrot.slane %v5143_v41, %v4595_v1  ;;  %v3813_v41 = vld [vmem:[%s5626_s1 + $0xe0] sm:$0xff] }
 0x446   : > { %v5217_v28 = vpop.permute.xlu0 %1751  ;;  %v2062_v12 = vadd.f32 %v2006_v18, %v2005_v7  ;;  %v5282_v31 = vmul.f32 %v3813_v41, %v5178_v57  ;;  %v2047_v44 = vrot.slane %v2046_v27, 4  ;;  %v1875_v18 = vrot.slane %v5157_v37, %v4588_v0  ;;  %v3816_v7 = vld [vmem:[%s5626_s1 + $0xd8] sm:$0xff] }
 0x447   : > { %v2024_v42 = vrot.slane %v2023_v52, 1  ;;  %v2003_v54 = vmul.f32 %v3806_v14, %v5217_v28  ;;  %v2039_v49 = vadd.f32 %v2038_v59, %v2037_v9  ;;  %v1904_v14 = vrot.slane %v5229_v39, %v4598_v3 }
 0x448   : > { %v1861_v9 = vrot.slane %v5183_v6, %v4591_v2  ;;  %v2012_v6 = vmul.f32 %v3816_v7, %v5284_v29  ;;  %v1880_v22 = vrot.slane %v5217_v28, %v4591_v2  ;;  %v1848_v37 = vsel %vm1008_vm2, %v1847_v47, %v1843_v24  ;;  %v3819_v24 = vld [vmem:[%s5626_s1 + $0xf0] sm:$0xff] }
 0x449   : > { %v2025_v40 = vadd.f32 %v2024_v42, %v2023_v52  ;;  %v2054_v36 = vadd.f32 %v2053_v43, %v2003_v54  ;;  %v3811_v52 = vld [vmem:[%s5626_s1 + $0x98] sm:$0xff]  ;;  %v1928_v42 = vrot.slane %v5178_v57, %v4595_v1  ;;  %v1857_v43 = vsel %vm994_vm0, %v1856_v26, %v1852_v25 }
 0x44a   : > { %v5231_v63 = vpop.permute.xlu0 %1772  ;;  %v2004_v19 = vmul.f32 %v3811_v52, %v5195_v33  ;;  %v3814_v54 = vld [vmem:[%s5626_s1 + $0xb8] sm:$0xff]  ;;  %v1923_v33 = vrot.slane %v5284_v29, %v4598_v3  ;;  %v2040_v62 = vrot.slane %v2039_v49, 2  ;;  %v1862_v52 = vsel %vm1001_vm1, %v1861_v9, %v1857_v43 }
 0x44b   : > { %v5238_v55 = vsel %vm1143_vm3, %v2034_v30, %v2025_v40  ;;  %v2008_v30 = vmul.f32 %v3814_v54, %v5229_v39  ;;  %v3815_v39 = vld [vmem:[%s5626_s1 + $0xc8] sm:$0xff]  ;;  %v1913_v25 = vrot.slane %v5231_v63, %v4588_v0  ;;  %v1945_v45 = vsel %vm1145_vm4, %v1848_v37, %v5181_v16 }
 0x44c   : > { %v2055_v51 = vadd.f32 %v2054_v36, %v2004_v19  ;;  %v2010_v15 = vmul.f32 %v3815_v39, %v5231_v63  ;;  %v1871_v36 = vrot.slane %v5154_v35, %v4595_v1  ;;  %v2048_v19 = vadd.f32 %v2047_v44, %v2046_v27  ;;  %v3817_v35 = vld [vmem:[%s5626_s1 + $0xd0] sm:$0xff] }
 0x44d   : > { %v1867_v63 = vsel %vm1008_vm2, %v1866_v5, %v1862_v52 }
 0x44e   : > { %v1764_v8 = vpop.permute.xlu0 %1763  ;;  %v2056_v59 = vrot.slane %v2055_v51, 4  ;;  %v1876_v28 = vsel %vm994_vm0, %v1875_v18, %v1871_v36 }
 0x44f   : > { %v2007_v17 = vmul.f32 %v3812_v56, %v1764_v8  ;;  %v1899_v48 = vrot.slane %v1764_v8, %v4591_v2  ;;  %v2041_v56 = vadd.f32 %v2040_v62, %v2039_v49  ;;  %v1895_v8 = vsel %vm994_vm0, %v1894_v4, %v1890_v46 }
 0x450   : > { %v2057_v27 = vadd.f32 %v2056_v59, %v2055_v51  ;;  %v1914_v49 = vsel %vm994_vm0, %v1913_v25, %v1909_v20 }
 0x451   : > { %v2063_v40 = vadd.f32 %v2062_v12, %v2007_v17  ;;  %v2071_v12 = vadd.f32 %v2010_v15, %v2009_v11  ;;  %v1881_v17 = vsel %vm1001_vm1, %v1880_v22, %v1876_v28  ;;  %v3818_v11 = vld [vmem:[%s5626_s1 + $0xe8] sm:$0xff]  ;;  %v1900_v51 = vsel %vm1001_vm1, %v1899_v48, %v1895_v8 }
 0x452   : > { %v1785_v61 = vpop.permute.xlu0 %1784  ;;  %v1886_v21 = vsel %vm1008_vm2, %v1885_v60, %v1881_v17  ;;  %v2058_v44 = vrot.slane %v2057_v27, 2  ;;  %v2042_v25 = vrot.slane %v2041_v56, 1 }
 0x453   : > { %v2064_v26 = vadd.f32 %v2063_v40, %v2008_v30  ;;  %v2014_v29 = vmul.f32 %v3818_v11, %v1785_v61  ;;  %v2049_v30 = vrot.slane %v2048_v19, 2  ;;  %v1932_v5 = vrot.slane %v1785_v61, %v4588_v0  ;;  %v2286_v11 = vld [vmem:[%s5632_s7] sm:$0xff] }
 0x454   : > { %v1946_v0 = vsel %vm1147_vm5, %v1867_v63, %v1945_v45  ;;  %v1905_v61 = vsel %vm1008_vm2, %v1904_v14, %v1900_v51  ;;  %v2059_v59 = vadd.f32 %v2058_v44, %v2057_v27  ;;  %v2299_v45 = vld [vmem:[%s5632_s7 + $0x68] sm:$0xff]  ;;  %v2302_v44 = vld [vmem:[%s5632_s7 + $0x80] sm:$0xff] }
 0x455   : > { %v2065_v13 = vrot.slane %v2064_v26, 4  ;;  %v2080_v60 = vadd.f32 %v2014_v29, %v5282_v31  ;;  %v2050_v15 = vadd.f32 %v2049_v30, %v2048_v19  ;;  %v1933_v7 = vsel %vm994_vm0, %v1932_v5, %v1928_v42  ;;  %v3820_v31 = vld [vmem:[%s5626_s1 + $0xf8] sm:$0xff] }
 0x456   : > { %v1776_v32 = vpop.permute.xlu0 %1775  ;;  %v2060_v48 = vrot.slane %v2059_v59, 1  ;;  %v2289_v29 = vld [vmem:[%s5632_s7 + $0x18] sm:$0xff] }
 0x457   : > { %v1918_v47 = vrot.slane %v1776_v32, %v4591_v2  ;;  %v2011_v50 = vmul.f32 %v3817_v35, %v1776_v32  ;;  %v2066_v41 = vadd.f32 %v2065_v13, %v2064_v26  ;;  %v1947_v26 = vsel %vm1149_vm6, %v1886_v21, %v1946_v0  ;;  %v2298_v0 = vld [vmem:[%s5632_s7 + $0x60] sm:$0xff] }
 0x458   : > { %v1948_v1 = vsel %vm1151_vm7, %v1905_v61, %v1947_v26  ;;  %v2061_v17 = vadd.f32 %v2060_v48, %v2059_v59  ;;  %v2301_v61 = vld [vmem:[%s5632_s7 + $0x78] sm:$0xff]  ;;  %v2324_v48 = vld [vmem:[%s5632_s7 + $0x130] sm:$0xff] }
 0x459   : > { %v2072_v54 = vadd.f32 %v2071_v12, %v2011_v50  ;;  %v1919_v46 = vsel %vm1001_vm1, %v1918_v47, %v1914_v49  ;;  %v2067_v20 = vrot.slane %v2066_v41, 2  ;;  %v2043_v50 = vadd.f32 %v2042_v25, %v2041_v56  ;;  %v2293_v56 = vld [vmem:[%s5632_s7 + $0x38] sm:$0xff]  ;;  %v2296_v49 = vld [vmem:[%s5632_s7 + $0x50] sm:$0xff] }
 0x45a   : > { %v1788_v40 = vpop.permute.xlu0 %1787  ;;  %v1924_v16 = vsel %vm1008_vm2, %v1923_v33, %v1919_v46  ;;  %v3390_v46 = vpack.c.bf16 %v2296_v49, %v2293_v56  ;;  %v2317_v59 = vld [vmem:[%s5632_s7 + $0xf8] sm:$0xff]  ;;  %v3050_v56 = vld [vmem:[%s5631_s6] ss:$0 sm:$0xff]  ;;  %v2492_v49 = vld [vmem:[#allocation8] sm:$0xff] }
 0x45b   : > { %v2073_v43 = vadd.f32 %v2072_v54, %v2012_v6  ;;  %v2015_v9 = vmul.f32 %v3819_v24, %v1788_v40  ;;  %v1937_v18 = vrot.slane %v1788_v40, %v4591_v2  ;;  %v2068_v37 = vadd.f32 %v2067_v20, %v2066_v41  ;;  %v2295_v24 = vld [vmem:[%s5632_s7 + $0x48] sm:$0xff] }
 0x45c   : > { %v1949_v4 = vsel %vm1153_vm8, %v1924_v16, %v1948_v1  ;;  %v2130_v8 = vsel %vm1145_vm4, %v2043_v50, %v5238_v55  ;;  %v3388_v40 = vpack.c.bf16 %v2289_v29, %v2286_v11  ;;  %v2307_v16 = vld [vmem:[%s5632_s7 + $0xa8] sm:$0xff] }
 0x45d   : > { %v2074_v39 = vrot.slane %v2073_v43, 4  ;;  %v2081_v2 = vadd.f32 %v2080_v60, %v2015_v9  ;;  %v1938_v36 = vsel %vm1001_vm1, %v1937_v18, %v1933_v7  ;;  %v2069_v32 = vrot.slane %v2068_v37, 1  ;;  %v2305_v60 = vld [vmem:[%s5632_s7 + $0x98] sm:$0xff]  ;;  %v2304_v7 = vld [vmem:[%s5632_s7 + $0x90] sm:$0xff]  ;;  %v2331_v50 = vld [vmem:[%s5632_s7 + $0x168] sm:$0xff] }
 0x45e   : > { %v1791_v6 = vpop.permute.xlu0 %1790  ;;  %v3394_v18 = vpack.c.bf16 %v2302_v44, %v2299_v45  ;;  %v2496_v29 = vld [vmem:[#allocation8 + $0x20] sm:$0xff]  ;;  %v2498_v45 = vld [vmem:[#allocation8 + $0x30] sm:$0xff] }
 0x45f   : > { %v2075_v62 = vadd.f32 %v2074_v39, %v2073_v43  ;;  %v1942_v22 = vrot.slane %v1791_v6, %v4598_v3  ;;  %v2016_v14 = vmul.f32 %v3820_v31, %v1791_v6  ;;  %v2051_v3 = vrot.slane %v2050_v15, 1  ;;  %v2292_v43 = vld [vmem:[%s5632_s7 + $0x30] sm:$0xff]  ;;  %v2311_v6 = vld [vmem:[%s5632_s7 + $0xc8] sm:$0xff]  ;;  %v2310_v31 = vld [vmem:[%s5632_s7 + $0xc0] sm:$0xff] }
 0x460   : > { %v2070_v41 = vadd.f32 %v2069_v32, %v2068_v37  ;;  %v3392_v20 = vpack.c.bf16 %v2295_v24, %v2292_v43  ;;  %v2308_v39 = vld [vmem:[%s5632_s7 + $0xb0] sm:$0xff]  ;;  %v2327_v32 = vld [vmem:[%s5632_s7 + $0x148] sm:$0xff]  ;;  %v2502_v43 = vld [vmem:[#allocation8 + $0x50] sm:$0xff] }
 0x461   : > { %v2076_v57 = vrot.slane %v2075_v62, 2  ;;  %v1943_v42 = vsel %vm1008_vm2, %v1942_v22, %v1938_v36  ;;  %v2082_v33 = vadd.f32 %v2081_v2, %v2016_v14  ;;  %v2052_v47 = vadd.f32 %v2051_v3, %v2050_v15  ;;  %v2313_v14 = vld [vmem:[%s5632_s7 + $0xd8] sm:$0xff]  ;;  %v2320_v37 = vld [vmem:[%s5632_s7 + $0x110] sm:$0xff] }
 0x462   : > { %v1950_v13 = vsel %vm1155_vm9, %v1943_v42, %v1949_v4  ;;  %v3396_v15 = vpack.c.bf16 %v2301_v61, %v2298_v0  ;;  %v3398_v26 = vpack.c.bf16 %v2308_v39, %v2305_v60  ;;  %v3400_v2 = vpack.c.bf16 %v2307_v16, %v2304_v7  ;;  %v2319_v42 = vld [vmem:[%s5632_s7 + $0x108] sm:$0xff]  ;;  %v2326_v4 = vld [vmem:[%s5632_s7 + $0x140] sm:$0xff]  ;;  %v2501_v0 = vld [vmem:[#allocation8 + $0x48] sm:$0xff] }
 0x463   : > { %v2077_v52 = vadd.f32 %v2076_v57, %v2075_v62  ;;  %v2083_v19 = vrot.slane %v2082_v33, 4  ;;  %1952 = vst.msk [vmem:[%s4353_s15] sm:$0xff] %vm1158_vm10, %v1950_v13  ;;  %v2131_v30 = vsel %vm1147_vm5, %v2052_v47, %v2130_v8  ;;  %v2314_v62 = vld [vmem:[%s5632_s7 + $0xe0] sm:$0xff]  ;;  %v3404_v36 = vpack.c.bf16 %v2313_v14, %v2310_v31  ;;  %v2316_v57 = vld [vmem:[%s5632_s7 + $0xf0] sm:$0xff]  ;;  %v2500_v61 = vld [vmem:[#allocation8 + $0x40] sm:$0xff] }
 0x464   : > { %v2132_v55 = vsel %vm1149_vm6, %v2061_v17, %v2131_v30  ;;  %v3402_v22 = vpack.c.bf16 %v2314_v62, %v2311_v6  ;;  %v3406_v1 = vpack.c.bf16 %v2320_v37, %v2317_v59  ;;  %v3408_v13 = vpack.c.bf16 %v2319_v42, %v2316_v57  ;;  %v2332_v47 = vld [vmem:[%s5632_s7 + $0x170] sm:$0xff]  ;;  %v2503_v60 = vld [vmem:[#allocation8 + $0x58] sm:$0xff]  ;;  %v2506_v62 = vld [vmem:[#allocation8 + $0x70] sm:$0xff] }
 0x465   : > { %v2084_v28 = vadd.f32 %v2083_v19, %v2082_v33  ;;  %v2078_v12 = vrot.slane %v2077_v52, 1  ;;  %v2133_v5 = vsel %vm1151_vm7, %v2070_v41, %v2132_v55  ;;  %v2323_v33 = vld [vmem:[%s5632_s7 + $0x128] sm:$0xff]  ;;  %v2325_v19 = vld [vmem:[%s5632_s7 + $0x138] sm:$0xff]  ;;  %v2330_v41 = vld [vmem:[%s5632_s7 + $0x160] sm:$0xff]  ;;  %v3478_v7 = vpack.c.bf16 %v2503_v60, %v2500_v61 }
 0x466   : > { %v3410_v3 = vpack.c.bf16 %v2326_v4, %v2323_v33  ;;  %v2493_v8 = vld [vmem:[#allocation8 + $0x8] sm:$0xff]  ;;  %v2507_v6 = vld [vmem:[#allocation8 + $0x78] sm:$0xff]  ;;  %v2514_v31 = vld [vmem:[#allocation8 + $0xb0] sm:$0xff] }
 0x467   : > { %v2085_v35 = vrot.slane %v2084_v28, 2  ;;  %v2079_v63 = vadd.f32 %v2078_v12, %v2077_v52  ;;  %v2322_v52 = vld [vmem:[%s5632_s7 + $0x120] sm:$0xff]  ;;  %v3437_v12 = vpack.c.bf16 %v2327_v32, %v2324_v48  ;;  %v2505_v39 = vld [vmem:[#allocation8 + $0x68] sm:$0xff]  ;;  %v2510_v59 = vld [vmem:[#allocation8 + $0x90] sm:$0xff] }
 0x468   : > { %v3412_v25 = vpack.c.bf16 %v2325_v19, %v2322_v52  ;;  %v2512_v57 = vld [vmem:[#allocation8 + $0xa0] sm:$0xff]  ;;  %v2515_v42 = vld [vmem:[#allocation8 + $0xb8] sm:$0xff]  ;;  %v2517_v33 = vld [vmem:[#allocation8 + $0xc8] sm:$0xff] }
 0x469   : > { %v2086_v27 = vadd.f32 %v2085_v35, %v2084_v28  ;;  %v2134_v21 = vsel %vm1153_vm8, %v2079_v63, %v2133_v5  ;;  %v2329_v28 = vld [vmem:[%s5632_s7 + $0x158] sm:$0xff]  ;;  %v2328_v35 = vld [vmem:[%s5632_s7 + $0x150] sm:$0xff]  ;;  %3438 = vmatpush3.bf16.msra.mxu0 %v3437_v12  ;;  %v2495_v5 = vld [vmem:[#allocation8 + $0x18] sm:$0xff]  ;;  %v3484_v52 = vpack.c.bf16 %v2515_v42, %v2512_v57 }
 0x46a   : > { %v3414_v17 = vpack.c.bf16 %v2332_v47, %v2329_v28  ;;  %v2333_v63 = vld [vmem:[%s5632_s7 + $0x178] sm:$0xff]  ;;  %3439 = vmatprep.subr.bf16.mxu0 %v5736_v38  ;;  %v2520_v4 = vld [vmem:[#allocation8 + $0xe0] sm:$0xff]  ;;  %v2521_v32 = vld [vmem:[#allocation8 + $0xe8] sm:$0xff] }
 0x46b   : > { %v2087_v54 = vrot.slane %v2086_v27, 1  ;;  %v3440_v11 = vpack.c.bf16 %v2333_v63, %v2330_v41  ;;  %v3458_v19 = vpack.c.bf16 %v2520_v4, %v2517_v33  ;;  %v2518_v48 = vld [vmem:[#allocation8 + $0xd0] sm:$0xff]  ;;  %v2523_v28 = vld [vmem:[#allocation8 + $0xf8] sm:$0xff]  ;;  %v2524_v41 = vld [vmem:[#allocation8 + $0x100] sm:$0xff] }
 0x46c   : > { %v2526_v12 = vld [vmem:[#allocation8 + $0x110] sm:$0xff]  ;;  %v2527_v63 = vld [vmem:[#allocation8 + $0x118] sm:$0xff]  ;;  %v2722_v61 = vld [vmem:[#allocation9 + $0x8] sm:$0xff] }
 0x46d   : > { %v2088_v51 = vadd.f32 %v2087_v54, %v2086_v27  ;;  %v3416_v27 = vpack.c.bf16 %v2331_v50, %v2328_v35  ;;  %v3442_v54 = vpack.c.bf16 %v2496_v29, %v2493_v8  ;;  %3441 = vmatpush3.bf16.msra.mxu0 %v3440_v11  ;;  %v2522_v35 = vld [vmem:[#allocation8 + $0xf0] sm:$0xff]  ;;  %v3487_v50 = vpack.c.bf16 %v2521_v32, %v2518_v48  ;;  %v2529_v8 = vld [vmem:[#allocation8 + $0x128] sm:$0xff]  ;;  %v2532_v11 = vld [vmem:[#allocation8 + $0x140] sm:$0xff] }
 0x46e   : > { %3474 = vmatprep.subr.bf16.mxu0 %v5736_v38  ;;  %v2724_v60 = vld [vmem:[#allocation9 + $0x18] sm:$0xff]  ;;  %v2733_v57 = vld [vmem:[#allocation9 + $0x60] sm:$0xff]  ;;  %v2735_v42 = vld [vmem:[#allocation9 + $0x70] sm:$0xff] }
 0x46f   : > { %v2135_v9 = vsel %vm1155_vm9, %v2088_v51, %v2134_v21  ;;  %v2497_v21 = vld [vmem:[#allocation8 + $0x28] sm:$0xff]  ;;  %v2744_v32 = vld [vmem:[#allocation9 + $0xb8] sm:$0xff] }
 0x470   : > { %3199 = vmatmul.mubr.f32.vlgmr.msra.gmra.mrb[0].mxu1 %v2135_v9  ;;  %v3444_v9 = vpack.c.bf16 %v2495_v5, %v2492_v49  ;;  %v2531_v49 = vld [vmem:[#allocation8 + $0x138] sm:$0xff]  ;;  %v2738_v4 = vld [vmem:[#allocation9 + $0x88] sm:$0xff] }
 0x471   : > { %3389 = vmatpush1.bf16.msra.mxu1 %v3388_v40  ;;  %2415 = vmatprep.mubr.f32.mxu1 %v5717_v58  ;;  %v2494_v40 = vld [vmem:[#allocation8 + $0x10] sm:$0xff]  ;;  %v2535_v5 = vld [vmem:[#allocation8 + $0x158] sm:$0xff]  ;;  %v2742_v48 = vld [vmem:[#allocation9 + $0xa8] sm:$0xff] }
 0x472   : > { %3391 = vmatprep.subr.bf16.mxu1 %v3390_v46  ;;  %v2499_v46 = vld [vmem:[#allocation8 + $0x38] sm:$0xff]  ;;  %v3475_v44 = vpack.c.bf16 %v2497_v21, %v2494_v40  ;;  %v2538_v40 = vld [vmem:[#allocation8 + $0x170] sm:$0xff] }
 0x475   : > { %3393 = vmatpush1.bf16.msra.mxu1 %v3392_v20 }
 0x476   : > { %3395 = vmatprep.subr.bf16.mxu1 %v3394_v18  ;;  %v3446_v18 = vpack.c.bf16 %v2502_v43, %v2499_v46  ;;  %v2534_v46 = vld [vmem:[#allocation8 + $0x150] sm:$0xff] }
 0x479   : > { %3397 = vmatpush1.bf16.msra.mxu1 %v3396_v15  ;;  %v2508_v15 = vld [vmem:[#allocation8 + $0x80] sm:$0xff] }
 0x47a   : > { %3399 = vmatprep.subr.bf16.mxu1 %v3398_v26  ;;  %v2504_v26 = vld [vmem:[#allocation8 + $0x60] sm:$0xff]  ;;  %v3450_v16 = vpack.c.bf16 %v2508_v15, %v2505_v39  ;;  %v3498_v15 = vpack.c.bf16 %v2724_v60, %v2722_v61 }
 0x47b   : > { %v3452_v14 = vpack.c.bf16 %v2507_v6, %v2504_v26  ;;  %v2721_v39 = vld [vmem:[#allocation9] sm:$0xff]  ;;  %v2726_v26 = vld [vmem:[#allocation9 + $0x28] sm:$0xff] }
 0x47d   : > { %3401 = vmatpush1.bf16.msra.mxu1 %v3400_v2  ;;  %v2509_v2 = vld [vmem:[#allocation8 + $0x88] sm:$0xff] }
 0x47e   : > { %3403 = vmatprep.subr.bf16.mxu1 %v3402_v22  ;;  %v2511_v22 = vld [vmem:[#allocation8 + $0x98] sm:$0xff]  ;;  %v3481_v37 = vpack.c.bf16 %v2509_v2, %v2506_v62  ;;  %v2727_v62 = vld [vmem:[#allocation9 + $0x30] sm:$0xff]  ;;  %v2730_v2 = vld [vmem:[#allocation9 + $0x48] sm:$0xff] }
 0x481   : > { %3405 = vmatpush1.bf16.msra.mxu1 %v3404_v36  ;;  %v3454_v36 = vpack.c.bf16 %v2514_v31, %v2511_v22  ;;  %v2732_v22 = vld [vmem:[#allocation9 + $0x58] sm:$0xff] }
 0x482   : > { %3407 = vmatprep.subr.bf16.mxu1 %v3406_v1  ;;  %v2513_v1 = vld [vmem:[#allocation8 + $0xa8] sm:$0xff] }
 0x485   : > { %3409 = vmatpush1.bf16.msra.mxu1 %v3408_v13  ;;  %v3456_v13 = vpack.c.bf16 %v2513_v1, %v2510_v59  ;;  %v2731_v59 = vld [vmem:[#allocation9 + $0x50] sm:$0xff]  ;;  %v2736_v1 = vld [vmem:[#allocation9 + $0x78] sm:$0xff] }
 0x486   : > { %3411 = vmatprep.subr.bf16.mxu1 %v3410_v3  ;;  %v2516_v3 = vld [vmem:[#allocation8 + $0xc0] sm:$0xff] }
 0x489   : > { %3413 = vmatpush1.bf16.msra.mxu1 %v3412_v25  ;;  %v2519_v25 = vld [vmem:[#allocation8 + $0xd8] sm:$0xff] }
 0x48a   : > { %3415 = vmatprep.subr.bf16.mxu1 %v3414_v17  ;;  %v3460_v47 = vpack.c.bf16 %v2519_v25, %v2516_v3  ;;  %v3462_v17 = vpack.c.bf16 %v2526_v12, %v2523_v28  ;;  %v3512_v3 = vpack.c.bf16 %v2735_v42, %v2733_v57  ;;  %v2739_v25 = vld [vmem:[#allocation9 + $0x90] sm:$0xff]  ;;  %v3518_v12 = vpack.c.bf16 %v2744_v32, %v2742_v48 }
 0x48d   : > { %3417 = vmatpush1.bf16.msra.mxu1 %v3416_v27  ;;  %v2525_v27 = vld [vmem:[#allocation8 + $0x108] sm:$0xff] }
 0x48e   : > { %3443 = vmatprep.subr.bf16.mxu1 %v3442_v54  ;;  %v3464_v29 = vpack.c.bf16 %v2525_v27, %v2522_v35  ;;  %v2528_v54 = vld [vmem:[#allocation8 + $0x120] sm:$0xff]  ;;  %v2743_v35 = vld [vmem:[#allocation9 + $0xb0] sm:$0xff] }
 0x48f   : > { %v3468_v21 = vpack.c.bf16 %v2531_v49, %v2528_v54  ;;  %v2751_v49 = vld [vmem:[#allocation9 + $0xf0] sm:$0xff] }
 0x543   : > { %v2203_v30 = vpop.f32.mrb[0].mxu1 }
 0x544   : > { %v2274_v55 = vadd.f32 %v5053_v53, %v2203_v30  ;;  %v3200_v51 = vpop.f32.mrb[1].mxu1  ;;  %v3448_v53 = vpack.c.bf16 %v2501_v0, %v2498_v45  ;;  %v3490_v30 = vpack.c.bf16 %v2527_v63, %v2524_v41  ;;  %v2536_v45 = vld [vmem:[#allocation8 + $0x160] sm:$0xff]  ;;  %v5495_v0 = vld [vmem:[#allocation2] sm:$0xff] }
 0x545   : > { %v2533_v51 = vld [vmem:[#allocation8 + $0x148] sm:$0xff]  ;;  %v2745_v63 = vld [vmem:[#allocation9 + $0xc0] sm:$0xff] }
 0x546   : > { %v2284_v24 = vadd.f32 %v3050_v56, %v2274_v55  ;;  %v3466_v56 = vpack.c.bf16 %v2532_v11, %v2529_v8  ;;  %v2530_v55 = vld [vmem:[#allocation8 + $0x130] sm:$0xff]  ;;  %v2750_v11 = vld [vmem:[#allocation9 + $0xe8] sm:$0xff] }
 0x547   : > { %v3493_v43 = vpack.c.bf16 %v2533_v51, %v2530_v55  ;;  %v2747_v8 = vld [vmem:[#allocation9 + $0xd0] sm:$0xff] }
 0x548   : > { %v2285_v20 = vmax.f32 %v2284_v24, 0.0  ;;  %v3470_v24 = vpack.c.bf16 %v2538_v40, %v2535_v5  ;;  %v3524_v54 = vpack.c.bf16 %v2747_v8, %v2745_v63  ;;  %v2540_v40 = vld [vmem:[%s5635_s10] sm:$0x7] }
 0x54a   : > { %2416 = vmatmul.mubr.f32.vlgmr.msra.gmra.mrb[2].mxu1 %v2285_v20  ;;  %3269 = vmatmul.mubr.f32.vlgmr.msra.gmra.mrb[4].mxu0 %v2285_v20 }
 0x54b   : > { %3445 = vmatpush1.bf16.msra.mxu1 %v3444_v9  ;;  %3476 = vmatpush3.bf16.msra.mxu0 %v3475_v44  ;;  %v2537_v9 = vld [vmem:[#allocation8 + $0x168] sm:$0xff]  ;;  %v2539_v44 = vld [vmem:[#allocation8 + $0x178] sm:$0xff] }
 0x54c   : > { %3447 = vmatprep.subr.bf16.mxu1 %v3446_v18  ;;  %3477 = vmatprep.subr.bf16.mxu0 %v5736_v38  ;;  %v3472_v20 = vpack.c.bf16 %v2537_v9, %v2534_v46  ;;  %v3496_v18 = vpack.c.bf16 %v2539_v44, %v2536_v45  ;;  %v2549_v9 = vrot.slane %v2540_v40, %v4721_v23 }
 0x54d   : > { %2621 = vmatprep.mubr.f32.mxu1 %v5717_v58  ;;  %3303 = vmatprep.mubr.msk.f32.mxu0 %vm4086_vm13, %v5717_v58 }
 0x54f   : > { %3449 = vmatpush1.bf16.msra.mxu1 %v3448_v53  ;;  %3479 = vmatpush3.bf16.msra.mxu0 %v3478_v7  ;;  %v2723_v53 = vld [vmem:[#allocation9 + $0x10] sm:$0xff]  ;;  %v2728_v7 = vld [vmem:[#allocation9 + $0x38] sm:$0xff] }
 0x550   : > { %3451 = vmatprep.subr.bf16.mxu1 %v3450_v16  ;;  %3480 = vmatprep.subr.bf16.mxu0 %v5736_v38  ;;  %v3500_v16 = vpack.c.bf16 %v2723_v53, %v2721_v39  ;;  %v3502_v6 = vpack.c.bf16 %v2728_v7, %v2726_v26 }
 0x553   : > { %3453 = vmatpush1.bf16.msra.mxu1 %v3452_v14  ;;  %3482 = vmatpush3.bf16.msra.mxu0 %v3481_v37  ;;  %v3506_v14 = vpack.c.bf16 %v2732_v22, %v2730_v2  ;;  %v2734_v37 = vld [vmem:[#allocation9 + $0x68] sm:$0xff] }
 0x554   : > { %3455 = vmatprep.subr.bf16.mxu1 %v3454_v36  ;;  %3483 = vmatprep.subr.bf16.mxu0 %v5736_v38  ;;  %v3510_v33 = vpack.c.bf16 %v2736_v1, %v2734_v37 }
 0x557   : > { %3457 = vmatpush1.bf16.msra.mxu1 %v3456_v13  ;;  %3485 = vmatpush3.bf16.msra.mxu0 %v3484_v52  ;;  %v2740_v13 = vld [vmem:[#allocation9 + $0x98] sm:$0xff] }
 0x558   : > { %3459 = vmatprep.subr.bf16.mxu1 %v3458_v19  ;;  %3486 = vmatprep.subr.bf16.mxu0 %v5736_v38  ;;  %v3514_v52 = vpack.c.bf16 %v2740_v13, %v2738_v4  ;;  %v2737_v19 = vld [vmem:[#allocation9 + $0x80] sm:$0xff] }
 0x559   : > { %v3516_v28 = vpack.c.bf16 %v2739_v25, %v2737_v19 }
 0x55b   : > { %3461 = vmatpush1.bf16.msra.mxu1 %v3460_v47  ;;  %3488 = vmatpush3.bf16.msra.mxu0 %v3487_v50  ;;  %v2741_v47 = vld [vmem:[#allocation9 + $0xa0] sm:$0xff]  ;;  %v2746_v50 = vld [vmem:[#allocation9 + $0xc8] sm:$0xff] }
 0x55c   : > { %3463 = vmatprep.subr.bf16.mxu1 %v3462_v17  ;;  %3489 = vmatprep.subr.bf16.mxu0 %v5736_v38  ;;  %v2748_v17 = vld [vmem:[#allocation9 + $0xd8] sm:$0xff]  ;;  %v3520_v27 = vpack.c.bf16 %v2743_v35, %v2741_v47 }
 0x55d   : > { %v3522_v41 = vpack.c.bf16 %v2748_v17, %v2746_v50 }
 0x55f   : > { %3465 = vmatpush1.bf16.msra.mxu1 %v3464_v29  ;;  %3491 = vmatpush3.bf16.msra.mxu0 %v3490_v30  ;;  %v2752_v29 = vld [vmem:[#allocation9 + $0xf8] sm:$0xff] }
 0x560   : > { %3467 = vmatprep.subr.bf16.mxu1 %v3466_v56  ;;  %3492 = vmatprep.subr.bf16.mxu0 %v5736_v38  ;;  %v3526_v30 = vpack.c.bf16 %v2752_v29, %v2750_v11  ;;  %v2749_v56 = vld [vmem:[#allocation9 + $0xe0] sm:$0xff] }
 0x561   : > { %v3528_v55 = vpack.c.bf16 %v2751_v49, %v2749_v56 }
 0x563   : > { %3469 = vmatpush1.bf16.msra.mxu1 %v3468_v21  ;;  %3494 = vmatpush3.bf16.msra.mxu0 %v3493_v43  ;;  %v2334_v21 = vld [vmem:[%s5634_s9] sm:$0x7]  ;;  %v2545_v43 = vrot.slane %v2540_v40, %v4368_v10 }
 0x564   : > { %3471 = vmatprep.subr.bf16.mxu1 %v3470_v24  ;;  %3495 = vmatprep.subr.bf16.mxu0 %v5736_v38  ;;  %v2725_v38 = vld [vmem:[#allocation9 + $0x20] sm:$0xff]  ;;  %v2339_v46 = vrot.slane %v2334_v21, %v4368_v10  ;;  %v2343_v24 = vrot.slane %v2334_v21, %v4721_v23 }
 0x565   : > { %v3504_v31 = vpack.c.bf16 %v2727_v62, %v2725_v38  ;;  %v2347_v62 = vrot.slane %v2334_v21, %v4738_v34 }
 0x566   : > { %v3530_v45 = vadd.f32 %v2545_v43, %v2339_v46 }
 0x567   : > { %3473 = vmatpush1.bf16.msra.mxu1 %v3472_v20  ;;  %3497 = vmatpush3.bf16.msra.mxu0 %v3496_v18  ;;  %v3532_v20 = vadd.f32 %v2549_v9, %v2343_v24 }
 0x568   : > { %3499 = vmatprep.subr.bf16.mxu1 %v3498_v15 }
 0x56a   : > { %2622 = vmatmul.mubr.f32.vlgmr.msra.gmra.mrb[2].mxu1 %v5495_v0  ;;  %3304 = vmatmul.mubr.f32.vlgmr.msra.gmra.mrb[6].mxu0 %v5495_v0 }
 0x56b   : > { %2829 = vmatprep.mubr.f32.mxu1 %v5717_v58  ;;  %3501 = vmatpush1.bf16.msra.mxu1 %v3500_v16  ;;  %v2729_v58 = vld [vmem:[#allocation9 + $0x40] sm:$0xff] }
 0x56c   : > { %3503 = vmatprep.subr.bf16.mxu1 %v3502_v6  ;;  %v3508_v36 = vpack.c.bf16 %v2731_v59, %v2729_v58  ;;  %v2553_v6 = vrot.slane %v2540_v40, %v4738_v34  ;;  %v2753_v34 = vld [vmem:[%s5737_s16] sm:$0x3] }
 0x56d   : > { %v2758_v4 = vrot.slane %v2753_v34, %v4368_v10  ;;  %v2762_v13 = vrot.slane %v2753_v34, %v4721_v23 }
 0x56f   : > { %3505 = vmatpush1.bf16.msra.mxu1 %v3504_v31 }
 0x570   : > { %3507 = vmatprep.subr.bf16.mxu1 %v3506_v14 }
 0x573   : > { %3509 = vmatpush1.bf16.msra.mxu1 %v3508_v36 }
 0x574   : > { %3511 = vmatprep.subr.bf16.mxu1 %v3510_v33 }
 0x577   : > { %3513 = vmatpush1.bf16.msra.mxu1 %v3512_v3 }
 0x578   : > { %3515 = vmatprep.subr.bf16.mxu1 %v3514_v52 }
 0x57b   : > { %3517 = vmatpush1.bf16.msra.mxu1 %v3516_v28 }
 0x57c   : > { %3519 = vmatprep.subr.bf16.mxu1 %v3518_v12 }
 0x57f   : > { %3521 = vmatpush1.bf16.msra.mxu1 %v3520_v27 }
 0x580   : > { %3523 = vmatprep.subr.bf16.mxu1 %v3522_v41 }
 0x583   : > { %3525 = vmatpush1.bf16.msra.mxu1 %v3524_v54 }
 0x584   : > { %3527 = vmatprep.subr.bf16.mxu1 %v3526_v30 }
 0x587   : > { %3529 = vmatpush1.bf16.msra.mxu1 %v3528_v55 }
 0x61d   : > { %v2488_v51 = vpop.f32.mrb[4].mxu0 }
 0x61e   : > { %v3270_v5 = vpop.f32.mrb[5].mxu0  ;;  %v2489_v14 = vadd.f32 %v2488_v51, %v2347_v62 }
 0x63d   : > { %v2623_v44 = vpop.f32.mrb[2].mxu1  ;;  %v2694_v18 = vpop.f32.mrb[6].mxu0 }
 0x63e   : > { %v3531_v61 = vadd.f32 %v3530_v45, %v2623_v44  ;;  %v2625_v60 = vpop.f32.mrb[3].mxu1  ;;  %v3305_v39 = vpop.f32.mrb[7].mxu0  ;;  %v2695_v22 = vadd.f32 %v2694_v18, %v2553_v6 }
 0x63f   : > { %v3533_v53 = vadd.f32 %v3532_v20, %v2625_v60 }
 0x640   : > { %v3051_v15 = vmul.f32 -1.442695, %v3531_v61 }
 0x641   : > { %v3052_v26 = vmul.f32 -1.442695, %v3533_v53 }
 0x642   : > { %3773 = vpow2.f32 %v3051_v15 }
 0x643   : > { %3775 = vpow2.f32 %v3052_v26 }
 0x64c   : > { %v3774_v7 = vpop.eup %3773 }
 0x64d   : > { %v2702_v16 = vadd.f32 1.0, %v3774_v7  ;;  %v3776_v38 = vpop.eup %3775 }
 0x64e   : > { %v2709_v2 = vadd.f32 1.0, %v3776_v38 }
 0x64f   : > { %3777 = vrcp.f32 %v2702_v16 }
 0x650   : > { %3779 = vrcp.f32 %v2709_v2 }
 0x659   : > { %v3778_v31 = vpop.eup %3777 }
 0x65a   : > { %v2712_v58 = vmul.f32 %v3778_v31, %v2695_v22  ;;  %v3780_v37 = vpop.eup %3779 }
 0x65b   : > { %v2715_v36 = vsub.f32 1.0, %v3780_v37  ;;  %v2717_v42 = vmul.f32 %v5495_v0, %v3780_v37 }
 0x65c   : > { %v2713_v59 = vadd.f32 %v2712_v58, %v2489_v14 }
 0x65e   : > { %3781 = vtanh.f32 %v2713_v59 }
 0x668   : > { %v3782_v1 = vpop.eup %3781 }
 0x669   : > { %v2716_v57 = vmul.f32 %v3782_v1, %v2715_v36 }
 0x66b   : > { %v2718_v33 = vadd.f32 %v2717_v42, %v2716_v57 }
 0x66d   : > { %2719 = vst [vmem:[#allocation2] sm:$0xff] %v2718_v33  ;;  %2830 = vmatmul.mubr.f32.vlgmr.msra.gmra.mrb[4].mxu1 %v2718_v33  ;;  %2720 = vst [vmem:[#allocation14] sm:$0xff] %v2718_v33 }
 0x740   : > { %v2831_v3 = vpop.f32.mrb[4].mxu1 }
 0x741   : > { %v2832_v52 = vadd.f32 %v2831_v3, %v2758_v4  ;;  %v2833_v19 = vpop.f32.mrb[5].mxu1 }
 0x742   : > { %v2834_v25 = vadd.f32 %v2833_v19, %v2762_v13 }
 0x744   : > { %v2836_v48 = vmax.f32 %v2832_v52, %v2834_v25 }
 0x746   : > { %2837 = vmax.xlane.f32.xlu1 %v2836_v48 }
 0x7d3   : > { %v2838_v0 = vpop.xlane.xlu1 %2837 }
 0x7d4   : > { %v5518_v32 = vsub.f32 %v2832_v52, %v2838_v0  ;;  %v5520_v28 = vsub.f32 %v2834_v25, %v2838_v0 }
 0x7d6   : > { %v2841_v12 = vmul.f32 1.442695, %v5518_v32  ;;  %v2843_v10 = vmul.f32 1.442695, %v5520_v28 }
 0x7d8   : > { %3783 = vpow2.f32 %v2841_v12 }
 0x7d9   : > { %3785 = vpow2.f32 %v2843_v10 }
 0x7e2   : > { %v3784_v23 = vpop.eup %3783 }
 0x7e3   : > { %v3786_v47 = vpop.eup %3785 }
 0x7e4   : > { %v2845_v35 = vadd.f32 %v3786_v47, %v3784_v23 }
 0x7e6   : > { %2846 = vadd.xlane.f32.xlu0 %v2845_v35 }
 0x7e7   : > { %3947 = shalt.err (!%p3944_p11)
}
 0x7e8   : > { %s3948_s15 = scalar_lea.hbm %s5529_s24, 128  ;;  %s3952_s21 = scalar_lea.hbm %s5739_s23, 512 }
 0x7e9   : > { %p3949_p1 = scmp.ne.s32.totalorder %s5529_s24, %s3948_s15  ;;  %p3953_p4 = scmp.lt.u32.totalorder %s5529_s24, %s5739_s23 }
 0x7ea   : > { %p3954_p13 = scmp.lt.u32.totalorder %s3952_s21, %s3948_s15  ;;  %p3956_p8 = scmp.lt.u32.totalorder %s3948_s15, %s5529_s24 }
 0x7eb   : > { %p3950_p9 = pnand %p3949_p1, %p5740_p12 }
 0x7ec   : > { %p3955_p7 = por %p3954_p13, %p3953_p4 }
 0x7ed   : > { %p3951_p10 = pneg %p3950_p9 }
 0x7ee   : > { %p3957_p0 = por %p3956_p8, %p3955_p7 }
 0x7f0   : > { %p3958_p3 = pnand %p3957_p0, %p3951_p10 }
 0x7f2   : > { %3961 = shalt.err (!%p3958_p3)
}
 0x7f3   : > { %3553 = dma.vmem_to_hbm [thread:$0]  (%p5740_p12), %s2888_s18, 128, %s5529_s24, %s2860_s12  }
 0x7f4   : > { %s4089_s30 = smov [#allocation14]   ;;  %p5741_p6 = scmp.eq.s32.totalorder %s4192_s22, 3 }
 0x7f5   : > { %s2898_s25 = sshll.u32 %s4089_s30, 4  ;;  %s2899_s25 = int_to_ptr.vmem [resolvable:$true] %s2898_s25 }
 0x7f6   : > { %s3962_s28 = scalar_lea.vmem %s2899_s25, 128  ;;  %p3969_p1 = scmp.lt.s32.totalorder %s2899_s25, %s2899_s25 }
 0x7f7   : > { %p3963_p2 = scmp.ne.s32.totalorder %s2899_s25, %s3962_s28  ;;  %p3970_p9 = scmp.lt.s32.totalorder %s3962_s28, %s3962_s28 }
 0x7f9   : > { %p3964_p5 = pnand %p3963_p2, %p5741_p6  ;;  %p3971_p4 = por %p3970_p9, %p3969_p1 }
 0x7fb   : > { %p3965_p11 = pneg %p3964_p5 }
 0x7fd   : > { %p3972_p13 = pnand %p3971_p4, %p3965_p11 }
 0x7ff   : > { %3975 = shalt.err (!%p3972_p13)
}
 0x800   : > { %s5742_s16 = sld [smem:[#allocation44_spill]]  ;;  %p5743_p7 = pmov %p5741_p6 }
 0x806   : > { %s3976_s27 = scalar_lea.hbm %s5742_s16, 128 }
 0x807   : > { %p3977_p10 = scmp.ne.s32.totalorder %s5742_s16, %s3976_s27  ;;  %p3982_p3 = scmp.lt.u32.totalorder %s3976_s27, %s5742_s16 }
 0x809   : > { %p3978_p8 = pnand %p3977_p10, %p5743_p7 }
 0x80b   : > { %p3979_p0 = pneg %p3978_p8 }
 0x80d   : > { %p3984_p2 = pnand %p3982_p3, %p3979_p0 }
 0x80f   : > { %3987 = shalt.err (!%p3984_p2)
}
 0x810   : > { %3555 = dma.vmem_to_hbm [thread:$0]  (%p5741_p6), %s2899_s25, 128, %s5742_s16, [#allocation13]  }
 0x811   : > { %s3062_s30 = sshll.u32 %s4192_s22, 8  ;;  %s2874_s28 = sshll.u32 %s4351_s14, 4  ;;  %s5576_s28 = int_to_ptr.vmem [resolvable:$true] %s2874_s28 }
 0x812   : > { %s5744_s27 = sld [smem:[#allocation42_spill]]  ;;  %s2855_s25 = scalar_lea.sflag [#allocation5], %s4347_s13 }
 0x813   : > { %s3988_s24 = scalar_lea.vmem %s5576_s28, 256  ;;  %s4090_s18 = smov [#allocation11]  }
 0x814   : > { %p3989_p5 = scmp.ne.s32.totalorder %s5576_s28, %s3988_s24  ;;  %s3992_s12 = sshll.u32 %s4090_s18, 4  ;;  %s3993_s12 = int_to_ptr.vmem [resolvable:$false] %s3992_s12 }
 0x815   : > { %s3994_s17 = scalar_lea.vmem %s3993_s12, 512  ;;  %p3995_p9 = scmp.lt.s32.totalorder %s5576_s28, %s3993_s12 }
 0x816   : > { %p3990_p11 = pnand %p3989_p5, %p5740_p12  ;;  %p3996_p4 = scmp.lt.s32.totalorder %s3994_s17, %s3988_s24 }
 0x818   : > { %s5574_s21 = scalar_lea.hbm %s5744_s27, %s3062_s30  ;;  %p3991_p1 = pneg %p3990_p11 }
 0x819   : > { %p3997_p13 = por %p3996_p4, %p3995_p9 }
 0x81b   : > { %p3998_p10 = pnand %p3997_p13, %p3991_p1 }
 0x873   : > { %v2847_v50 = vpop.xlane.xlu0 %2846 }
 0x874   : > { %3787 = vlog2.f32 %v2847_v50 }
 0x87e   : > { %v3788_v17 = vpop.eup %3787 }
 0x87f   : > { %v2849_v27 = vmul.f32 0.6931472, %v3788_v17 }
 0x881   : > { %v2850_v41 = vsub.f32 %v5518_v32, %v2849_v27  ;;  %v2851_v63 = vsub.f32 %v5520_v28, %v2849_v27 }
 0x883   : > { %2852 = vst [vmem:[%s4351_s14] sm:$0xff] %v2850_v41  ;;  %2853 = vst [vmem:[%s4351_s14 + $0x8] sm:$0xff] %v2851_v63 }
 0x884   : > { %4001 = shalt.err (!%p3998_p10)
}
 0x885   : > { %s4002_s13 = scalar_lea.hbm %s5574_s21, 256  ;;  %s4006_s30 = scalar_lea.hbm %s5744_s27, 1024 }
 0x886   : > { %p4003_p7 = scmp.ne.s32.totalorder %s5574_s21, %s4002_s13  ;;  %p4007_p3 = scmp.lt.u32.totalorder %s5574_s21, %s5744_s27 }
 0x887   : > { %p4008_p2 = scmp.lt.u32.totalorder %s4006_s30, %s4002_s13  ;;  %p4010_p5 = scmp.lt.u32.totalorder %s4002_s13, %s5574_s21 }
 0x888   : > { %p4004_p8 = pnand %p4003_p7, %p5740_p12 }
 0x889   : > { %p4009_p6 = por %p4008_p2, %p4007_p3 }
 0x88a   : > { %p4005_p0 = pneg %p4004_p8 }
 0x88b   : > { %p4011_p11 = por %p4010_p5, %p4009_p6 }
 0x88d   : > { %p4012_p1 = pnand %p4011_p11, %p4005_p0 }
 0x88f   : > { %4015 = shalt.err (!%p4012_p1)
}
 0x890   : > { %3552 = dma.vmem_to_hbm [thread:$0]  (%p5740_p12), %s5576_s28, 256, %s5574_s21, %s2855_s25  }
 0x891   : > { %p5745_p9 = scmp.eq.s32.totalorder %s4192_s22, 3 }
 0x893   : > { %4045 = dma.done.wait (%p5745_p9), [#allocation13], 128   ;;  %p5746_p4 = pmov %p5745_p9 }
 0x895   : > { %4047 = vsyncadd (%p5746_p4), [#allocation13], 4294967168 }
 0x896 PF: > { %s5747_s24 = sld [smem:[#allocation23_spill]]  ;;  %s5748_s18 = sld [smem:[#allocation21_spill]] }
 0x897   : > { %s5749_s12 = sld [smem:[#allocation27_spill]] }
 0x89c   : > { %p3590_p13 = scmp.ge.s32.totalorder %s5747_s24, 2  ;;  %s2914_s17 = sand.u32 1, %s5748_s18  }
 0x89d   : > { %p5750_p10 = scmp.ne.s32.totalorder %s5749_s12, 0  ;;  %s2915_s13 = scalar_lea.sflag [#allocation5], %s2914_s17 }
 0x89f   : > { %p3574_p7 = pnand %p3590_p13, %p5750_p10 }
 0x8a1   : > { %4049 = dma.done.wait (!%p3574_p7), %s2915_s13, 256  }
 0x8a2   : > { %4051 = vsyncadd (!%p3574_p7), %s2915_s13, 4294967040  ;;  %s5751_s26 = sadd.s32 4294967294, %s5747_s24  }
 0x8a3   : > { %s2923_s14 = sand.u32 1, %s5751_s26  }
 0x8a4   : > { %s2924_s28 = scalar_lea.sflag [#allocation13], %s2923_s14 }
 0x8a5   : > { %4053 = dma.done.wait (!%p3574_p7), %s2924_s28, 128  }
 0x8a6   : > { %4055 = vsyncadd (!%p3574_p7), %s2924_s28, 4294967168  ;;  %s5752_s21 = sld [smem:[#allocation24_spill]]  ;;  %s5753_s22 = sld [smem:[#allocation22_spill]] }
 0x8a7   : > { %s5754_s20 = sld [smem:[#allocation25_spill]]  ;;  %s5755_s18 = smov %s4062_s19 }
 0x8ac   : > { %p32_p12 = scmp.ge.s32.totalorder %s5752_s21, 6   ;;  %s5756_s19 = smov %s5753_s22 }
 0x8ae   :  { %34 = sbr.rel (!%p32_p12) target bundleno = 13 (0xd), region = 151 }
 0x8b5   :  { %2929 = vsyncpa [#allocation4], 1 }
 0x8b6   :  { %2931 = vsyncpa [#allocation4 + $0x1], 1 }
 0x8b7   :  { %2932 = vsyncpa [#allocation7], 1 }
 0x8b8   :  { %2933 = vsyncpa [#allocation10], 1 }
 0x8b9   :  { %2934 = vsyncpa [#allocation5], 1 }
 0x8ba   :  { %2936 = vsyncpa [#allocation5 + $0x1], 1 }
 0x8bb   :  { %2937 = vsyncpa [#allocation13], 1 }
 0x8bc   :  { %2939 = vsyncpa [#allocation13 + $0x1], 1 }

</bundles_post_ra>
